<compile_context>
chip_gen: v7x
topology: tpu7x:2x2x1
jax: 0.10.0
libtpu: 0.0.40
codegen_flags: <defaults>
</compile_context>

<pallas_src>
import jax
import jax.numpy as jnp
from jax.experimental import pallas as pl
from jax.experimental.pallas import tpu as pltpu

# ---- small, deterministic hyper-parameters -------------------------------
B, T, N, C = 2, 8, 16, 4          # batch, time, num_nodes, in_dim
GIN_HIDDEN = 32                   # gin_hidden_dim
GIN_OUT = 1                       # gin_out_dim (so stacks flatten to (B, T*N))
NUM_STACKS = 3
EPS = 0.1
FC_HIDDEN = 32                    # mlp hidden_dim
FC_OUT = 10                       # mlp output_dim (num classes)
FC_IN = N * T                     # num_nodes * time_dim = 128
BT = B * T                        # 16
BTN = BT * N                      # 256


# ---------------------------------------------------------------------------
# Fused kernel: GIN stacks + stack averaging + 2-layer FC head, one invocation
# ---------------------------------------------------------------------------
def gin_fused_kernel(A_ref, h_ref, w1_ref, b1_ref, w2_ref, b2_ref,
                     fw1_ref, fb1_ref, fw2_ref, fb2_ref, o_ref):
    A_blk = A_ref[...]                     # (BTN, BTN) block-diag of A + (1+eps)I
    h = h_ref[...]                         # (BTN, C)   all (b,t) node slabs stacked

    # --- GIN stacks --------------------------------------------------------
    # acc_wide accumulates sum_s z2_s * w2_s (lane-dense); the hidden-axis
    # reduction is done only once after the stack loop.
    acc_wide = jnp.zeros((BTN, GIN_HIDDEN), jnp.float32)
    b2_total = jnp.zeros((1, 1), jnp.float32)
    for s in range(NUM_STACKS):            # static unroll over the 3 stacks
        # layer 1:  relu((A_hat @ h) @ W1 + b1) == relu(A_hat @ (h @ W1) + b1)
        y = jnp.dot(h, w1_ref[s], preferred_element_type=jnp.float32)        # (BTN, H)
        z1 = jnp.dot(A_blk, y, preferred_element_type=jnp.float32) + b1_ref[s]
        z1 = jnp.maximum(z1, 0.0)
        # layer 2: aggregate; the (H -> 1) projection is deferred via * w2
        z2 = jnp.dot(A_blk, z1, preferred_element_type=jnp.float32)          # (BTN, H)
        acc_wide = acc_wide + z2 * w2_ref[s]
        b2_total = b2_total + b2_ref[s]

    # per-node stack output, averaged over stacks (average=True): (BTN, 1)
    node_out = (jnp.sum(acc_wide, axis=-1, keepdims=True) + b2_total) * (1.0 / NUM_STACKS)

    # --- FC head (flatten(1) + 2-layer MLP), fused --------------------------
    # flatten(1) maps rows [b*T*N, (b+1)*T*N) of node_out to batch row b, so
    # FC layer 1 becomes a broadcast-multiply + sublane reduction per row.
    fw1 = fw1_ref[...]                     # (T*N, FC_HIDDEN), hoisted load
    rows = []
    for b in range(B):                     # static unroll, B = 2
        blk = node_out[b * FC_IN:(b + 1) * FC_IN, :]                         # (T*N, 1)
        rows.append(jnp.sum(blk * fw1, axis=0, keepdims=True))               # (1, FC_HIDDEN)
    hid = jnp.concatenate(rows, axis=0) + fb1_ref[...]                       # (B, FC_HIDDEN)
    hid = jnp.maximum(hid, 0.0)
    o_ref[...] = (jnp.dot(hid, fw2_ref[...], preferred_element_type=jnp.float32)
                  + fb2_ref[...])                                            # (B, FC_OUT)


# ---------------------------------------------------------------------------
# Wrapper: adjacency preprocessing (A-only, done once) + single pallas_call
# ---------------------------------------------------------------------------
def gin_action_recog_forward(features, A, params):
    Bv, Tv, Nv, Cv = features.shape
    assert (Bv, Tv, Nv, Cv) == (B, T, N, C)
    # Fold the (1+eps) self-connection into the adjacency and pre-expand it to
    # a block-diagonal operator over all batch*time graph copies so every
    # aggregation inside the kernel is a single MXU matmul.
    A_hat = A.astype(jnp.float32) + (1.0 + EPS) * jnp.eye(Nv, dtype=jnp.float32)
    A_blk = jnp.kron(jnp.eye(Bv * Tv, dtype=jnp.float32), A_hat)          # (BTN, BTN)
    h_flat = features.astype(jnp.float32).reshape(Bv * Tv * Nv, Cv)       # (BTN, C)

    vmem = pl.BlockSpec(memory_space=pltpu.MemorySpace.VMEM)  # whole array, resident
    return pl.pallas_call(
        gin_fused_kernel,
        out_shape=jax.ShapeDtypeStruct((Bv, FC_OUT), jnp.float32),
        in_specs=[vmem] * 10,
        out_specs=vmem,
    )(A_blk, h_flat,
      params["gin_w1"], params["gin_b1"], params["gin_w2"], params["gin_b2"],
      params["fc_w1"], params["fc_b1"], params["fc_w2"], params["fc_b2"])


def init_params(key):
    ks = jax.random.split(key, 8)
    scale = 0.1
    return {
        "gin_w1": scale * jax.random.normal(ks[0], (NUM_STACKS, C, GIN_HIDDEN), jnp.float32),
        "gin_b1": scale * jax.random.normal(ks[1], (NUM_STACKS, 1, GIN_HIDDEN), jnp.float32),
        # gin_w2 stored as a row (1, H) per stack; equivalent to an (H, 1) Linear weight.
        "gin_w2": scale * jax.random.normal(ks[2], (NUM_STACKS, 1, GIN_HIDDEN), jnp.float32),
        "gin_b2": scale * jax.random.normal(ks[3], (NUM_STACKS, 1, 1), jnp.float32),
        "fc_w1": scale * jax.random.normal(ks[4], (FC_IN, FC_HIDDEN), jnp.float32),
        "fc_b1": scale * jax.random.normal(ks[5], (1, FC_HIDDEN), jnp.float32),
        "fc_w2": scale * jax.random.normal(ks[6], (FC_HIDDEN, FC_OUT), jnp.float32),
        "fc_b2": scale * jax.random.normal(ks[7], (1, FC_OUT), jnp.float32),
    }


def reference_forward(features, A, params):
    """Pure-JAX reference of the same math (numerical self-check)."""
    Bv, Tv, Nv, Cv = features.shape
    h = features.astype(jnp.float32).reshape(Bv * Tv, Nv, Cv)
    A = A.astype(jnp.float32)
    acc = jnp.zeros((Bv * Tv, Nv, GIN_OUT), jnp.float32)
    for s in range(NUM_STACKS):
        z = (1.0 + EPS) * h + jnp.einsum("mn,bnc->bmc", A, h)
        z = jnp.maximum(z @ params["gin_w1"][s] + params["gin_b1"][s], 0.0)
        z = (1.0 + EPS) * z + jnp.einsum("mn,bnc->bmc", A, z)
        z = z @ params["gin_w2"][s].T + params["gin_b2"][s]
        acc = acc + z
    out = (acc / NUM_STACKS).reshape(Bv, Tv * Nv * GIN_OUT)   # == torch .flatten(1)
    hid = jnp.maximum(out @ params["fc_w1"] + params["fc_b1"], 0.0)
    return hid @ params["fc_w2"] + params["fc_b2"]


if __name__ == "__main__":
    key = jax.random.PRNGKey(0)
    k_feat, k_adj, k_par = jax.random.split(key, 3)

    # features: (batch, time, num_nodes, in_channel)
    features = jax.random.normal(k_feat, (B, T, N, C), jnp.float32)

    # A: (num_nodes, num_nodes) symmetric 0/1 adjacency, no self loops
    raw = jax.random.bernoulli(k_adj, 0.3, (N, N))
    A = jnp.triu(raw, 1)
    A = (A | A.T).astype(jnp.float32)

    params = init_params(k_par)

    logits = jax.jit(gin_action_recog_forward)(features, A, params)
    jax.block_until_ready(logits)
    assert logits.shape == (B, FC_OUT)

    # numerical self-check against a pure-JAX reference
    with jax.default_matmul_precision("float32"):
        ref = reference_forward(features, A, params)
    max_err = float(jnp.max(jnp.abs(logits - ref)))
    assert max_err < 3e-2, f"kernel/reference mismatch: max abs err {max_err}"

    print("KERNEL_OK")
</pallas_src>

<mosaic_0001>
module attributes {stable_mosaic.version = 11 : i64} {
  func.func @gin_fused_kernel(%arg0: memref<256x256xf32, #tpu.memory_space<vmem>>, %arg1: memref<256x4xf32, #tpu.memory_space<vmem>>, %arg2: memref<3x4x32xf32, #tpu.memory_space<vmem>>, %arg3: memref<3x1x32xf32, #tpu.memory_space<vmem>>, %arg4: memref<3x1x32xf32, #tpu.memory_space<vmem>>, %arg5: memref<3x1x1xf32, #tpu.memory_space<vmem>>, %arg6: memref<128x32xf32, #tpu.memory_space<vmem>>, %arg7: memref<1x32xf32, #tpu.memory_space<vmem>>, %arg8: memref<32x10xf32, #tpu.memory_space<vmem>>, %arg9: memref<1x10xf32, #tpu.memory_space<vmem>>, %arg10: memref<2x10xf32, #tpu.memory_space<vmem>>) attributes {dimension_semantics = [], scalar_prefetch = 0 : i64, scratch_operands = 0 : i64, tpu.core_type = #tpu.core_type<tc>} {
    %c0 = arith.constant 0 : index
    %c0_0 = arith.constant 0 : index
    %0 = vector.load %arg0[%c0, %c0_0] : memref<256x256xf32, #tpu.memory_space<vmem>>, vector<256x256xf32>
    %c0_1 = arith.constant 0 : index
    %c0_2 = arith.constant 0 : index
    %1 = vector.load %arg1[%c0_1, %c0_2] : memref<256x4xf32, #tpu.memory_space<vmem>>, vector<256x4xf32>
    %cst = arith.constant 0.000000e+00 : f32
    %2 = vector.broadcast %cst : f32 to vector<256x32xf32>
    %cst_3 = arith.constant 0.000000e+00 : f32
    %3 = vector.broadcast %cst_3 : f32 to vector<1x1xf32>
    %c0_4 = arith.constant 0 : index
    %c0_5 = arith.constant 0 : index
    %c0_6 = arith.constant 0 : index
    %4 = vector.load %arg2[%c0_4, %c0_5, %c0_6] : memref<3x4x32xf32, #tpu.memory_space<vmem>>, vector<1x4x32xf32>
    %5 = vector.shape_cast %4 : vector<1x4x32xf32> to vector<4x32xf32>
    %cst_7 = arith.constant dense<0.000000e+00> : vector<256x32xf32>
    %6 = tpu.matmul %1, %5, %cst_7 {dimension_numbers = #tpu.dot_dimension_numbers<[1], [0], [0], [1], [0, 0, 1, 1], [], []>} : vector<256x4xf32>, vector<4x32xf32>, vector<256x32xf32> -> vector<256x32xf32>
    %cst_8 = arith.constant dense<0.000000e+00> : vector<256x32xf32>
    %7 = tpu.matmul %0, %6, %cst_8 {dimension_numbers = #tpu.dot_dimension_numbers<[1], [0], [0], [1], [0, 0, 1, 1], [], []>} : vector<256x256xf32>, vector<256x32xf32>, vector<256x32xf32> -> vector<256x32xf32>
    %c0_9 = arith.constant 0 : index
    %c0_10 = arith.constant 0 : index
    %c0_11 = arith.constant 0 : index
    %8 = vector.load %arg3[%c0_9, %c0_10, %c0_11] : memref<3x1x32xf32, #tpu.memory_space<vmem>>, vector<1x1x32xf32>
    %9 = vector.shape_cast %8 : vector<1x1x32xf32> to vector<1x32xf32>
    %10 = vector.broadcast %9 : vector<1x32xf32> to vector<256x32xf32>
    %11 = arith.addf %7, %10 : vector<256x32xf32>
    %cst_12 = arith.constant 0.000000e+00 : f32
    %12 = vector.broadcast %cst_12 : f32 to vector<256x32xf32>
    %13 = arith.maximumf %11, %12 : vector<256x32xf32>
    %cst_13 = arith.constant dense<0.000000e+00> : vector<256x32xf32>
    %14 = tpu.matmul %0, %13, %cst_13 {dimension_numbers = #tpu.dot_dimension_numbers<[1], [0], [0], [1], [0, 0, 1, 1], [], []>} : vector<256x256xf32>, vector<256x32xf32>, vector<256x32xf32> -> vector<256x32xf32>
    %c0_14 = arith.constant 0 : index
    %c0_15 = arith.constant 0 : index
    %c0_16 = arith.constant 0 : index
    %15 = vector.load %arg4[%c0_14, %c0_15, %c0_16] : memref<3x1x32xf32, #tpu.memory_space<vmem>>, vector<1x1x32xf32>
    %16 = vector.shape_cast %15 : vector<1x1x32xf32> to vector<1x32xf32>
    %17 = vector.broadcast %16 : vector<1x32xf32> to vector<256x32xf32>
    %18 = arith.mulf %14, %17 : vector<256x32xf32>
    %19 = arith.addf %2, %18 : vector<256x32xf32>
    %c0_17 = arith.constant 0 : index
    %c0_18 = arith.constant 0 : index
    %c0_19 = arith.constant 0 : index
    %20 = vector.load %arg5[%c0_17, %c0_18, %c0_19] : memref<3x1x1xf32, #tpu.memory_space<vmem>>, vector<1x1x1xf32>
    %21 = vector.shape_cast %20 : vector<1x1x1xf32> to vector<1x1xf32>
    %22 = arith.addf %3, %21 : vector<1x1xf32>
    %c1 = arith.constant 1 : index
    %c0_20 = arith.constant 0 : index
    %c0_21 = arith.constant 0 : index
    %23 = vector.load %arg2[%c1, %c0_20, %c0_21] : memref<3x4x32xf32, #tpu.memory_space<vmem>>, vector<1x4x32xf32>
    %24 = vector.shape_cast %23 : vector<1x4x32xf32> to vector<4x32xf32>
    %cst_22 = arith.constant dense<0.000000e+00> : vector<256x32xf32>
    %25 = tpu.matmul %1, %24, %cst_22 {dimension_numbers = #tpu.dot_dimension_numbers<[1], [0], [0], [1], [0, 0, 1, 1], [], []>} : vector<256x4xf32>, vector<4x32xf32>, vector<256x32xf32> -> vector<256x32xf32>
    %cst_23 = arith.constant dense<0.000000e+00> : vector<256x32xf32>
    %26 = tpu.matmul %0, %25, %cst_23 {dimension_numbers = #tpu.dot_dimension_numbers<[1], [0], [0], [1], [0, 0, 1, 1], [], []>} : vector<256x256xf32>, vector<256x32xf32>, vector<256x32xf32> -> vector<256x32xf32>
    %c1_24 = arith.constant 1 : index
    %c0_25 = arith.constant 0 : index
    %c0_26 = arith.constant 0 : index
    %27 = vector.load %arg3[%c1_24, %c0_25, %c0_26] : memref<3x1x32xf32, #tpu.memory_space<vmem>>, vector<1x1x32xf32>
    %28 = vector.shape_cast %27 : vector<1x1x32xf32> to vector<1x32xf32>
    %29 = vector.broadcast %28 : vector<1x32xf32> to vector<256x32xf32>
    %30 = arith.addf %26, %29 : vector<256x32xf32>
    %cst_27 = arith.constant 0.000000e+00 : f32
    %31 = vector.broadcast %cst_27 : f32 to vector<256x32xf32>
    %32 = arith.maximumf %30, %31 : vector<256x32xf32>
    %cst_28 = arith.constant dense<0.000000e+00> : vector<256x32xf32>
    %33 = tpu.matmul %0, %32, %cst_28 {dimension_numbers = #tpu.dot_dimension_numbers<[1], [0], [0], [1], [0, 0, 1, 1], [], []>} : vector<256x256xf32>, vector<256x32xf32>, vector<256x32xf32> -> vector<256x32xf32>
    %c1_29 = arith.constant 1 : index
    %c0_30 = arith.constant 0 : index
    %c0_31 = arith.constant 0 : index
    %34 = vector.load %arg4[%c1_29, %c0_30, %c0_31] : memref<3x1x32xf32, #tpu.memory_space<vmem>>, vector<1x1x32xf32>
    %35 = vector.shape_cast %34 : vector<1x1x32xf32> to vector<1x32xf32>
    %36 = vector.broadcast %35 : vector<1x32xf32> to vector<256x32xf32>
    %37 = arith.mulf %33, %36 : vector<256x32xf32>
    %38 = arith.addf %19, %37 : vector<256x32xf32>
    %c1_32 = arith.constant 1 : index
    %c0_33 = arith.constant 0 : index
    %c0_34 = arith.constant 0 : index
    %39 = vector.load %arg5[%c1_32, %c0_33, %c0_34] : memref<3x1x1xf32, #tpu.memory_space<vmem>>, vector<1x1x1xf32>
    %40 = vector.shape_cast %39 : vector<1x1x1xf32> to vector<1x1xf32>
    %41 = arith.addf %22, %40 : vector<1x1xf32>
    %c2 = arith.constant 2 : index
    %c0_35 = arith.constant 0 : index
    %c0_36 = arith.constant 0 : index
    %42 = vector.load %arg2[%c2, %c0_35, %c0_36] : memref<3x4x32xf32, #tpu.memory_space<vmem>>, vector<1x4x32xf32>
    %43 = vector.shape_cast %42 : vector<1x4x32xf32> to vector<4x32xf32>
    %cst_37 = arith.constant dense<0.000000e+00> : vector<256x32xf32>
    %44 = tpu.matmul %1, %43, %cst_37 {dimension_numbers = #tpu.dot_dimension_numbers<[1], [0], [0], [1], [0, 0, 1, 1], [], []>} : vector<256x4xf32>, vector<4x32xf32>, vector<256x32xf32> -> vector<256x32xf32>
    %cst_38 = arith.constant dense<0.000000e+00> : vector<256x32xf32>
    %45 = tpu.matmul %0, %44, %cst_38 {dimension_numbers = #tpu.dot_dimension_numbers<[1], [0], [0], [1], [0, 0, 1, 1], [], []>} : vector<256x256xf32>, vector<256x32xf32>, vector<256x32xf32> -> vector<256x32xf32>
    %c2_39 = arith.constant 2 : index
    %c0_40 = arith.constant 0 : index
    %c0_41 = arith.constant 0 : index
    %46 = vector.load %arg3[%c2_39, %c0_40, %c0_41] : memref<3x1x32xf32, #tpu.memory_space<vmem>>, vector<1x1x32xf32>
    %47 = vector.shape_cast %46 : vector<1x1x32xf32> to vector<1x32xf32>
    %48 = vector.broadcast %47 : vector<1x32xf32> to vector<256x32xf32>
    %49 = arith.addf %45, %48 : vector<256x32xf32>
    %cst_42 = arith.constant 0.000000e+00 : f32
    %50 = vector.broadcast %cst_42 : f32 to vector<256x32xf32>
    %51 = arith.maximumf %49, %50 : vector<256x32xf32>
    %cst_43 = arith.constant dense<0.000000e+00> : vector<256x32xf32>
    %52 = tpu.matmul %0, %51, %cst_43 {dimension_numbers = #tpu.dot_dimension_numbers<[1], [0], [0], [1], [0, 0, 1, 1], [], []>} : vector<256x256xf32>, vector<256x32xf32>, vector<256x32xf32> -> vector<256x32xf32>
    %c2_44 = arith.constant 2 : index
    %c0_45 = arith.constant 0 : index
    %c0_46 = arith.constant 0 : index
    %53 = vector.load %arg4[%c2_44, %c0_45, %c0_46] : memref<3x1x32xf32, #tpu.memory_space<vmem>>, vector<1x1x32xf32>
    %54 = vector.shape_cast %53 : vector<1x1x32xf32> to vector<1x32xf32>
    %55 = vector.broadcast %54 : vector<1x32xf32> to vector<256x32xf32>
    %56 = arith.mulf %52, %55 : vector<256x32xf32>
    %57 = arith.addf %38, %56 : vector<256x32xf32>
    %c2_47 = arith.constant 2 : index
    %c0_48 = arith.constant 0 : index
    %c0_49 = arith.constant 0 : index
    %58 = vector.load %arg5[%c2_47, %c0_48, %c0_49] : memref<3x1x1xf32, #tpu.memory_space<vmem>>, vector<1x1x1xf32>
    %59 = vector.shape_cast %58 : vector<1x1x1xf32> to vector<1x1xf32>
    %60 = arith.addf %41, %59 : vector<1x1xf32>
    %cst_50 = arith.constant dense<0.000000e+00> : vector<256xf32>
    %61 = vector.multi_reduction <add>, %57, %cst_50 [1] : vector<256x32xf32> to vector<256xf32>
    %62 = vector.shape_cast %61 : vector<256xf32> to vector<256x1xf32>
    %63 = vector.broadcast %60 : vector<1x1xf32> to vector<256x1xf32>
    %64 = arith.addf %62, %63 : vector<256x1xf32>
    %cst_51 = arith.constant 0.333333343 : f32
    %65 = vector.broadcast %cst_51 : f32 to vector<256x1xf32>
    %66 = arith.mulf %64, %65 : vector<256x1xf32>
    %c0_52 = arith.constant 0 : index
    %c0_53 = arith.constant 0 : index
    %67 = vector.load %arg6[%c0_52, %c0_53] : memref<128x32xf32, #tpu.memory_space<vmem>>, vector<128x32xf32>
    %68 = vector.extract_strided_slice %66 {offsets = [0, 0], sizes = [128, 1], strides = [1, 1]} : vector<256x1xf32> to vector<128x1xf32>
    %69 = vector.broadcast %68 : vector<128x1xf32> to vector<128x32xf32>
    %70 = arith.mulf %69, %67 : vector<128x32xf32>
    %cst_54 = arith.constant dense<0.000000e+00> : vector<32xf32>
    %71 = vector.multi_reduction <add>, %70, %cst_54 [0] : vector<128x32xf32> to vector<32xf32>
    %72 = vector.shape_cast %71 : vector<32xf32> to vector<1x32xf32>
    %73 = vector.extract_strided_slice %66 {offsets = [128, 0], sizes = [128, 1], strides = [1, 1]} : vector<256x1xf32> to vector<128x1xf32>
    %74 = vector.broadcast %73 : vector<128x1xf32> to vector<128x32xf32>
    %75 = arith.mulf %74, %67 : vector<128x32xf32>
    %cst_55 = arith.constant dense<0.000000e+00> : vector<32xf32>
    %76 = vector.multi_reduction <add>, %75, %cst_55 [0] : vector<128x32xf32> to vector<32xf32>
    %77 = vector.shape_cast %76 : vector<32xf32> to vector<1x32xf32>
    %78 = tpu.concatenate %72, %77 in 0 : vector<1x32xf32>, vector<1x32xf32> -> vector<2x32xf32>
    %c0_56 = arith.constant 0 : index
    %c0_57 = arith.constant 0 : index
    %79 = vector.load %arg7[%c0_56, %c0_57] : memref<1x32xf32, #tpu.memory_space<vmem>>, vector<1x32xf32>
    %80 = vector.broadcast %79 : vector<1x32xf32> to vector<2x32xf32>
    %81 = arith.addf %78, %80 : vector<2x32xf32>
    %cst_58 = arith.constant 0.000000e+00 : f32
    %82 = vector.broadcast %cst_58 : f32 to vector<2x32xf32>
    %83 = arith.maximumf %81, %82 : vector<2x32xf32>
    %c0_59 = arith.constant 0 : index
    %c0_60 = arith.constant 0 : index
    %84 = vector.load %arg8[%c0_59, %c0_60] : memref<32x10xf32, #tpu.memory_space<vmem>>, vector<32x10xf32>
    %cst_61 = arith.constant dense<0.000000e+00> : vector<2x10xf32>
    %85 = tpu.matmul %83, %84, %cst_61 {dimension_numbers = #tpu.dot_dimension_numbers<[1], [0], [0], [1], [0, 0, 1, 1], [], []>} : vector<2x32xf32>, vector<32x10xf32>, vector<2x10xf32> -> vector<2x10xf32>
    %c0_62 = arith.constant 0 : index
    %c0_63 = arith.constant 0 : index
    %86 = vector.load %arg9[%c0_62, %c0_63] : memref<1x10xf32, #tpu.memory_space<vmem>>, vector<1x10xf32>
    %87 = vector.broadcast %86 : vector<1x10xf32> to vector<2x10xf32>
    %88 = arith.addf %85, %87 : vector<2x10xf32>
    %c0_64 = arith.constant 0 : index
    %c0_65 = arith.constant 0 : index
    %89 = vector.load %arg10[%c0_64, %c0_65] : memref<2x10xf32, #tpu.memory_space<vmem>>, vector<2x10xf32>
    tpu.vector_store %arg10[%c0_64, %c0_65], %88 {strides = array<i32>} : memref<2x10xf32, #tpu.memory_space<vmem>>, vector<2x10xf32>,
    return
  }
}

</mosaic_0001>

<bundles_post_ra>
// kernel: gin_action_recog_forward.1
= control target key start
LH: loop header
LB: loop body
LE: loop exit
PB: predicated region body
PF: predicated region fallthrough
CT: control target
= control target key end

     0   :  { %vm230_vm0 = vcmask 1043456   ;;  %vm133_vm1 = vcmask 31744   ;;  %s6222_s0 = inlined_call_operand.vmem [shape: f32[256,256], index: 0, kind: input, shape index: {}]   ;;  %s6223_s1 = inlined_call_operand.vmem [shape: f32[256,4], index: 1, kind: input, shape index: {}]   ;;  %s6224_s2 = inlined_call_operand.vmem [shape: f32[3,4,32], index: 2, kind: input, shape index: {}]   ;;  %s6225_s3 = inlined_call_operand.vmem [shape: f32[3,1,32], index: 3, kind: input, shape index: {}]   ;;  %s6226_s4 = inlined_call_operand.vmem [shape: f32[3,1,32], index: 4, kind: input, shape index: {}]   ;;  %s6227_s5 = inlined_call_operand.vmem [shape: f32[3,1,1], index: 5, kind: input, shape index: {}]   ;;  %s6228_s6 = inlined_call_operand.vmem [shape: f32[128,32], index: 6, kind: input, shape index: {}]   ;;  %s6229_s7 = inlined_call_operand.vmem [shape: f32[1,32], index: 7, kind: input, shape index: {}]   ;;  %s6230_s8 = inlined_call_operand.vmem [shape: f32[32,10], index: 8, kind: input, shape index: {}]   ;;  %s6231_s9 = inlined_call_operand.vmem [shape: f32[1,10], index: 9, kind: input, shape index: {}]   ;;  %s6232_s10 = inlined_call_operand.hbm [shape: f32[2,10], index: 10, kind: output, shape index: {}]  }
   0x1   :  { %v132_v0 = vld [vmem:[%s6224_s2] sm:$0xf]  ;;  %v4056_v2 = vld [vmem:[%s6223_s1 + $0x8] sm:$0xff]  ;;  %v4064_v3 = vld [vmem:[%s6223_s1 + $0x10] sm:$0xff] }
   0x2   :  { %v4051_v1 = vld [vmem:[%s6223_s1] sm:$0xff]  ;;  %3391 = vmatprep.subr.msk.mxu0 %vm230_vm0, %v132_v0  ;;  %v4074_v4 = vld [vmem:[%s6223_s1 + $0x18] sm:$0xff]  ;;  %v4088_v6 = vld [vmem:[%s6223_s1 + $0x28] sm:$0xff] }
   0x3   :  { %3393 = vmatprep.mubr.msk.f32.mxu0 %vm133_vm1, %v4051_v1  ;;  %3392 = vmatpush3.msk.msra.mxu0 %vm230_vm0, %v132_v0  ;;  %v4079_v5 = vld [vmem:[%s6223_s1 + $0x20] sm:$0xff]  ;;  %v4093_v7 = vld [vmem:[%s6223_s1 + $0x30] sm:$0xff] }
   0x4   :  { %3394 = vmatmul.mubr.msk.f32.vlgmr.msra.gmra.mrb[0].mxu0 %vm133_vm1, %v4056_v2 }
   0x5   :  { %3396 = vmatprep.mubr.msk.f32.mxu0 %vm133_vm1, %v4064_v3 }
   0x8   :  { %3397 = vmatmul.mubr.msk.f32.gmra.mrb[2].mxu0 %vm133_vm1, %v4074_v4 }
   0x9   :  { %3399 = vmatprep.mubr.msk.f32.mxu0 %vm133_vm1, %v4079_v5 }
   0xc   :  { %3400 = vmatmul.mubr.msk.f32.gmra.mrb[4].mxu0 %vm133_vm1, %v4088_v6 }
   0xd   :  { %15 = vsyncpa [#allocation3], 0  ;;  %3402 = vmatprep.mubr.msk.f32.mxu0 %vm133_vm1, %v4093_v7  ;;  %v4102_v8 = vld [vmem:[%s6223_s1 + $0x38] sm:$0xff]  ;;  %v4107_v9 = vld [vmem:[%s6223_s1 + $0x40] sm:$0xff]  ;;  %v6233_v33 = vmov 0.0|0.0   ;;  %vm2611_vm2 = vcmask 261120  }
   0xe   :  { %v4116_v10 = vld [vmem:[%s6223_s1 + $0x48] sm:$0xff]  ;;  %v4121_v11 = vld [vmem:[%s6223_s1 + $0x50] sm:$0xff]  ;;  %v4130_v12 = vld [vmem:[%s6223_s1 + $0x58] sm:$0xff]  ;;  %3552 = vmatprep.subr.bf16.mxu1 %v6233_v33  ;;  %3600 = vmatprep.subr.bf16.mxu0 %v6233_v33  ;;  %vm3987_vm3 = vmmov 0   ;;  %vm3060_vm4 = vcmask 1040384   ;;  %vm3155_vm5 = vcmask 74752  }
   0xf   :  { %v4135_v13 = vld [vmem:[%s6223_s1 + $0x60] sm:$0xff]  ;;  %v4144_v14 = vld [vmem:[%s6223_s1 + $0x68] sm:$0xff]  ;;  %v4149_v15 = vld [vmem:[%s6223_s1 + $0x70] sm:$0xff] }
  0x10   :  { %3403 = vmatmul.mubr.msk.f32.gmra.mrb[6].mxu0 %vm133_vm1, %v4102_v8  ;;  %v4158_v16 = vld [vmem:[%s6223_s1 + $0x78] sm:$0xff]  ;;  %v4163_v17 = vld [vmem:[%s6223_s1 + $0x80] sm:$0xff]  ;;  %v4172_v18 = vld [vmem:[%s6223_s1 + $0x88] sm:$0xff] }
  0x11   :  { %3405 = vmatprep.mubr.msk.f32.mxu0 %vm133_vm1, %v4107_v9  ;;  %v4177_v19 = vld [vmem:[%s6223_s1 + $0x90] sm:$0xff]  ;;  %v4186_v20 = vld [vmem:[%s6223_s1 + $0x98] sm:$0xff]  ;;  %v4191_v21 = vld [vmem:[%s6223_s1 + $0xa0] sm:$0xff] }
  0x12   :  { %v4200_v22 = vld [vmem:[%s6223_s1 + $0xa8] sm:$0xff]  ;;  %v4205_v23 = vld [vmem:[%s6223_s1 + $0xb0] sm:$0xff]  ;;  %v4214_v24 = vld [vmem:[%s6223_s1 + $0xb8] sm:$0xff] }
  0x13   :  { %v4219_v25 = vld [vmem:[%s6223_s1 + $0xc0] sm:$0xff]  ;;  %v4228_v26 = vld [vmem:[%s6223_s1 + $0xc8] sm:$0xff]  ;;  %v4233_v27 = vld [vmem:[%s6223_s1 + $0xd0] sm:$0xff] }
  0x14   :  { %3406 = vmatmul.mubr.msk.f32.gmra.mrb[8].mxu0 %vm133_vm1, %v4116_v10  ;;  %v4242_v28 = vld [vmem:[%s6223_s1 + $0xd8] sm:$0xff]  ;;  %v4247_v29 = vld [vmem:[%s6223_s1 + $0xe0] sm:$0xff]  ;;  %v4256_v30 = vld [vmem:[%s6223_s1 + $0xe8] sm:$0xff] }
  0x15   :  { %3408 = vmatprep.mubr.msk.f32.mxu0 %vm133_vm1, %v4121_v11  ;;  %v4261_v31 = vld [vmem:[%s6223_s1 + $0xf0] sm:$0xff]  ;;  %v4270_v32 = vld [vmem:[%s6223_s1 + $0xf8] sm:$0xff]  ;;  %v4279_v34 = vld [vmem:[%s6222_s0 + $0x8] sm:$0xff] }
  0x16   :  { %530 = vmatprep.mubr.f32.mxu1 %v4279_v34 }
  0x18   :  { %3409 = vmatmul.mubr.msk.f32.gmra.mrb[10].mxu0 %vm133_vm1, %v4130_v12 }
  0x19   :  { %3411 = vmatprep.mubr.msk.f32.mxu0 %vm133_vm1, %v4135_v13 }
  0x1c   :  { %3412 = vmatmul.mubr.msk.f32.gmra.mrb[12].mxu0 %vm133_vm1, %v4144_v14 }
  0x1d   :  { %3414 = vmatprep.mubr.msk.f32.mxu0 %vm133_vm1, %v4149_v15 }
  0x20   :  { %3415 = vmatmul.mubr.msk.f32.gmra.mrb[14].mxu0 %vm133_vm1, %v4158_v16 }
  0x21   :  { %3417 = vmatprep.mubr.msk.f32.mxu0 %vm133_vm1, %v4163_v17 }
  0x24   :  { %3418 = vmatmul.mubr.msk.f32.gmra.mrb[16].mxu0 %vm133_vm1, %v4172_v18 }
  0x25   :  { %3420 = vmatprep.mubr.msk.f32.mxu0 %vm133_vm1, %v4177_v19 }
  0x28   :  { %3421 = vmatmul.mubr.msk.f32.gmra.mrb[18].mxu0 %vm133_vm1, %v4186_v20 }
  0x29   :  { %3423 = vmatprep.mubr.msk.f32.mxu0 %vm133_vm1, %v4191_v21 }
  0x2c   :  { %3424 = vmatmul.mubr.msk.f32.gmra.mrb[20].mxu0 %vm133_vm1, %v4200_v22 }
  0x2d   :  { %3426 = vmatprep.mubr.msk.f32.mxu0 %vm133_vm1, %v4205_v23 }
  0x30   :  { %3427 = vmatmul.mubr.msk.f32.gmra.mrb[22].mxu0 %vm133_vm1, %v4214_v24 }
  0x31   :  { %3429 = vmatprep.mubr.msk.f32.mxu0 %vm133_vm1, %v4219_v25 }
  0x34   :  { %3430 = vmatmul.mubr.msk.f32.gmra.mrb[24].mxu0 %vm133_vm1, %v4228_v26 }
  0x35   :  { %3432 = vmatprep.mubr.msk.f32.mxu0 %vm133_vm1, %v4233_v27 }
  0x38   :  { %3433 = vmatmul.mubr.msk.f32.gmra.mrb[26].mxu0 %vm133_vm1, %v4242_v28 }
  0x39   :  { %3435 = vmatprep.mubr.msk.f32.mxu0 %vm133_vm1, %v4247_v29 }
  0x3c   :  { %3436 = vmatmul.mubr.msk.f32.gmra.mrb[28].mxu0 %vm133_vm1, %v4256_v30 }
  0x3d   :  { %3438 = vmatprep.mubr.msk.f32.mxu0 %vm133_vm1, %v4261_v31 }
  0x40   :  { %3439 = vmatmul.mubr.msk.f32.gmra.mrb[30].mxu0 %vm133_vm1, %v4270_v32 }
  0x41   :  { %787 = vmatprep.mubr.f32.mxu0 %v4279_v34 }
  0xd7   :  { %v3395_v35 = vpop.f32.mrb[0].mxu0 }
  0xd8   :  { %v300_v36 = vpop.f32.mrb[1].mxu0 }
  0xd9   :  { %v3553_v37 = vpack.c.bf16 %v3395_v35, %v300_v36 }
  0xdb   :  { %v3398_v38 = vpop.f32.mrb[2].mxu0  ;;  %3554 = vmatpush1.bf16.msra.mxu1 %v3553_v37 }
  0xdc   :  { %v310_v39 = vpop.f32.mrb[3].mxu0  ;;  %3555 = vmatprep.subr.bf16.mxu1 %v6233_v33 }
  0xdd   :  { %v3556_v40 = vpack.c.bf16 %v3398_v38, %v310_v39 }
  0xdf   :  { %v3401_v41 = vpop.f32.mrb[4].mxu0  ;;  %3557 = vmatpush1.bf16.msra.mxu1 %v3556_v40 }
  0xe0   :  { %v320_v42 = vpop.f32.mrb[5].mxu0  ;;  %3558 = vmatprep.subr.bf16.mxu1 %v6233_v33 }
  0xe1   :  { %v3559_v43 = vpack.c.bf16 %v3401_v41, %v320_v42 }
  0xe3   :  { %v3404_v44 = vpop.f32.mrb[6].mxu0  ;;  %3560 = vmatpush1.bf16.msra.mxu1 %v3559_v43 }
  0xe4   :  { %v330_v45 = vpop.f32.mrb[7].mxu0  ;;  %3561 = vmatprep.subr.bf16.mxu1 %v6233_v33 }
  0xe5   :  { %v3562_v46 = vpack.c.bf16 %v3404_v44, %v330_v45 }
  0xe7   :  { %v3407_v47 = vpop.f32.mrb[8].mxu0  ;;  %3563 = vmatpush1.bf16.msra.mxu1 %v3562_v46 }
  0xe8   :  { %v340_v48 = vpop.f32.mrb[9].mxu0  ;;  %3564 = vmatprep.subr.bf16.mxu1 %v6233_v33 }
  0xe9   :  { %v3565_v49 = vpack.c.bf16 %v3407_v47, %v340_v48 }
  0xeb   :  { %v3410_v50 = vpop.f32.mrb[10].mxu0  ;;  %3566 = vmatpush1.bf16.msra.mxu1 %v3565_v49 }
  0xec   :  { %v350_v51 = vpop.f32.mrb[11].mxu0  ;;  %3567 = vmatprep.subr.bf16.mxu1 %v6233_v33 }
  0xed   :  { %v3568_v52 = vpack.c.bf16 %v3410_v50, %v350_v51 }
  0xef   :  { %v3413_v53 = vpop.f32.mrb[12].mxu0  ;;  %3569 = vmatpush1.bf16.msra.mxu1 %v3568_v52 }
  0xf0   :  { %v360_v54 = vpop.f32.mrb[13].mxu0  ;;  %3570 = vmatprep.subr.bf16.mxu1 %v6233_v33 }
  0xf1   :  { %v3571_v55 = vpack.c.bf16 %v3413_v53, %v360_v54  ;;  %v3206_v53 = vld [vmem:[%s6224_s2 + $0x4] sm:$0xf] }
  0xf2   :  { %v4304_v54 = vld [vmem:[%s6222_s0] sm:$0xff] }
  0xf3   :  { %v3416_v56 = vpop.f32.mrb[14].mxu0  ;;  %3572 = vmatpush1.bf16.msra.mxu1 %v3571_v55  ;;  %v4309_v55 = vld [vmem:[%s6222_s0 + $0x18] sm:$0xff] }
  0xf4   :  { %v370_v57 = vpop.f32.mrb[15].mxu0  ;;  %3573 = vmatprep.subr.bf16.mxu1 %v6233_v33 }
  0xf5   :  { %v3574_v58 = vpack.c.bf16 %v3416_v56, %v370_v57  ;;  %v4317_v56 = vld [vmem:[%s6222_s0 + $0x10] sm:$0xff]  ;;  %v4323_v57 = vld [vmem:[%s6222_s0 + $0x28] sm:$0xff] }
  0xf7   :  { %v3419_v59 = vpop.f32.mrb[16].mxu0  ;;  %3575 = vmatpush1.bf16.msra.mxu1 %v3574_v58  ;;  %v4331_v58 = vld [vmem:[%s6222_s0 + $0x20] sm:$0xff] }
  0xf8   :  { %v380_v60 = vpop.f32.mrb[17].mxu0  ;;  %3576 = vmatprep.subr.bf16.mxu1 %v6233_v33 }
  0xf9   :  { %v3577_v61 = vpack.c.bf16 %v3419_v59, %v380_v60  ;;  %v4336_v59 = vld [vmem:[%s6222_s0 + $0x38] sm:$0xff]  ;;  %v4343_v60 = vld [vmem:[%s6222_s0 + $0x30] sm:$0xff] }
  0xfb   :  { %v3422_v62 = vpop.f32.mrb[18].mxu0  ;;  %3578 = vmatpush1.bf16.msra.mxu1 %v3577_v61  ;;  %v4348_v61 = vld [vmem:[%s6222_s0 + $0x48] sm:$0xff] }
  0xfc   :  { %v390_v63 = vpop.f32.mrb[19].mxu0  ;;  %3579 = vmatprep.subr.bf16.mxu1 %v6233_v33 }
  0xfd   :  { %v3580_v0 = vpack.c.bf16 %v3422_v62, %v390_v63  ;;  %v4355_v62 = vld [vmem:[%s6222_s0 + $0x40] sm:$0xff]  ;;  %v4360_v63 = vld [vmem:[%s6222_s0 + $0x58] sm:$0xff] }
  0xff   :  { %v3425_v35 = vpop.f32.mrb[20].mxu0  ;;  %3581 = vmatpush1.bf16.msra.mxu1 %v3580_v0  ;;  %v4367_v0 = vld [vmem:[%s6222_s0 + $0x50] sm:$0xff] }
 0x100   :  { %v400_v36 = vpop.f32.mrb[21].mxu0  ;;  %3582 = vmatprep.subr.bf16.mxu1 %v6233_v33 }
 0x101   :  { %v3583_v37 = vpack.c.bf16 %v3425_v35, %v400_v36  ;;  %v4372_v35 = vld [vmem:[%s6222_s0 + $0x68] sm:$0xff]  ;;  %v4379_v36 = vld [vmem:[%s6222_s0 + $0x60] sm:$0xff] }
 0x103   :  { %v3428_v38 = vpop.f32.mrb[22].mxu0  ;;  %3584 = vmatpush1.bf16.msra.mxu1 %v3583_v37  ;;  %v4384_v37 = vld [vmem:[%s6222_s0 + $0x78] sm:$0xff] }
 0x104   :  { %v410_v39 = vpop.f32.mrb[23].mxu0  ;;  %3585 = vmatprep.subr.bf16.mxu1 %v6233_v33 }
 0x105   :  { %v3586_v40 = vpack.c.bf16 %v3428_v38, %v410_v39  ;;  %v4391_v38 = vld [vmem:[%s6222_s0 + $0x70] sm:$0xff]  ;;  %v4396_v39 = vld [vmem:[%s6222_s0 + $0x88] sm:$0xff] }
 0x107   :  { %v3431_v41 = vpop.f32.mrb[24].mxu0  ;;  %3587 = vmatpush1.bf16.msra.mxu1 %v3586_v40  ;;  %v4403_v40 = vld [vmem:[%s6222_s0 + $0x80] sm:$0xff] }
 0x108   :  { %v420_v42 = vpop.f32.mrb[25].mxu0  ;;  %3588 = vmatprep.subr.bf16.mxu1 %v6233_v33 }
 0x109   :  { %v3589_v43 = vpack.c.bf16 %v3431_v41, %v420_v42  ;;  %v4408_v41 = vld [vmem:[%s6222_s0 + $0x98] sm:$0xff]  ;;  %v4415_v42 = vld [vmem:[%s6222_s0 + $0x90] sm:$0xff] }
 0x10b   :  { %v3434_v44 = vpop.f32.mrb[26].mxu0  ;;  %3590 = vmatpush1.bf16.msra.mxu1 %v3589_v43  ;;  %v4420_v43 = vld [vmem:[%s6222_s0 + $0xa8] sm:$0xff] }
 0x10c   :  { %v430_v45 = vpop.f32.mrb[27].mxu0  ;;  %3591 = vmatprep.subr.bf16.mxu1 %v6233_v33 }
 0x10d   :  { %v3592_v46 = vpack.c.bf16 %v3434_v44, %v430_v45  ;;  %v4427_v44 = vld [vmem:[%s6222_s0 + $0xa0] sm:$0xff]  ;;  %v4432_v45 = vld [vmem:[%s6222_s0 + $0xb8] sm:$0xff] }
 0x10f   :  { %v3437_v47 = vpop.f32.mrb[28].mxu0  ;;  %3593 = vmatpush1.bf16.msra.mxu1 %v3592_v46  ;;  %v4439_v46 = vld [vmem:[%s6222_s0 + $0xb0] sm:$0xff] }
 0x110   :  { %v440_v48 = vpop.f32.mrb[29].mxu0  ;;  %3594 = vmatprep.subr.bf16.mxu1 %v6233_v33 }
 0x111   :  { %v3595_v49 = vpack.c.bf16 %v3437_v47, %v440_v48  ;;  %v4444_v47 = vld [vmem:[%s6222_s0 + $0xc8] sm:$0xff]  ;;  %v4451_v48 = vld [vmem:[%s6222_s0 + $0xc0] sm:$0xff] }
 0x113   :  { %v3440_v50 = vpop.f32.mrb[30].mxu0  ;;  %3596 = vmatpush1.bf16.msra.mxu1 %v3595_v49  ;;  %v4456_v49 = vld [vmem:[%s6222_s0 + $0xd8] sm:$0xff] }
 0x114   :  { %v450_v51 = vpop.f32.mrb[31].mxu0  ;;  %3597 = vmatprep.subr.bf16.mxu1 %v6233_v33 }
 0x115   :  { %v3598_v52 = vpack.c.bf16 %v3440_v50, %v450_v51  ;;  %v4463_v50 = vld [vmem:[%s6222_s0 + $0xd0] sm:$0xff]  ;;  %v4468_v51 = vld [vmem:[%s6222_s0 + $0xe8] sm:$0xff] }
 0x116   :  { %6316 = vst [vmem:[#allocation5_spill] sm:$0xff] %v4468_v51 }
 0x117   :  { %3599 = vmatpush1.bf16.msra.mxu1 %v3598_v52  ;;  %v4475_v52 = vld [vmem:[%s6222_s0 + $0xe0] sm:$0xff] }
 0x118   :  { %3441 = vmatprep.subr.msk.mxu1 %vm230_vm0, %v3206_v53  ;;  %6317 = vst [vmem:[#allocation6_spill] sm:$0xff] %v4475_v52 }
 0x11a   :  { %531 = vmatmul.mubr.f32.vlgmr.msra.gmra.mrb[0].mxu1 %v4304_v54 }
 0x11b   :  { %535 = vmatprep.mubr.f32.mxu1 %v4309_v55  ;;  %3442 = vmatpush3.msk.msra.mxu1 %vm230_vm0, %v3206_v53  ;;  %v4480_v53 = vld [vmem:[%s6222_s0 + $0xf8] sm:$0xff] }
 0x11c   :  { %3696 = vmatprep.subr.bf16.mxu1 %v6233_v33  ;;  %6318 = vst [vmem:[#allocation7_spill] sm:$0xff] %v4480_v53  ;;  %v4487_v33 = vld [vmem:[%s6222_s0 + $0xf0] sm:$0xff] }
 0x11d   :  { %6319 = vst [vmem:[#allocation8_spill] sm:$0xff] %v4487_v33 }
 0x11e   :  { %536 = vmatmul.mubr.f32.gmra.mrb[2].mxu1 %v4317_v56 }
 0x11f   :  { %540 = vmatprep.mubr.f32.mxu1 %v4323_v57 }
 0x122   :  { %541 = vmatmul.mubr.f32.gmra.mrb[4].mxu1 %v4331_v58 }
 0x123   :  { %545 = vmatprep.mubr.f32.mxu1 %v4336_v59 }
 0x126   :  { %546 = vmatmul.mubr.f32.gmra.mrb[6].mxu1 %v4343_v60 }
 0x127   :  { %550 = vmatprep.mubr.f32.mxu1 %v4348_v61 }
 0x12a   :  { %551 = vmatmul.mubr.f32.gmra.mrb[8].mxu1 %v4355_v62 }
 0x12b   :  { %555 = vmatprep.mubr.f32.mxu1 %v4360_v63 }
 0x12e   :  { %556 = vmatmul.mubr.f32.gmra.mrb[10].mxu1 %v4367_v0 }
 0x12f   :  { %560 = vmatprep.mubr.f32.mxu1 %v4372_v35 }
 0x132   :  { %561 = vmatmul.mubr.f32.gmra.mrb[12].mxu1 %v4379_v36 }
 0x133   :  { %565 = vmatprep.mubr.f32.mxu1 %v4384_v37 }
 0x136   :  { %566 = vmatmul.mubr.f32.gmra.mrb[14].mxu1 %v4391_v38 }
 0x137   :  { %570 = vmatprep.mubr.f32.mxu1 %v4396_v39 }
 0x13a   :  { %571 = vmatmul.mubr.f32.gmra.mrb[16].mxu1 %v4403_v40 }
 0x13b   :  { %575 = vmatprep.mubr.f32.mxu1 %v4408_v41 }
 0x13e   :  { %576 = vmatmul.mubr.f32.gmra.mrb[18].mxu1 %v4415_v42 }
 0x13f   :  { %580 = vmatprep.mubr.f32.mxu1 %v4420_v43 }
 0x142   :  { %581 = vmatmul.mubr.f32.gmra.mrb[20].mxu1 %v4427_v44 }
 0x143   :  { %585 = vmatprep.mubr.f32.mxu1 %v4432_v45 }
 0x146   :  { %586 = vmatmul.mubr.f32.gmra.mrb[22].mxu1 %v4439_v46 }
 0x147   :  { %590 = vmatprep.mubr.f32.mxu1 %v4444_v47 }
 0x14a   :  { %591 = vmatmul.mubr.f32.gmra.mrb[24].mxu1 %v4451_v48 }
 0x14b   :  { %595 = vmatprep.mubr.f32.mxu1 %v4456_v49 }
 0x14e   :  { %596 = vmatmul.mubr.f32.gmra.mrb[26].mxu1 %v4463_v50 }
 0x14f   :  { %600 = vmatprep.mubr.f32.mxu1 %v4468_v51  ;;  %v4492_v51 = vld [vmem:[%s6222_s0 + $0x108] sm:$0xff] }
 0x150   :  { %6320 = vst [vmem:[#allocation9_spill] sm:$0xff] %v4492_v51 }
 0x152   :  { %601 = vmatmul.mubr.f32.gmra.mrb[28].mxu1 %v4475_v52  ;;  %v4499_v52 = vld [vmem:[%s6222_s0 + $0x100] sm:$0xff] }
 0x153   :  { %605 = vmatprep.mubr.f32.mxu1 %v4480_v53  ;;  %6321 = vst [vmem:[#allocation10_spill] sm:$0xff] %v4499_v52  ;;  %v4504_v53 = vld [vmem:[%s6222_s0 + $0x118] sm:$0xff] }
 0x154   :  { %6322 = vst [vmem:[#allocation11_spill] sm:$0xff] %v4504_v53 }
 0x156   :  { %606 = vmatmul.mubr.f32.gmra.mrb[30].mxu1 %v4487_v33  ;;  %v4511_v33 = vld [vmem:[%s6222_s0 + $0x110] sm:$0xff] }
 0x157   :  { %610 = vmatprep.mubr.f32.mxu1 %v4492_v51  ;;  %6323 = vst [vmem:[#allocation12_spill] sm:$0xff] %v4511_v33  ;;  %v4516_v51 = vld [vmem:[%s6222_s0 + $0x128] sm:$0xff] }
 0x158   :  { %6324 = vst [vmem:[#allocation13_spill] sm:$0xff] %v4516_v51 }
 0x15a   :  { %611 = vmatmul.mubr.f32.gmra.mrb[32].mxu1 %v4499_v52  ;;  %v4523_v52 = vld [vmem:[%s6222_s0 + $0x120] sm:$0xff] }
 0x15b   :  { %615 = vmatprep.mubr.f32.mxu1 %v4504_v53  ;;  %6325 = vst [vmem:[#allocation14_spill] sm:$0xff] %v4523_v52  ;;  %v4528_v53 = vld [vmem:[%s6222_s0 + $0x138] sm:$0xff] }
 0x15c   :  { %6326 = vst [vmem:[#allocation15_spill] sm:$0xff] %v4528_v53 }
 0x15e   :  { %616 = vmatmul.mubr.f32.gmra.mrb[34].mxu1 %v4511_v33  ;;  %v4535_v33 = vld [vmem:[%s6222_s0 + $0x130] sm:$0xff] }
 0x15f   :  { %620 = vmatprep.mubr.f32.mxu1 %v4516_v51  ;;  %6327 = vst [vmem:[#allocation16_spill] sm:$0xff] %v4535_v33  ;;  %v4540_v51 = vld [vmem:[%s6222_s0 + $0x148] sm:$0xff] }
 0x160   :  { %6328 = vst [vmem:[#allocation17_spill] sm:$0xff] %v4540_v51 }
 0x162   :  { %621 = vmatmul.mubr.f32.gmra.mrb[36].mxu1 %v4523_v52  ;;  %v4547_v52 = vld [vmem:[%s6222_s0 + $0x140] sm:$0xff] }
 0x163   :  { %625 = vmatprep.mubr.f32.mxu1 %v4528_v53  ;;  %6329 = vst [vmem:[#allocation18_spill] sm:$0xff] %v4547_v52  ;;  %v4552_v53 = vld [vmem:[%s6222_s0 + $0x158] sm:$0xff] }
 0x164   :  { %6330 = vst [vmem:[#allocation19_spill] sm:$0xff] %v4552_v53 }
 0x166   :  { %626 = vmatmul.mubr.f32.gmra.mrb[38].mxu1 %v4535_v33  ;;  %v4559_v33 = vld [vmem:[%s6222_s0 + $0x150] sm:$0xff] }
 0x167   :  { %630 = vmatprep.mubr.f32.mxu1 %v4540_v51  ;;  %6331 = vst [vmem:[#allocation20_spill] sm:$0xff] %v4559_v33  ;;  %v4564_v51 = vld [vmem:[%s6222_s0 + $0x168] sm:$0xff] }
 0x168   :  { %6332 = vst [vmem:[#allocation21_spill] sm:$0xff] %v4564_v51 }
 0x16a   :  { %631 = vmatmul.mubr.f32.gmra.mrb[40].mxu1 %v4547_v52  ;;  %v4571_v52 = vld [vmem:[%s6222_s0 + $0x160] sm:$0xff] }
 0x16b   :  { %635 = vmatprep.mubr.f32.mxu1 %v4552_v53  ;;  %6333 = vst [vmem:[#allocation22_spill] sm:$0xff] %v4571_v52  ;;  %v4576_v53 = vld [vmem:[%s6222_s0 + $0x178] sm:$0xff] }
 0x16c   :  { %6334 = vst [vmem:[#allocation23_spill] sm:$0xff] %v4576_v53 }
 0x16e   :  { %636 = vmatmul.mubr.f32.gmra.mrb[42].mxu1 %v4559_v33  ;;  %v4583_v33 = vld [vmem:[%s6222_s0 + $0x170] sm:$0xff] }
 0x16f   :  { %640 = vmatprep.mubr.f32.mxu1 %v4564_v51  ;;  %6335 = vst [vmem:[#allocation24_spill] sm:$0xff] %v4583_v33  ;;  %v4588_v51 = vld [vmem:[%s6222_s0 + $0x188] sm:$0xff] }
 0x170   :  { %6336 = vst [vmem:[#allocation25_spill] sm:$0xff] %v4588_v51 }
 0x172   :  { %641 = vmatmul.mubr.f32.gmra.mrb[44].mxu1 %v4571_v52  ;;  %v4595_v52 = vld [vmem:[%s6222_s0 + $0x180] sm:$0xff] }
 0x173   :  { %645 = vmatprep.mubr.f32.mxu1 %v4576_v53  ;;  %6337 = vst [vmem:[#allocation26_spill] sm:$0xff] %v4595_v52  ;;  %v4600_v53 = vld [vmem:[%s6222_s0 + $0x198] sm:$0xff] }
 0x174   :  { %6338 = vst [vmem:[#allocation27_spill] sm:$0xff] %v4600_v53 }
 0x176   :  { %646 = vmatmul.mubr.f32.gmra.mrb[46].mxu1 %v4583_v33  ;;  %v4607_v33 = vld [vmem:[%s6222_s0 + $0x190] sm:$0xff] }
 0x177   :  { %650 = vmatprep.mubr.f32.mxu1 %v4588_v51  ;;  %6339 = vst [vmem:[#allocation28_spill] sm:$0xff] %v4607_v33  ;;  %v4612_v51 = vld [vmem:[%s6222_s0 + $0x1a8] sm:$0xff] }
 0x178   :  { %6340 = vst [vmem:[#allocation29_spill] sm:$0xff] %v4612_v51 }
 0x17a   :  { %651 = vmatmul.mubr.f32.gmra.mrb[48].mxu1 %v4595_v52  ;;  %v4619_v52 = vld [vmem:[%s6222_s0 + $0x1a0] sm:$0xff] }
 0x17b   :  { %655 = vmatprep.mubr.f32.mxu1 %v4600_v53  ;;  %6341 = vst [vmem:[#allocation30_spill] sm:$0xff] %v4619_v52  ;;  %v4624_v53 = vld [vmem:[%s6222_s0 + $0x1b8] sm:$0xff] }
 0x17c   :  { %6342 = vst [vmem:[#allocation31_spill] sm:$0xff] %v4624_v53 }
 0x17e   :  { %656 = vmatmul.mubr.f32.gmra.mrb[50].mxu1 %v4607_v33  ;;  %v4631_v33 = vld [vmem:[%s6222_s0 + $0x1b0] sm:$0xff] }
 0x17f   :  { %660 = vmatprep.mubr.f32.mxu1 %v4612_v51  ;;  %6343 = vst [vmem:[#allocation32_spill] sm:$0xff] %v4631_v33  ;;  %v4636_v51 = vld [vmem:[%s6222_s0 + $0x1c8] sm:$0xff] }
 0x180   :  { %6344 = vst [vmem:[#allocation33_spill] sm:$0xff] %v4636_v51 }
 0x182   :  { %661 = vmatmul.mubr.f32.gmra.mrb[52].mxu1 %v4619_v52  ;;  %v4643_v52 = vld [vmem:[%s6222_s0 + $0x1c0] sm:$0xff] }
 0x183   :  { %665 = vmatprep.mubr.f32.mxu1 %v4624_v53  ;;  %6345 = vst [vmem:[#allocation34_spill] sm:$0xff] %v4643_v52  ;;  %v4648_v53 = vld [vmem:[%s6222_s0 + $0x1d8] sm:$0xff] }
 0x184   :  { %6346 = vst [vmem:[#allocation35_spill] sm:$0xff] %v4648_v53 }
 0x186   :  { %666 = vmatmul.mubr.f32.gmra.mrb[54].mxu1 %v4631_v33  ;;  %v4655_v33 = vld [vmem:[%s6222_s0 + $0x1d0] sm:$0xff] }
 0x187   :  { %670 = vmatprep.mubr.f32.mxu1 %v4636_v51  ;;  %6347 = vst [vmem:[#allocation36_spill] sm:$0xff] %v4655_v33  ;;  %v4660_v51 = vld [vmem:[%s6222_s0 + $0x1e8] sm:$0xff] }
 0x18a   :  { %671 = vmatmul.mubr.f32.gmra.mrb[56].mxu1 %v4643_v52  ;;  %v4667_v52 = vld [vmem:[%s6222_s0 + $0x1e0] sm:$0xff] }
 0x18b   :  { %675 = vmatprep.mubr.f32.mxu1 %v4648_v53  ;;  %v4672_v53 = vld [vmem:[%s6222_s0 + $0x1f8] sm:$0xff] }
 0x18e   :  { %676 = vmatmul.mubr.f32.gmra.mrb[58].mxu1 %v4655_v33  ;;  %v4679_v33 = vld [vmem:[%s6222_s0 + $0x1f0] sm:$0xff] }
 0x18f   :  { %680 = vmatprep.mubr.f32.mxu1 %v4660_v51 }
 0x192   :  { %681 = vmatmul.mubr.f32.gmra.mrb[60].mxu1 %v4667_v52 }
 0x193   :  { %685 = vmatprep.mubr.f32.mxu1 %v4672_v53 }
 0x196   :  { %686 = vmatmul.mubr.f32.gmra.mrb[62].mxu1 %v4679_v33 }
 0x197   :  { %3443 = vmatprep.mubr.msk.f32.mxu1 %vm133_vm1, %v4051_v1  ;;  %v4750_v1 = vld [vmem:[%s6225_s3] ss:$0 sm:$0xff] }
 0x19a   :  { %3444 = vmatmul.mubr.msk.f32.vlgmr.msra.gmra.mrb[64].mxu1 %vm133_vm1, %v4056_v2 }
 0x19b   :  { %3446 = vmatprep.mubr.msk.f32.mxu1 %vm133_vm1, %v4064_v3 }
 0x19e   :  { %3447 = vmatmul.mubr.msk.f32.gmra.mrb[66].mxu1 %vm133_vm1, %v4074_v4 }
 0x19f   :  { %3449 = vmatprep.mubr.msk.f32.mxu1 %vm133_vm1, %v4079_v5 }
 0x1a2   :  { %3450 = vmatmul.mubr.msk.f32.gmra.mrb[68].mxu1 %vm133_vm1, %v4088_v6 }
 0x1a3   :  { %3452 = vmatprep.mubr.msk.f32.mxu1 %vm133_vm1, %v4093_v7 }
 0x1a6   :  { %3453 = vmatmul.mubr.msk.f32.gmra.mrb[70].mxu1 %vm133_vm1, %v4102_v8 }
 0x1a7   :  { %3455 = vmatprep.mubr.msk.f32.mxu1 %vm133_vm1, %v4107_v9 }
 0x1aa   :  { %3456 = vmatmul.mubr.msk.f32.gmra.mrb[72].mxu1 %vm133_vm1, %v4116_v10 }
 0x1ab   :  { %3458 = vmatprep.mubr.msk.f32.mxu1 %vm133_vm1, %v4121_v11 }
 0x1ae   :  { %3459 = vmatmul.mubr.msk.f32.gmra.mrb[74].mxu1 %vm133_vm1, %v4130_v12 }
 0x1af   :  { %3461 = vmatprep.mubr.msk.f32.mxu1 %vm133_vm1, %v4135_v13 }
 0x1b2   :  { %3462 = vmatmul.mubr.msk.f32.gmra.mrb[76].mxu1 %vm133_vm1, %v4144_v14 }
 0x1b3   :  { %3464 = vmatprep.mubr.msk.f32.mxu1 %vm133_vm1, %v4149_v15  ;;  %v6348_v15 = vmov 0.0|0.0  }
 0x1b6   :  { %3465 = vmatmul.mubr.msk.f32.gmra.mrb[78].mxu1 %vm133_vm1, %v4158_v16 }
 0x1b7   :  { %3467 = vmatprep.mubr.msk.f32.mxu1 %vm133_vm1, %v4163_v17 }
 0x1ba   :  { %3468 = vmatmul.mubr.msk.f32.gmra.mrb[80].mxu1 %vm133_vm1, %v4172_v18 }
 0x1bb   :  { %3470 = vmatprep.mubr.msk.f32.mxu1 %vm133_vm1, %v4177_v19 }
 0x1be   :  { %3471 = vmatmul.mubr.msk.f32.gmra.mrb[82].mxu1 %vm133_vm1, %v4186_v20 }
 0x1bf   :  { %3473 = vmatprep.mubr.msk.f32.mxu1 %vm133_vm1, %v4191_v21 }
 0x1c2   :  { %3474 = vmatmul.mubr.msk.f32.gmra.mrb[84].mxu1 %vm133_vm1, %v4200_v22 }
 0x1c3   :  { %3476 = vmatprep.mubr.msk.f32.mxu1 %vm133_vm1, %v4205_v23 }
 0x1c6   :  { %3477 = vmatmul.mubr.msk.f32.gmra.mrb[86].mxu1 %vm133_vm1, %v4214_v24 }
 0x1c7   :  { %3479 = vmatprep.mubr.msk.f32.mxu1 %vm133_vm1, %v4219_v25 }
 0x1ca   :  { %3480 = vmatmul.mubr.msk.f32.gmra.mrb[88].mxu1 %vm133_vm1, %v4228_v26 }
 0x1cb   :  { %3482 = vmatprep.mubr.msk.f32.mxu1 %vm133_vm1, %v4233_v27 }
 0x1ce   :  { %3483 = vmatmul.mubr.msk.f32.gmra.mrb[90].mxu1 %vm133_vm1, %v4242_v28 }
 0x1cf   :  { %3485 = vmatprep.mubr.msk.f32.mxu1 %vm133_vm1, %v4247_v29 }
 0x1d2   :  { %3486 = vmatmul.mubr.msk.f32.gmra.mrb[92].mxu1 %vm133_vm1, %v4256_v30 }
 0x1d3   :  { %3488 = vmatprep.mubr.msk.f32.mxu1 %vm133_vm1, %v4261_v31 }
 0x1d6   :  { %3489 = vmatmul.mubr.msk.f32.gmra.mrb[94].mxu1 %vm133_vm1, %v4270_v32 }
 0x1d7   :  { %1580 = vmatprep.mubr.f32.mxu1 %v4279_v34 }
 0x1ed   :  { %v532_v2 = vpop.f32.mrb[0].mxu1 }
 0x1ee   :  { %v534_v3 = vpop.f32.mrb[1].mxu1  ;;  %v533_v4 = vadd.f32 %v4750_v1, %v532_v2 }
 0x1f0   :  { %v691_v8 = vmax.f32 %v533_v4, 0.0 }
 0x1f1   :  { %v537_v5 = vpop.f32.mrb[2].mxu1 }
 0x1f2   :  { %v538_v6 = vadd.f32 %v4750_v1, %v537_v5  ;;  %v539_v7 = vpop.f32.mrb[3].mxu1 }
 0x1f4   :  { %v692_v9 = vmax.f32 %v538_v6, 0.0 }
 0x1f5   :  { %v542_v10 = vpop.f32.mrb[4].mxu1 }
 0x1f6   :  { %v3601_v11 = vpack.c.bf16 %v692_v9, %v691_v8  ;;  %v544_v12 = vpop.f32.mrb[5].mxu1  ;;  %v543_v13 = vadd.f32 %v4750_v1, %v542_v10 }
 0x1f8   :  { %3602 = vmatpush1.bf16.msra.mxu0 %v3601_v11  ;;  %v693_v18 = vmax.f32 %v543_v13, 0.0 }
 0x1f9   :  { %v547_v14 = vpop.f32.mrb[6].mxu1  ;;  %3603 = vmatprep.subr.bf16.mxu0 %v6348_v15 }
 0x1fa   :  { %v548_v16 = vadd.f32 %v4750_v1, %v547_v14  ;;  %v549_v17 = vpop.f32.mrb[7].mxu1 }
 0x1fc   :  { %v694_v19 = vmax.f32 %v548_v16, 0.0 }
 0x1fd   :  { %v552_v20 = vpop.f32.mrb[8].mxu1 }
 0x1fe   :  { %v3604_v21 = vpack.c.bf16 %v694_v19, %v693_v18  ;;  %v554_v22 = vpop.f32.mrb[9].mxu1  ;;  %v553_v23 = vadd.f32 %v4750_v1, %v552_v20 }
 0x200   :  { %3605 = vmatpush1.bf16.msra.mxu0 %v3604_v21  ;;  %v695_v27 = vmax.f32 %v553_v23, 0.0 }
 0x201   :  { %v557_v24 = vpop.f32.mrb[10].mxu1  ;;  %3606 = vmatprep.subr.bf16.mxu0 %v6348_v15 }
 0x202   :  { %v558_v25 = vadd.f32 %v4750_v1, %v557_v24  ;;  %v559_v26 = vpop.f32.mrb[11].mxu1 }
 0x204   :  { %v696_v28 = vmax.f32 %v558_v25, 0.0 }
 0x205   :  { %v562_v29 = vpop.f32.mrb[12].mxu1 }
 0x206   :  { %v3607_v30 = vpack.c.bf16 %v696_v28, %v695_v27  ;;  %v564_v31 = vpop.f32.mrb[13].mxu1  ;;  %v563_v32 = vadd.f32 %v4750_v1, %v562_v29 }
 0x208   :  { %3608 = vmatpush1.bf16.msra.mxu0 %v3607_v30  ;;  %v697_v4 = vmax.f32 %v563_v32, 0.0 }
 0x209   :  { %v567_v34 = vpop.f32.mrb[14].mxu1  ;;  %3609 = vmatprep.subr.bf16.mxu0 %v6348_v15 }
 0x20a   :  { %v568_v2 = vadd.f32 %v4750_v1, %v567_v34  ;;  %v569_v3 = vpop.f32.mrb[15].mxu1 }
 0x20c   :  { %v698_v5 = vmax.f32 %v568_v2, 0.0 }
 0x20d   :  { %v572_v6 = vpop.f32.mrb[16].mxu1 }
 0x20e   :  { %v3610_v7 = vpack.c.bf16 %v698_v5, %v697_v4  ;;  %v574_v8 = vpop.f32.mrb[17].mxu1  ;;  %v573_v9 = vadd.f32 %v4750_v1, %v572_v6 }
 0x210   :  { %3611 = vmatpush1.bf16.msra.mxu0 %v3610_v7  ;;  %v699_v13 = vmax.f32 %v573_v9, 0.0 }
 0x211   :  { %v577_v10 = vpop.f32.mrb[18].mxu1  ;;  %3612 = vmatprep.subr.bf16.mxu0 %v6348_v15 }
 0x212   :  { %v578_v11 = vadd.f32 %v4750_v1, %v577_v10  ;;  %v579_v12 = vpop.f32.mrb[19].mxu1 }
 0x214   :  { %v700_v14 = vmax.f32 %v578_v11, 0.0 }
 0x215   :  { %v582_v16 = vpop.f32.mrb[20].mxu1 }
 0x216   :  { %v3613_v17 = vpack.c.bf16 %v700_v14, %v699_v13  ;;  %v584_v18 = vpop.f32.mrb[21].mxu1  ;;  %v583_v19 = vadd.f32 %v4750_v1, %v582_v16 }
 0x218   :  { %3614 = vmatpush1.bf16.msra.mxu0 %v3613_v17  ;;  %v701_v23 = vmax.f32 %v583_v19, 0.0 }
 0x219   :  { %v587_v20 = vpop.f32.mrb[22].mxu1  ;;  %3615 = vmatprep.subr.bf16.mxu0 %v6348_v15 }
 0x21a   :  { %v588_v21 = vadd.f32 %v4750_v1, %v587_v20  ;;  %v589_v22 = vpop.f32.mrb[23].mxu1 }
 0x21c   :  { %v702_v24 = vmax.f32 %v588_v21, 0.0 }
 0x21d   :  { %v592_v25 = vpop.f32.mrb[24].mxu1 }
 0x21e   :  { %v3616_v26 = vpack.c.bf16 %v702_v24, %v701_v23  ;;  %v594_v27 = vpop.f32.mrb[25].mxu1  ;;  %v593_v28 = vadd.f32 %v4750_v1, %v592_v25 }
 0x220   :  { %3617 = vmatpush1.bf16.msra.mxu0 %v3616_v26  ;;  %v703_v32 = vmax.f32 %v593_v28, 0.0 }
 0x221   :  { %v597_v29 = vpop.f32.mrb[26].mxu1  ;;  %3618 = vmatprep.subr.bf16.mxu0 %v6348_v15 }
 0x222   :  { %v598_v30 = vadd.f32 %v4750_v1, %v597_v29  ;;  %v599_v31 = vpop.f32.mrb[27].mxu1 }
 0x224   :  { %v704_v34 = vmax.f32 %v598_v30, 0.0 }
 0x225   :  { %v602_v2 = vpop.f32.mrb[28].mxu1 }
 0x226   :  { %v3619_v3 = vpack.c.bf16 %v704_v34, %v703_v32  ;;  %v604_v4 = vpop.f32.mrb[29].mxu1  ;;  %v603_v5 = vadd.f32 %v4750_v1, %v602_v2 }
 0x228   :  { %3620 = vmatpush1.bf16.msra.mxu0 %v3619_v3  ;;  %v705_v9 = vmax.f32 %v603_v5, 0.0 }
 0x229   :  { %v607_v6 = vpop.f32.mrb[30].mxu1  ;;  %3621 = vmatprep.subr.bf16.mxu0 %v6348_v15 }
 0x22a   :  { %v608_v7 = vadd.f32 %v4750_v1, %v607_v6  ;;  %v609_v8 = vpop.f32.mrb[31].mxu1 }
 0x22c   :  { %v706_v10 = vmax.f32 %v608_v7, 0.0 }
 0x22d   :  { %v612_v11 = vpop.f32.mrb[32].mxu1 }
 0x22e   :  { %v3622_v12 = vpack.c.bf16 %v706_v10, %v705_v9  ;;  %v614_v13 = vpop.f32.mrb[33].mxu1  ;;  %v613_v14 = vadd.f32 %v4750_v1, %v612_v11 }
 0x230   :  { %3623 = vmatpush1.bf16.msra.mxu0 %v3622_v12  ;;  %v707_v19 = vmax.f32 %v613_v14, 0.0 }
 0x231   :  { %v617_v16 = vpop.f32.mrb[34].mxu1  ;;  %3624 = vmatprep.subr.bf16.mxu0 %v6348_v15 }
 0x232   :  { %v618_v17 = vadd.f32 %v4750_v1, %v617_v16  ;;  %v619_v18 = vpop.f32.mrb[35].mxu1 }
 0x234   :  { %v708_v20 = vmax.f32 %v618_v17, 0.0 }
 0x235   :  { %v622_v21 = vpop.f32.mrb[36].mxu1 }
 0x236   :  { %v3625_v22 = vpack.c.bf16 %v708_v20, %v707_v19  ;;  %v624_v23 = vpop.f32.mrb[37].mxu1  ;;  %v623_v24 = vadd.f32 %v4750_v1, %v622_v21 }
 0x238   :  { %3626 = vmatpush1.bf16.msra.mxu0 %v3625_v22  ;;  %v709_v28 = vmax.f32 %v623_v24, 0.0 }
 0x239   :  { %v627_v25 = vpop.f32.mrb[38].mxu1  ;;  %3627 = vmatprep.subr.bf16.mxu0 %v6348_v15 }
 0x23a   :  { %v628_v26 = vadd.f32 %v4750_v1, %v627_v25  ;;  %v629_v27 = vpop.f32.mrb[39].mxu1 }
 0x23c   :  { %v710_v29 = vmax.f32 %v628_v26, 0.0 }
 0x23d   :  { %v632_v30 = vpop.f32.mrb[40].mxu1 }
 0x23e   :  { %v3628_v31 = vpack.c.bf16 %v710_v29, %v709_v28  ;;  %v634_v32 = vpop.f32.mrb[41].mxu1  ;;  %v633_v34 = vadd.f32 %v4750_v1, %v632_v30 }
 0x240   :  { %3629 = vmatpush1.bf16.msra.mxu0 %v3628_v31  ;;  %v711_v5 = vmax.f32 %v633_v34, 0.0 }
 0x241   :  { %v637_v2 = vpop.f32.mrb[42].mxu1  ;;  %3630 = vmatprep.subr.bf16.mxu0 %v6348_v15 }
 0x242   :  { %v638_v3 = vadd.f32 %v4750_v1, %v637_v2  ;;  %v639_v4 = vpop.f32.mrb[43].mxu1 }
 0x244   :  { %v712_v6 = vmax.f32 %v638_v3, 0.0 }
 0x245   :  { %v642_v7 = vpop.f32.mrb[44].mxu1 }
 0x246   :  { %v3631_v8 = vpack.c.bf16 %v712_v6, %v711_v5  ;;  %v644_v9 = vpop.f32.mrb[45].mxu1  ;;  %v643_v10 = vadd.f32 %v4750_v1, %v642_v7 }
 0x248   :  { %3632 = vmatpush1.bf16.msra.mxu0 %v3631_v8  ;;  %v713_v14 = vmax.f32 %v643_v10, 0.0 }
 0x249   :  { %v647_v11 = vpop.f32.mrb[46].mxu1  ;;  %3633 = vmatprep.subr.bf16.mxu0 %v6348_v15 }
 0x24a   :  { %v648_v12 = vadd.f32 %v4750_v1, %v647_v11  ;;  %v649_v13 = vpop.f32.mrb[47].mxu1 }
 0x24c   :  { %v714_v16 = vmax.f32 %v648_v12, 0.0 }
 0x24d   :  { %v652_v17 = vpop.f32.mrb[48].mxu1 }
 0x24e   :  { %v3634_v18 = vpack.c.bf16 %v714_v16, %v713_v14  ;;  %v654_v19 = vpop.f32.mrb[49].mxu1  ;;  %v653_v20 = vadd.f32 %v4750_v1, %v652_v17 }
 0x250   :  { %3635 = vmatpush1.bf16.msra.mxu0 %v3634_v18  ;;  %v715_v24 = vmax.f32 %v653_v20, 0.0 }
 0x251   :  { %v657_v21 = vpop.f32.mrb[50].mxu1  ;;  %3636 = vmatprep.subr.bf16.mxu0 %v6348_v15 }
 0x252   :  { %v658_v22 = vadd.f32 %v4750_v1, %v657_v21  ;;  %v659_v23 = vpop.f32.mrb[51].mxu1 }
 0x254   :  { %v716_v25 = vmax.f32 %v658_v22, 0.0 }
 0x255   :  { %v662_v26 = vpop.f32.mrb[52].mxu1 }
 0x256   :  { %v3637_v27 = vpack.c.bf16 %v716_v25, %v715_v24  ;;  %v664_v28 = vpop.f32.mrb[53].mxu1  ;;  %v663_v29 = vadd.f32 %v4750_v1, %v662_v26 }
 0x258   :  { %3638 = vmatpush1.bf16.msra.mxu0 %v3637_v27  ;;  %v717_v34 = vmax.f32 %v663_v29, 0.0 }
 0x259   :  { %v667_v30 = vpop.f32.mrb[54].mxu1  ;;  %3639 = vmatprep.subr.bf16.mxu0 %v6348_v15 }
 0x25a   :  { %v668_v31 = vadd.f32 %v4750_v1, %v667_v30  ;;  %v669_v32 = vpop.f32.mrb[55].mxu1 }
 0x25c   :  { %v718_v2 = vmax.f32 %v668_v31, 0.0 }
 0x25d   :  { %v672_v3 = vpop.f32.mrb[56].mxu1 }
 0x25e   :  { %v3640_v4 = vpack.c.bf16 %v718_v2, %v717_v34  ;;  %v674_v5 = vpop.f32.mrb[57].mxu1  ;;  %v673_v6 = vadd.f32 %v4750_v1, %v672_v3 }
 0x260   :  { %3641 = vmatpush1.bf16.msra.mxu0 %v3640_v4  ;;  %v719_v10 = vmax.f32 %v673_v6, 0.0 }
 0x261   :  { %v677_v7 = vpop.f32.mrb[58].mxu1  ;;  %3642 = vmatprep.subr.bf16.mxu0 %v6348_v15 }
 0x262   :  { %v678_v8 = vadd.f32 %v4750_v1, %v677_v7  ;;  %v679_v9 = vpop.f32.mrb[59].mxu1 }
 0x264   :  { %v720_v11 = vmax.f32 %v678_v8, 0.0 }
 0x265   :  { %v682_v12 = vpop.f32.mrb[60].mxu1 }
 0x266   :  { %v3643_v13 = vpack.c.bf16 %v720_v11, %v719_v10  ;;  %v684_v14 = vpop.f32.mrb[61].mxu1  ;;  %v683_v16 = vadd.f32 %v4750_v1, %v682_v12 }
 0x268   :  { %3644 = vmatpush1.bf16.msra.mxu0 %v3643_v13  ;;  %v721_v20 = vmax.f32 %v683_v16, 0.0 }
 0x269   :  { %v687_v17 = vpop.f32.mrb[62].mxu1  ;;  %3645 = vmatprep.subr.bf16.mxu0 %v6348_v15 }
 0x26a   :  { %v688_v18 = vadd.f32 %v4750_v1, %v687_v17  ;;  %v689_v19 = vpop.f32.mrb[63].mxu1 }
 0x26c   :  { %v722_v21 = vmax.f32 %v688_v18, 0.0 }
 0x26d   :  { %v3445_v22 = vpop.f32.mrb[64].mxu1 }
 0x26e   :  { %v3646_v23 = vpack.c.bf16 %v722_v21, %v721_v20  ;;  %v1092_v24 = vpop.f32.mrb[65].mxu1 }
 0x26f   :  { %v3649_v25 = vpack.c.bf16 %v3445_v22, %v1092_v24 }
 0x270   :  { %3647 = vmatpush1.bf16.msra.mxu0 %v3646_v23 }
 0x271   :  { %3648 = vmatprep.subr.bf16.mxu0 %v6348_v15  ;;  %v3448_v26 = vpop.f32.mrb[66].mxu1 }
 0x272   :  { %v1102_v27 = vpop.f32.mrb[67].mxu1 }
 0x273   :  { %788 = vmatmul.mubr.f32.vlgmr.msra.gmra.mrb[32].mxu0 %v4304_v54  ;;  %v3652_v28 = vpack.c.bf16 %v3448_v26, %v1102_v27 }
 0x274   :  { %3650 = vmatpush1.bf16.msra.mxu0 %v3649_v25  ;;  %792 = vmatprep.mubr.f32.mxu0 %v4309_v55 }
 0x275   :  { %3651 = vmatprep.subr.bf16.mxu0 %v6348_v15  ;;  %v3451_v1 = vpop.f32.mrb[68].mxu1 }
 0x276   :  { %v1112_v29 = vpop.f32.mrb[69].mxu1 }
 0x277   :  { %793 = vmatmul.mubr.f32.gmra.mrb[34].mxu0 %v4317_v56  ;;  %v3655_v30 = vpack.c.bf16 %v3451_v1, %v1112_v29 }
 0x278   :  { %797 = vmatprep.mubr.f32.mxu0 %v4323_v57  ;;  %3653 = vmatpush1.bf16.msra.mxu0 %v3652_v28 }
 0x279   :  { %3654 = vmatprep.subr.bf16.mxu0 %v6348_v15  ;;  %v3454_v31 = vpop.f32.mrb[70].mxu1 }
 0x27a   :  { %v1122_v32 = vpop.f32.mrb[71].mxu1 }
 0x27b   :  { %798 = vmatmul.mubr.f32.gmra.mrb[36].mxu0 %v4331_v58  ;;  %v3658_v34 = vpack.c.bf16 %v3454_v31, %v1122_v32 }
 0x27c   :  { %802 = vmatprep.mubr.f32.mxu0 %v4336_v59  ;;  %3656 = vmatpush1.bf16.msra.mxu0 %v3655_v30 }
 0x27d   :  { %3657 = vmatprep.subr.bf16.mxu0 %v6348_v15  ;;  %v3457_v2 = vpop.f32.mrb[72].mxu1 }
 0x27e   :  { %v1132_v3 = vpop.f32.mrb[73].mxu1 }
 0x27f   :  { %803 = vmatmul.mubr.f32.gmra.mrb[38].mxu0 %v4343_v60  ;;  %v3661_v4 = vpack.c.bf16 %v3457_v2, %v1132_v3  ;;  %v6349_v3 = vld [vmem:[#allocation5_spill] sm:$0xff] }
 0x280   :  { %807 = vmatprep.mubr.f32.mxu0 %v4348_v61  ;;  %3659 = vmatpush1.bf16.msra.mxu0 %v3658_v34 }
 0x281   :  { %3660 = vmatprep.subr.bf16.mxu0 %v6348_v15  ;;  %v3460_v5 = vpop.f32.mrb[74].mxu1 }
 0x282   :  { %v1142_v6 = vpop.f32.mrb[75].mxu1 }
 0x283   :  { %808 = vmatmul.mubr.f32.gmra.mrb[40].mxu0 %v4355_v62  ;;  %v3664_v7 = vpack.c.bf16 %v3460_v5, %v1142_v6  ;;  %v6350_v6 = vld [vmem:[#allocation6_spill] sm:$0xff] }
 0x284   :  { %812 = vmatprep.mubr.f32.mxu0 %v4360_v63  ;;  %3662 = vmatpush1.bf16.msra.mxu0 %v3661_v4 }
 0x285   :  { %3663 = vmatprep.subr.bf16.mxu0 %v6348_v15  ;;  %v3463_v8 = vpop.f32.mrb[76].mxu1 }
 0x286   :  { %v1152_v9 = vpop.f32.mrb[77].mxu1 }
 0x287   :  { %813 = vmatmul.mubr.f32.gmra.mrb[42].mxu0 %v4367_v0  ;;  %v3667_v10 = vpack.c.bf16 %v3463_v8, %v1152_v9  ;;  %v6351_v8 = vld [vmem:[#allocation7_spill] sm:$0xff]  ;;  %v6352_v9 = vld [vmem:[#allocation8_spill] sm:$0xff] }
 0x288   :  { %817 = vmatprep.mubr.f32.mxu0 %v4372_v35  ;;  %3665 = vmatpush1.bf16.msra.mxu0 %v3664_v7 }
 0x289   :  { %3666 = vmatprep.subr.bf16.mxu0 %v6348_v15  ;;  %v3466_v11 = vpop.f32.mrb[78].mxu1 }
 0x28a   :  { %v1162_v12 = vpop.f32.mrb[79].mxu1 }
 0x28b   :  { %818 = vmatmul.mubr.f32.gmra.mrb[44].mxu0 %v4379_v36  ;;  %v3670_v13 = vpack.c.bf16 %v3466_v11, %v1162_v12  ;;  %v6354_v11 = vld [vmem:[#allocation10_spill] sm:$0xff]  ;;  %v6355_v12 = vld [vmem:[#allocation11_spill] sm:$0xff] }
 0x28c   :  { %822 = vmatprep.mubr.f32.mxu0 %v4384_v37  ;;  %3668 = vmatpush1.bf16.msra.mxu0 %v3667_v10  ;;  %v6353_v10 = vld [vmem:[#allocation9_spill] sm:$0xff] }
 0x28d   :  { %3669 = vmatprep.subr.bf16.mxu0 %v6348_v15  ;;  %v3469_v14 = vpop.f32.mrb[80].mxu1 }
 0x28e   :  { %v1172_v16 = vpop.f32.mrb[81].mxu1 }
 0x28f   :  { %823 = vmatmul.mubr.f32.gmra.mrb[46].mxu0 %v4391_v38  ;;  %v3673_v17 = vpack.c.bf16 %v3469_v14, %v1172_v16  ;;  %v6356_v14 = vld [vmem:[#allocation12_spill] sm:$0xff]  ;;  %v6357_v16 = vld [vmem:[#allocation13_spill] sm:$0xff] }
 0x290   :  { %827 = vmatprep.mubr.f32.mxu0 %v4396_v39  ;;  %3671 = vmatpush1.bf16.msra.mxu0 %v3670_v13  ;;  %v3245_v13 = vld [vmem:[%s6224_s2 + $0x8] sm:$0xf] }
 0x291   :  { %3672 = vmatprep.subr.bf16.mxu0 %v6348_v15  ;;  %v3472_v18 = vpop.f32.mrb[82].mxu1 }
 0x292   :  { %v1182_v19 = vpop.f32.mrb[83].mxu1 }
 0x293   :  { %828 = vmatmul.mubr.f32.gmra.mrb[48].mxu0 %v4403_v40  ;;  %v3676_v20 = vpack.c.bf16 %v3472_v18, %v1182_v19  ;;  %v6359_v18 = vld [vmem:[#allocation15_spill] sm:$0xff]  ;;  %v6360_v19 = vld [vmem:[#allocation16_spill] sm:$0xff] }
 0x294   :  { %832 = vmatprep.mubr.f32.mxu0 %v4408_v41  ;;  %3674 = vmatpush1.bf16.msra.mxu0 %v3673_v17  ;;  %v6358_v17 = vld [vmem:[#allocation14_spill] sm:$0xff] }
 0x295   :  { %3675 = vmatprep.subr.bf16.mxu0 %v6348_v15  ;;  %v3475_v21 = vpop.f32.mrb[84].mxu1 }
 0x296   :  { %v1192_v22 = vpop.f32.mrb[85].mxu1 }
 0x297   :  { %833 = vmatmul.mubr.f32.gmra.mrb[50].mxu0 %v4415_v42  ;;  %v3679_v23 = vpack.c.bf16 %v3475_v21, %v1192_v22  ;;  %v6362_v21 = vld [vmem:[#allocation18_spill] sm:$0xff]  ;;  %v6363_v22 = vld [vmem:[#allocation19_spill] sm:$0xff] }
 0x298   :  { %837 = vmatprep.mubr.f32.mxu0 %v4420_v43  ;;  %3677 = vmatpush1.bf16.msra.mxu0 %v3676_v20  ;;  %v6361_v20 = vld [vmem:[#allocation17_spill] sm:$0xff] }
 0x299   :  { %3678 = vmatprep.subr.bf16.mxu0 %v6348_v15  ;;  %v3478_v24 = vpop.f32.mrb[86].mxu1 }
 0x29a   :  { %v1202_v25 = vpop.f32.mrb[87].mxu1 }
 0x29b   :  { %838 = vmatmul.mubr.f32.gmra.mrb[52].mxu0 %v4427_v44  ;;  %v3682_v26 = vpack.c.bf16 %v3478_v24, %v1202_v25  ;;  %v6365_v24 = vld [vmem:[#allocation21_spill] sm:$0xff]  ;;  %v6366_v25 = vld [vmem:[#allocation22_spill] sm:$0xff] }
 0x29c   :  { %842 = vmatprep.mubr.f32.mxu0 %v4432_v45  ;;  %3680 = vmatpush1.bf16.msra.mxu0 %v3679_v23  ;;  %v6364_v23 = vld [vmem:[#allocation20_spill] sm:$0xff] }
 0x29d   :  { %3681 = vmatprep.subr.bf16.mxu0 %v6348_v15  ;;  %v3481_v27 = vpop.f32.mrb[88].mxu1 }
 0x29e   :  { %v1212_v28 = vpop.f32.mrb[89].mxu1 }
 0x29f   :  { %843 = vmatmul.mubr.f32.gmra.mrb[54].mxu0 %v4439_v46  ;;  %v3685_v1 = vpack.c.bf16 %v3481_v27, %v1212_v28  ;;  %v6368_v27 = vld [vmem:[#allocation24_spill] sm:$0xff]  ;;  %v6369_v28 = vld [vmem:[#allocation25_spill] sm:$0xff] }
 0x2a0   :  { %847 = vmatprep.mubr.f32.mxu0 %v4444_v47  ;;  %3683 = vmatpush1.bf16.msra.mxu0 %v3682_v26  ;;  %v6367_v26 = vld [vmem:[#allocation23_spill] sm:$0xff] }
 0x2a1   :  { %3684 = vmatprep.subr.bf16.mxu0 %v6348_v15  ;;  %v3484_v29 = vpop.f32.mrb[90].mxu1 }
 0x2a2   :  { %v1222_v30 = vpop.f32.mrb[91].mxu1 }
 0x2a3   :  { %848 = vmatmul.mubr.f32.gmra.mrb[56].mxu0 %v4451_v48  ;;  %v3688_v31 = vpack.c.bf16 %v3484_v29, %v1222_v30  ;;  %v6371_v29 = vld [vmem:[#allocation27_spill] sm:$0xff]  ;;  %v6372_v30 = vld [vmem:[#allocation28_spill] sm:$0xff] }
 0x2a4   :  { %852 = vmatprep.mubr.f32.mxu0 %v4456_v49  ;;  %3686 = vmatpush1.bf16.msra.mxu0 %v3685_v1  ;;  %v6370_v1 = vld [vmem:[#allocation26_spill] sm:$0xff] }
 0x2a5   :  { %3687 = vmatprep.subr.bf16.mxu0 %v6348_v15  ;;  %v3487_v32 = vpop.f32.mrb[92].mxu1 }
 0x2a6   :  { %v1232_v34 = vpop.f32.mrb[93].mxu1 }
 0x2a7   :  { %853 = vmatmul.mubr.f32.gmra.mrb[58].mxu0 %v4463_v50  ;;  %v3691_v2 = vpack.c.bf16 %v3487_v32, %v1232_v34  ;;  %v6374_v32 = vld [vmem:[#allocation30_spill] sm:$0xff]  ;;  %v6375_v34 = vld [vmem:[#allocation31_spill] sm:$0xff] }
 0x2a8   :  { %857 = vmatprep.mubr.f32.mxu0 %v6349_v3  ;;  %3689 = vmatpush1.bf16.msra.mxu0 %v3688_v31  ;;  %v6373_v31 = vld [vmem:[#allocation29_spill] sm:$0xff] }
 0x2a9   :  { %3690 = vmatprep.subr.bf16.mxu0 %v6348_v15  ;;  %v3490_v4 = vpop.f32.mrb[94].mxu1 }
 0x2aa   :  { %v1242_v5 = vpop.f32.mrb[95].mxu1 }
 0x2ab   :  { %858 = vmatmul.mubr.f32.gmra.mrb[60].mxu0 %v6350_v6  ;;  %v3694_v7 = vpack.c.bf16 %v3490_v4, %v1242_v5  ;;  %v6377_v4 = vld [vmem:[#allocation33_spill] sm:$0xff]  ;;  %v6378_v5 = vld [vmem:[#allocation34_spill] sm:$0xff] }
 0x2ac   :  { %862 = vmatprep.mubr.f32.mxu0 %v6351_v8  ;;  %3692 = vmatpush1.bf16.msra.mxu0 %v3691_v2  ;;  %v6376_v2 = vld [vmem:[#allocation32_spill] sm:$0xff] }
 0x2ad   :  { %3693 = vmatprep.subr.bf16.mxu0 %v6348_v15 }
 0x2af   :  { %863 = vmatmul.mubr.f32.gmra.mrb[62].mxu0 %v6352_v9 }
 0x2b0   :  { %867 = vmatprep.mubr.f32.mxu0 %v6353_v10  ;;  %3695 = vmatpush1.bf16.msra.mxu0 %v3694_v7  ;;  %v6379_v7 = vld [vmem:[#allocation35_spill] sm:$0xff] }
 0x2b1   :  { %3491 = vmatprep.subr.msk.mxu0 %vm230_vm0, %v3245_v13 }
 0x2b3   :  { %868 = vmatmul.mubr.f32.gmra.mrb[64].mxu0 %v6354_v11 }
 0x2b4   :  { %872 = vmatprep.mubr.f32.mxu0 %v6355_v12 }
 0x2b7   :  { %873 = vmatmul.mubr.f32.gmra.mrb[66].mxu0 %v6356_v14 }
 0x2b8   :  { %877 = vmatprep.mubr.f32.mxu0 %v6357_v16 }
 0x2bb   :  { %878 = vmatmul.mubr.f32.gmra.mrb[68].mxu0 %v6358_v17 }
 0x2bc   :  { %882 = vmatprep.mubr.f32.mxu0 %v6359_v18 }
 0x2bf   :  { %883 = vmatmul.mubr.f32.gmra.mrb[70].mxu0 %v6360_v19 }
 0x2c0   :  { %887 = vmatprep.mubr.f32.mxu0 %v6361_v20 }
 0x2c3   :  { %888 = vmatmul.mubr.f32.gmra.mrb[72].mxu0 %v6362_v21 }
 0x2c4   :  { %892 = vmatprep.mubr.f32.mxu0 %v6363_v22 }
 0x2c7   :  { %893 = vmatmul.mubr.f32.gmra.mrb[74].mxu0 %v6364_v23 }
 0x2c8   :  { %897 = vmatprep.mubr.f32.mxu0 %v6365_v24 }
 0x2cb   :  { %898 = vmatmul.mubr.f32.gmra.mrb[76].mxu0 %v6366_v25 }
 0x2cc   :  { %902 = vmatprep.mubr.f32.mxu0 %v6367_v26 }
 0x2cf   :  { %903 = vmatmul.mubr.f32.gmra.mrb[78].mxu0 %v6368_v27 }
 0x2d0   :  { %907 = vmatprep.mubr.f32.mxu0 %v6369_v28  ;;  %v6380_v28 = vld [vmem:[#allocation36_spill] sm:$0xff] }
 0x2d3   :  { %908 = vmatmul.mubr.f32.gmra.mrb[80].mxu0 %v6370_v1 }
 0x2d4   :  { %912 = vmatprep.mubr.f32.mxu0 %v6371_v29 }
 0x2d7   :  { %913 = vmatmul.mubr.f32.gmra.mrb[82].mxu0 %v6372_v30 }
 0x2d8   :  { %917 = vmatprep.mubr.f32.mxu0 %v6373_v31 }
 0x2db   :  { %918 = vmatmul.mubr.f32.gmra.mrb[84].mxu0 %v6374_v32 }
 0x2dc   :  { %922 = vmatprep.mubr.f32.mxu0 %v6375_v34 }
 0x2df   :  { %923 = vmatmul.mubr.f32.gmra.mrb[86].mxu0 %v6376_v2  ;;  %v4885_v2 = vld [vmem:[%s6222_s0 + $0x8] sm:$0xff] }
 0x2e0   :  { %927 = vmatprep.mubr.f32.mxu0 %v6377_v4 }
 0x2e3   :  { %928 = vmatmul.mubr.f32.gmra.mrb[88].mxu0 %v6378_v5 }
 0x2e4   :  { %932 = vmatprep.mubr.f32.mxu0 %v6379_v7 }
 0x2e7   :  { %933 = vmatmul.mubr.f32.gmra.mrb[90].mxu0 %v6380_v28 }
 0x2e8   :  { %937 = vmatprep.mubr.f32.mxu0 %v4660_v51 }
 0x2eb   :  { %938 = vmatmul.mubr.f32.gmra.mrb[92].mxu0 %v4667_v52 }
 0x2ec   :  { %942 = vmatprep.mubr.f32.mxu0 %v4672_v53 }
 0x2ef   :  { %943 = vmatmul.mubr.f32.gmra.mrb[94].mxu0 %v4679_v33 }
 0x2f0   :  { %1323 = vmatprep.mubr.f32.mxu0 %v4885_v2 }
 0x2f3   :  { %1324 = vmatmul.mubr.f32.vlgmr.msra.gmra.mrb[96].mxu0 %v4304_v54 }
 0x2f4   :  { %1328 = vmatprep.mubr.f32.mxu0 %v4309_v55  ;;  %3492 = vmatpush3.msk.msra.mxu0 %vm230_vm0, %v3245_v13 }
 0x2f5   :  { %3792 = vmatprep.subr.bf16.mxu0 %v6348_v15 }
 0x2f7   :  { %1329 = vmatmul.mubr.f32.gmra.mrb[98].mxu0 %v4317_v56 }
 0x2f8   :  { %1333 = vmatprep.mubr.f32.mxu0 %v4323_v57 }
 0x2fb   :  { %1334 = vmatmul.mubr.f32.gmra.mrb[100].mxu0 %v4331_v58 }
 0x2fc   :  { %1338 = vmatprep.mubr.f32.mxu0 %v4336_v59 }
 0x2ff   :  { %1339 = vmatmul.mubr.f32.gmra.mrb[102].mxu0 %v4343_v60  ;;  %v6381_v60 = vld [vmem:[#allocation25_spill] sm:$0xff] }
 0x300   :  { %1343 = vmatprep.mubr.f32.mxu0 %v4348_v61 }
 0x303   :  { %1344 = vmatmul.mubr.f32.gmra.mrb[104].mxu0 %v4355_v62 }
 0x304   :  { %1348 = vmatprep.mubr.f32.mxu0 %v4360_v63 }
 0x307   :  { %1349 = vmatmul.mubr.f32.gmra.mrb[106].mxu0 %v4367_v0 }
 0x308   :  { %1353 = vmatprep.mubr.f32.mxu0 %v4372_v35 }
 0x30b   :  { %1354 = vmatmul.mubr.f32.gmra.mrb[108].mxu0 %v4379_v36 }
 0x30c   :  { %1358 = vmatprep.mubr.f32.mxu0 %v4384_v37 }
 0x30f   :  { %1359 = vmatmul.mubr.f32.gmra.mrb[110].mxu0 %v4391_v38 }
 0x310   :  { %1363 = vmatprep.mubr.f32.mxu0 %v4396_v39  ;;  %v6383_v39 = vld [vmem:[#allocation32_spill] sm:$0xff] }
 0x313   :  { %1364 = vmatmul.mubr.f32.gmra.mrb[112].mxu0 %v4403_v40 }
 0x314   :  { %1368 = vmatprep.mubr.f32.mxu0 %v4408_v41 }
 0x317   :  { %1369 = vmatmul.mubr.f32.gmra.mrb[114].mxu0 %v4415_v42 }
 0x318   :  { %1373 = vmatprep.mubr.f32.mxu0 %v4420_v43 }
 0x31b   :  { %1374 = vmatmul.mubr.f32.gmra.mrb[116].mxu0 %v4427_v44 }
 0x31c   :  { %1378 = vmatprep.mubr.f32.mxu0 %v4432_v45 }
 0x31f   :  { %1379 = vmatmul.mubr.f32.gmra.mrb[118].mxu0 %v4439_v46 }
 0x320   :  { %1383 = vmatprep.mubr.f32.mxu0 %v4444_v47 }
 0x323   :  { %1384 = vmatmul.mubr.f32.gmra.mrb[120].mxu0 %v4451_v48  ;;  %v3854_v48 = vld [vmem:[%s6223_s1] sm:$0xff] }
 0x324   :  { %1388 = vmatprep.mubr.f32.mxu0 %v4456_v49 }
 0x327   :  { %1389 = vmatmul.mubr.f32.gmra.mrb[122].mxu0 %v4463_v50 }
 0x328   :  { %1393 = vmatprep.mubr.f32.mxu0 %v6349_v3  ;;  %v3857_v3 = vld [vmem:[%s6223_s1 + $0x18] sm:$0xff] }
 0x32b   :  { %1394 = vmatmul.mubr.f32.gmra.mrb[124].mxu0 %v6350_v6  ;;  %v3858_v6 = vld [vmem:[%s6223_s1 + $0x20] sm:$0xff] }
 0x32c   :  { %1398 = vmatprep.mubr.f32.mxu0 %v6351_v8 }
 0x32f   :  { %1399 = vmatmul.mubr.f32.gmra.mrb[126].mxu0 %v6352_v9 }
 0x330   :  { %1403 = vmatprep.mubr.f32.mxu0 %v6353_v10  ;;  %v3859_v10 = vld [vmem:[%s6223_s1 + $0x28] sm:$0xff] }
 0x333   :  { %1404 = vmatmul.mubr.f32.gmra.mrb[128].mxu0 %v6354_v11  ;;  %v3860_v11 = vld [vmem:[%s6223_s1 + $0x30] sm:$0xff] }
 0x334   :  { %1408 = vmatprep.mubr.f32.mxu0 %v6355_v12 }
 0x337   :  { %1409 = vmatmul.mubr.f32.gmra.mrb[130].mxu0 %v6356_v14  ;;  %v3861_v14 = vld [vmem:[%s6223_s1 + $0x38] sm:$0xff] }
 0x338   :  { %1413 = vmatprep.mubr.f32.mxu0 %v6357_v16  ;;  %v3862_v16 = vld [vmem:[%s6223_s1 + $0x40] sm:$0xff] }
 0x33b   :  { %1414 = vmatmul.mubr.f32.gmra.mrb[132].mxu0 %v6358_v17 }
 0x33c   :  { %1418 = vmatprep.mubr.f32.mxu0 %v6359_v18 }
 0x33f   :  { %1419 = vmatmul.mubr.f32.gmra.mrb[134].mxu0 %v6360_v19  ;;  %v3863_v19 = vld [vmem:[%s6223_s1 + $0x48] sm:$0xff] }
 0x340   :  { %1423 = vmatprep.mubr.f32.mxu0 %v6361_v20  ;;  %v3864_v20 = vld [vmem:[%s6223_s1 + $0x50] sm:$0xff] }
 0x343   :  { %1424 = vmatmul.mubr.f32.gmra.mrb[136].mxu0 %v6362_v21 }
 0x344   :  { %1428 = vmatprep.mubr.f32.mxu0 %v6363_v22 }
 0x346   :  { %v4932_v54 = vpop.f32.mrb[32].mxu0 }
 0x347   :  { %v791_v55 = vpop.f32.mrb[33].mxu0  ;;  %1429 = vmatmul.mubr.f32.gmra.mrb[138].mxu0 %v6364_v23  ;;  %v3865_v23 = vld [vmem:[%s6223_s1 + $0x58] sm:$0xff] }
 0x348   :  { %1433 = vmatprep.mubr.f32.mxu0 %v6365_v24  ;;  %v3866_v24 = vld [vmem:[%s6223_s1 + $0x60] sm:$0xff] }
 0x34a   :  { %v4936_v56 = vpop.f32.mrb[34].mxu0 }
 0x34b   :  { %v796_v57 = vpop.f32.mrb[35].mxu0  ;;  %1434 = vmatmul.mubr.f32.gmra.mrb[140].mxu0 %v6366_v25 }
 0x34c   :  { %1438 = vmatprep.mubr.f32.mxu0 %v6367_v26  ;;  %v3873_v57 = vld [vmem:[%s6223_s1 + $0x98] sm:$0xff] }
 0x34e   :  { %v4940_v58 = vpop.f32.mrb[36].mxu0 }
 0x34f   :  { %v801_v59 = vpop.f32.mrb[37].mxu0  ;;  %1439 = vmatmul.mubr.f32.gmra.mrb[142].mxu0 %v6368_v27  ;;  %v3867_v27 = vld [vmem:[%s6223_s1 + $0x68] sm:$0xff] }
 0x350   :  { %1443 = vmatprep.mubr.f32.mxu0 %v6381_v60  ;;  %v3874_v59 = vld [vmem:[%s6223_s1 + $0xa0] sm:$0xff] }
 0x352   :  { %v4944_v61 = vpop.f32.mrb[38].mxu0 }
 0x353   :  { %v806_v62 = vpop.f32.mrb[39].mxu0  ;;  %1444 = vmatmul.mubr.f32.gmra.mrb[144].mxu0 %v6370_v1 }
 0x354   :  { %1448 = vmatprep.mubr.f32.mxu0 %v6371_v29 }
 0x356   :  { %v4948_v63 = vpop.f32.mrb[40].mxu0 }
 0x357   :  { %v811_v0 = vpop.f32.mrb[41].mxu0  ;;  %1449 = vmatmul.mubr.f32.gmra.mrb[146].mxu0 %v6372_v30  ;;  %v3869_v30 = vld [vmem:[%s6223_s1 + $0x78] sm:$0xff] }
 0x358   :  { %1453 = vmatprep.mubr.f32.mxu0 %v6373_v31  ;;  %v3870_v31 = vld [vmem:[%s6223_s1 + $0x80] sm:$0xff]  ;;  %v3875_v0 = vld [vmem:[%s6223_s1 + $0xa8] sm:$0xff] }
 0x35a   :  { %v4952_v35 = vpop.f32.mrb[42].mxu0 }
 0x35b   :  { %v816_v36 = vpop.f32.mrb[43].mxu0  ;;  %1454 = vmatmul.mubr.f32.gmra.mrb[148].mxu0 %v6374_v32 }
 0x35c   :  { %1458 = vmatprep.mubr.f32.mxu0 %v6375_v34  ;;  %v3876_v36 = vld [vmem:[%s6223_s1 + $0xb0] sm:$0xff] }
 0x35e   :  { %v4956_v37 = vpop.f32.mrb[44].mxu0 }
 0x35f   :  { %6382 = vst [vmem:[#allocation5_spill] sm:$0xff] %v4956_v37  ;;  %v821_v38 = vpop.f32.mrb[45].mxu0  ;;  %1459 = vmatmul.mubr.f32.gmra.mrb[150].mxu0 %v6383_v39  ;;  %v5554_v37 = vld [vmem:[%s6222_s0 + $0x1c0] sm:$0xff] }
 0x360   :  { %1463 = vmatprep.mubr.f32.mxu0 %v6377_v4  ;;  %v3871_v4 = vld [vmem:[%s6223_s1 + $0x88] sm:$0xff]  ;;  %6412 = vst [vmem:[#allocation36_spill] sm:$0xff] %v5554_v37 }
 0x362   :  { %v4960_v40 = vpop.f32.mrb[46].mxu0 }
 0x363   :  { %6384 = vst [vmem:[#allocation6_spill] sm:$0xff] %v4960_v40  ;;  %v826_v41 = vpop.f32.mrb[47].mxu0  ;;  %1464 = vmatmul.mubr.f32.gmra.mrb[152].mxu0 %v6378_v5  ;;  %v3872_v5 = vld [vmem:[%s6223_s1 + $0x90] sm:$0xff]  ;;  %v5548_v40 = vld [vmem:[%s6222_s0 + $0x1c8] sm:$0xff] }
 0x364   :  { %1468 = vmatprep.mubr.f32.mxu0 %v6379_v7  ;;  %v3877_v41 = vld [vmem:[%s6223_s1 + $0xb8] sm:$0xff]  ;;  %6411 = vst [vmem:[#allocation35_spill] sm:$0xff] %v5548_v40 }
 0x366   :  { %v4964_v42 = vpop.f32.mrb[48].mxu0 }
 0x367   :  { %6385 = vst [vmem:[#allocation7_spill] sm:$0xff] %v4964_v42  ;;  %v831_v43 = vpop.f32.mrb[49].mxu0  ;;  %1469 = vmatmul.mubr.f32.gmra.mrb[154].mxu0 %v6380_v28  ;;  %v3868_v28 = vld [vmem:[%s6223_s1 + $0x70] sm:$0xff] }
 0x368   :  { %1473 = vmatprep.mubr.f32.mxu0 %v4660_v51  ;;  %v3855_v51 = vld [vmem:[%s6223_s1 + $0x8] sm:$0xff]  ;;  %v3878_v43 = vld [vmem:[%s6223_s1 + $0xc0] sm:$0xff]  ;;  %v5542_v42 = vld [vmem:[%s6222_s0 + $0x1b0] sm:$0xff] }
 0x369   :  { %6410 = vst [vmem:[#allocation34_spill] sm:$0xff] %v5542_v42 }
 0x36a   :  { %v4968_v44 = vpop.f32.mrb[50].mxu0 }
 0x36b   :  { %6386 = vst [vmem:[#allocation8_spill] sm:$0xff] %v4968_v44  ;;  %v836_v45 = vpop.f32.mrb[51].mxu0  ;;  %1474 = vmatmul.mubr.f32.gmra.mrb[156].mxu0 %v4667_v52  ;;  %v3856_v52 = vld [vmem:[%s6223_s1 + $0x10] sm:$0xff]  ;;  %v5536_v44 = vld [vmem:[%s6222_s0 + $0x1b8] sm:$0xff] }
 0x36c   :  { %1478 = vmatprep.mubr.f32.mxu0 %v4672_v53  ;;  %6409 = vst [vmem:[#allocation33_spill] sm:$0xff] %v5536_v44 }
 0x36e   :  { %v4972_v46 = vpop.f32.mrb[52].mxu0 }
 0x36f   :  { %6387 = vst [vmem:[#allocation9_spill] sm:$0xff] %v4972_v46  ;;  %v841_v47 = vpop.f32.mrb[53].mxu0  ;;  %1479 = vmatmul.mubr.f32.gmra.mrb[158].mxu0 %v4679_v33  ;;  %v5530_v46 = vld [vmem:[%s6222_s0 + $0x1a0] sm:$0xff] }
 0x370   :  { %3493 = vmatprep.mubr.msk.f32.mxu0 %vm133_vm1, %v3854_v48  ;;  %v3879_v48 = vld [vmem:[%s6223_s1 + $0xc8] sm:$0xff] }
 0x372   :  { %v4979_v49 = vpop.f32.mrb[54].mxu0 }
 0x373   :  { %6388 = vst [vmem:[#allocation10_spill] sm:$0xff] %v4979_v49  ;;  %v846_v50 = vpop.f32.mrb[55].mxu0  ;;  %3494 = vmatmul.mubr.msk.f32.vlgmr.msra.gmra.mrb[160].mxu0 %vm133_vm1, %v3855_v51  ;;  %v5524_v49 = vld [vmem:[%s6222_s0 + $0x1a8] sm:$0xff] }
 0x374   :  { %3496 = vmatprep.mubr.msk.f32.mxu0 %vm133_vm1, %v3856_v52  ;;  %v3880_v50 = vld [vmem:[%s6223_s1 + $0xd0] sm:$0xff] }
 0x376   :  { %v4989_v33 = vpop.f32.mrb[56].mxu0 }
 0x377   :  { %6389 = vst [vmem:[#allocation11_spill] sm:$0xff] %v4989_v33  ;;  %v851_v53 = vpop.f32.mrb[57].mxu0  ;;  %3497 = vmatmul.mubr.msk.f32.gmra.mrb[162].mxu0 %vm133_vm1, %v3857_v3  ;;  %v3882_v3 = vld [vmem:[%s6223_s1 + $0xe0] sm:$0xff]  ;;  %v5518_v33 = vld [vmem:[%s6222_s0 + $0x190] sm:$0xff] }
 0x378   :  { %3499 = vmatprep.mubr.msk.f32.mxu0 %vm133_vm1, %v3858_v6  ;;  %v3881_v53 = vld [vmem:[%s6223_s1 + $0xd8] sm:$0xff] }
 0x37a   :  { %v4999_v8 = vpop.f32.mrb[58].mxu0 }
 0x37b   :  { %6390 = vst [vmem:[#allocation12_spill] sm:$0xff] %v4999_v8  ;;  %v856_v9 = vpop.f32.mrb[59].mxu0  ;;  %3500 = vmatmul.mubr.msk.f32.gmra.mrb[164].mxu0 %vm133_vm1, %v3859_v10  ;;  %v3883_v10 = vld [vmem:[%s6223_s1 + $0xe8] sm:$0xff]  ;;  %v5512_v8 = vld [vmem:[%s6222_s0 + $0x198] sm:$0xff] }
 0x37c   :  { %3502 = vmatprep.mubr.msk.f32.mxu0 %vm133_vm1, %v3860_v11  ;;  %v3884_v11 = vld [vmem:[%s6223_s1 + $0xf0] sm:$0xff] }
 0x37e   :  { %v5009_v12 = vpop.f32.mrb[60].mxu0 }
 0x37f   :  { %6391 = vst [vmem:[#allocation13_spill] sm:$0xff] %v5009_v12  ;;  %v861_v13 = vpop.f32.mrb[61].mxu0  ;;  %3503 = vmatmul.mubr.msk.f32.gmra.mrb[166].mxu0 %vm133_vm1, %v3861_v14  ;;  %v5506_v12 = vld [vmem:[%s6222_s0 + $0x180] sm:$0xff] }
 0x380   :  { %3505 = vmatprep.mubr.msk.f32.mxu0 %vm133_vm1, %v3862_v16  ;;  %v3885_v16 = vld [vmem:[%s6223_s1 + $0xf8] sm:$0xff]  ;;  %s3989_s1 = smov [#allocation2]  }
 0x381   :  { %s3163_s15 = sshll.u32 %s3989_s1, 4  ;;  %s3164_s15 = int_to_ptr.vmem [resolvable:$true] %s3163_s15 }
 0x382   :  { %v5019_v17 = vpop.f32.mrb[62].mxu0  ;;  %p3966_p1 = scmp.lt.s32.totalorder %s3164_s15, %s3164_s15 }
 0x383   :  { %6392 = vst [vmem:[#allocation14_spill] sm:$0xff] %v5019_v17  ;;  %v866_v18 = vpop.f32.mrb[63].mxu0  ;;  %3506 = vmatmul.mubr.msk.f32.gmra.mrb[168].mxu0 %vm133_vm1, %v3863_v19  ;;  %v5500_v17 = vld [vmem:[%s6222_s0 + $0x188] sm:$0xff] }
 0x384   :  { %3508 = vmatprep.mubr.msk.f32.mxu0 %vm133_vm1, %v3864_v20 }
 0x386   :  { %v5029_v21 = vpop.f32.mrb[64].mxu0 }
 0x387   :  { %6393 = vst [vmem:[#allocation15_spill] sm:$0xff] %v5029_v21  ;;  %v871_v22 = vpop.f32.mrb[65].mxu0  ;;  %3509 = vmatmul.mubr.msk.f32.gmra.mrb[170].mxu0 %vm133_vm1, %v3865_v23  ;;  %v5494_v21 = vld [vmem:[%s6222_s0 + $0x170] sm:$0xff] }
 0x388   :  { %3511 = vmatprep.mubr.msk.f32.mxu0 %vm133_vm1, %v3866_v24 }
 0x38a   :  { %v5039_v25 = vpop.f32.mrb[66].mxu0 }
 0x38b   :  { %6394 = vst [vmem:[#allocation16_spill] sm:$0xff] %v5039_v25  ;;  %v876_v26 = vpop.f32.mrb[67].mxu0  ;;  %3512 = vmatmul.mubr.msk.f32.gmra.mrb[172].mxu0 %vm133_vm1, %v3867_v27  ;;  %v5488_v25 = vld [vmem:[%s6222_s0 + $0x178] sm:$0xff] }
 0x38c   :  { %3514 = vmatprep.mubr.msk.f32.mxu0 %vm133_vm1, %v3868_v28 }
 0x38e   :  { %v5049_v1 = vpop.f32.mrb[68].mxu0 }
 0x38f   :  { %6395 = vst [vmem:[#allocation17_spill] sm:$0xff] %v5049_v1  ;;  %v881_v29 = vpop.f32.mrb[69].mxu0  ;;  %3515 = vmatmul.mubr.msk.f32.gmra.mrb[174].mxu0 %vm133_vm1, %v3869_v30  ;;  %v5149_v30 = vld [vmem:[%s6225_s3 + $0x1] ss:$0 sm:$0xff] }
 0x390   :  { %3517 = vmatprep.mubr.msk.f32.mxu0 %vm133_vm1, %v3870_v31  ;;  %v5482_v1 = vld [vmem:[%s6222_s0 + $0x160] sm:$0xff] }
 0x392   :  { %v5059_v32 = vpop.f32.mrb[70].mxu0 }
 0x393   :  { %6396 = vst [vmem:[#allocation18_spill] sm:$0xff] %v5059_v32  ;;  %v886_v34 = vpop.f32.mrb[71].mxu0  ;;  %3518 = vmatmul.mubr.msk.f32.gmra.mrb[176].mxu0 %vm133_vm1, %v3871_v4  ;;  %v5476_v32 = vld [vmem:[%s6222_s0 + $0x168] sm:$0xff] }
 0x394   :  { %3520 = vmatprep.mubr.msk.f32.mxu0 %vm133_vm1, %v3872_v5 }
 0x396   :  { %v5069_v7 = vpop.f32.mrb[72].mxu0 }
 0x397   :  { %6397 = vst [vmem:[#allocation19_spill] sm:$0xff] %v5069_v7  ;;  %v891_v55 = vpop.f32.mrb[73].mxu0  ;;  %3521 = vmatmul.mubr.msk.f32.gmra.mrb[178].mxu0 %vm133_vm1, %v3873_v57  ;;  %v5470_v7 = vld [vmem:[%s6222_s0 + $0x150] sm:$0xff] }
 0x398   :  { %3523 = vmatprep.mubr.msk.f32.mxu0 %vm133_vm1, %v3874_v59 }
 0x39a   :  { %v5079_v60 = vpop.f32.mrb[74].mxu0 }
 0x39b   :  { %6398 = vst [vmem:[#allocation20_spill] sm:$0xff] %v5079_v60  ;;  %v896_v62 = vpop.f32.mrb[75].mxu0  ;;  %3524 = vmatmul.mubr.msk.f32.gmra.mrb[180].mxu0 %vm133_vm1, %v3875_v0  ;;  %v5464_v60 = vld [vmem:[%s6222_s0 + $0x158] sm:$0xff] }
 0x39c   :  { %3526 = vmatprep.mubr.msk.f32.mxu0 %vm133_vm1, %v3876_v36 }
 0x39e   :  { %v5089_v38 = vpop.f32.mrb[76].mxu0 }
 0x39f   :  { %6399 = vst [vmem:[#allocation21_spill] sm:$0xff] %v5089_v38  ;;  %v901_v39 = vpop.f32.mrb[77].mxu0  ;;  %3527 = vmatmul.mubr.msk.f32.gmra.mrb[182].mxu0 %vm133_vm1, %v3877_v41  ;;  %v5458_v38 = vld [vmem:[%s6222_s0 + $0x140] sm:$0xff] }
 0x3a0   :  { %3529 = vmatprep.mubr.msk.f32.mxu0 %vm133_vm1, %v3878_v43 }
 0x3a2   :  { %v5099_v45 = vpop.f32.mrb[78].mxu0 }
 0x3a3   :  { %6400 = vst [vmem:[#allocation22_spill] sm:$0xff] %v5099_v45  ;;  %v906_v47 = vpop.f32.mrb[79].mxu0  ;;  %3530 = vmatmul.mubr.msk.f32.gmra.mrb[184].mxu0 %vm133_vm1, %v3879_v48  ;;  %v5452_v45 = vld [vmem:[%s6222_s0 + $0x148] sm:$0xff] }
 0x3a4   :  { %3532 = vmatprep.mubr.msk.f32.mxu0 %vm133_vm1, %v3880_v50 }
 0x3a6   :  { %v5109_v51 = vpop.f32.mrb[80].mxu0 }
 0x3a7   :  { %6401 = vst [vmem:[#allocation23_spill] sm:$0xff] %v5109_v51  ;;  %v911_v52 = vpop.f32.mrb[81].mxu0  ;;  %3533 = vmatmul.mubr.msk.f32.gmra.mrb[186].mxu0 %vm133_vm1, %v3881_v53  ;;  %v5446_v51 = vld [vmem:[%s6222_s0 + $0x130] sm:$0xff] }
 0x3a8   :  { %3535 = vmatprep.mubr.msk.f32.mxu0 %vm133_vm1, %v3882_v3 }
 0x3aa   :  { %v5119_v6 = vpop.f32.mrb[82].mxu0 }
 0x3ab   :  { %6402 = vst [vmem:[#allocation24_spill] sm:$0xff] %v5119_v6  ;;  %v916_v9 = vpop.f32.mrb[83].mxu0  ;;  %3536 = vmatmul.mubr.msk.f32.gmra.mrb[188].mxu0 %vm133_vm1, %v3883_v10  ;;  %v5440_v6 = vld [vmem:[%s6222_s0 + $0x138] sm:$0xff] }
 0x3ac   :  { %3538 = vmatprep.mubr.msk.f32.mxu0 %vm133_vm1, %v3884_v11 }
 0x3ae   :  { %v5129_v13 = vpop.f32.mrb[84].mxu0 }
 0x3af   :  { %6403 = vst [vmem:[#allocation26_spill] sm:$0xff] %v5129_v13  ;;  %v921_v14 = vpop.f32.mrb[85].mxu0  ;;  %3539 = vmatmul.mubr.msk.f32.gmra.mrb[190].mxu0 %vm133_vm1, %v3885_v16  ;;  %v5434_v13 = vld [vmem:[%s6222_s0 + $0x120] sm:$0xff] }
 0x3b0   :  { %2375 = vmatprep.mubr.f32.mxu0 %v4885_v2 }
 0x3b2   :  { %v5136_v18 = vpop.f32.mrb[86].mxu0 }
 0x3b3   :  { %6404 = vst [vmem:[#allocation27_spill] sm:$0xff] %v5136_v18  ;;  %v926_v19 = vpop.f32.mrb[87].mxu0  ;;  %v5384_v18 = vld [vmem:[%s6222_s0 + $0xe0] sm:$0xff] }
 0x3b6   :  { %v5138_v20 = vpop.f32.mrb[88].mxu0 }
 0x3b7   :  { %6405 = vst [vmem:[#allocation28_spill] sm:$0xff] %v5138_v20  ;;  %v931_v22 = vpop.f32.mrb[89].mxu0 }
 0x3ba   :  { %v5140_v23 = vpop.f32.mrb[90].mxu0 }
 0x3bb   :  { %6406 = vst [vmem:[#allocation29_spill] sm:$0xff] %v5140_v23  ;;  %v936_v24 = vpop.f32.mrb[91].mxu0  ;;  %v5371_v23 = vld [vmem:[%s6222_s0 + $0xd0] sm:$0xff] }
 0x3be   :  { %v5142_v26 = vpop.f32.mrb[92].mxu0 }
 0x3bf   :  { %6407 = vst [vmem:[#allocation30_spill] sm:$0xff] %v5142_v26  ;;  %v941_v27 = vpop.f32.mrb[93].mxu0 }
 0x3c2   :  { %v5144_v28 = vpop.f32.mrb[94].mxu0 }
 0x3c3   :  { %6408 = vst [vmem:[#allocation31_spill] sm:$0xff] %v5144_v28  ;;  %v946_v29 = vpop.f32.mrb[95].mxu0  ;;  %v5358_v28 = vld [vmem:[%s6222_s0 + $0xc0] sm:$0xff] }
 0x3c6   :  { %v1325_v31 = vpop.f32.mrb[96].mxu0 }
 0x3c7   :  { %v1327_v34 = vpop.f32.mrb[97].mxu0  ;;  %v1326_v4 = vadd.f32 %v5149_v30, %v1325_v31 }
 0x3c9   :  { %v1484_v59 = vmax.f32 %v1326_v4, 0.0 }
 0x3ca   :  { %v1330_v5 = vpop.f32.mrb[98].mxu0 }
 0x3cb   :  { %v1331_v55 = vadd.f32 %v5149_v30, %v1330_v5  ;;  %v1332_v57 = vpop.f32.mrb[99].mxu0 }
 0x3cd   :  { %v1485_v62 = vmax.f32 %v1331_v55, 0.0 }
 0x3ce   :  { %v1335_v0 = vpop.f32.mrb[100].mxu0 }
 0x3cf   :  { %v3697_v36 = vpack.c.bf16 %v1485_v62, %v1484_v59  ;;  %v1337_v39 = vpop.f32.mrb[101].mxu0  ;;  %v1336_v41 = vadd.f32 %v5149_v30, %v1335_v0 }
 0x3d1   :  { %3698 = vmatpush1.bf16.msra.mxu1 %v3697_v36  ;;  %v1486_v50 = vmax.f32 %v1336_v41, 0.0 }
 0x3d2   :  { %v1340_v43 = vpop.f32.mrb[102].mxu0  ;;  %3699 = vmatprep.subr.bf16.mxu1 %v6348_v15 }
 0x3d3   :  { %v1341_v47 = vadd.f32 %v5149_v30, %v1340_v43  ;;  %v1342_v48 = vpop.f32.mrb[103].mxu0 }
 0x3d5   :  { %v1487_v52 = vmax.f32 %v1341_v47, 0.0 }
 0x3d6   :  { %v1345_v53 = vpop.f32.mrb[104].mxu0 }
 0x3d7   :  { %v3700_v3 = vpack.c.bf16 %v1487_v52, %v1486_v50  ;;  %v1347_v9 = vpop.f32.mrb[105].mxu0  ;;  %v1346_v10 = vadd.f32 %v5149_v30, %v1345_v53 }
 0x3d9   :  { %3701 = vmatpush1.bf16.msra.mxu1 %v3700_v3  ;;  %v1488_v19 = vmax.f32 %v1346_v10, 0.0 }
 0x3da   :  { %v1350_v11 = vpop.f32.mrb[106].mxu0  ;;  %3702 = vmatprep.subr.bf16.mxu1 %v6348_v15 }
 0x3db   :  { %v1351_v14 = vadd.f32 %v5149_v30, %v1350_v11  ;;  %v1352_v16 = vpop.f32.mrb[107].mxu0 }
 0x3dd   :  { %v1489_v22 = vmax.f32 %v1351_v14, 0.0 }
 0x3de   :  { %v1355_v24 = vpop.f32.mrb[108].mxu0 }
 0x3df   :  { %v3703_v27 = vpack.c.bf16 %v1489_v22, %v1488_v19  ;;  %v1357_v29 = vpop.f32.mrb[109].mxu0  ;;  %v1356_v31 = vadd.f32 %v5149_v30, %v1355_v24 }
 0x3e1   :  { %3704 = vmatpush1.bf16.msra.mxu1 %v3703_v27  ;;  %v1490_v55 = vmax.f32 %v1356_v31, 0.0 }
 0x3e2   :  { %v1360_v34 = vpop.f32.mrb[110].mxu0  ;;  %3705 = vmatprep.subr.bf16.mxu1 %v6348_v15 }
 0x3e3   :  { %v1361_v4 = vadd.f32 %v5149_v30, %v1360_v34  ;;  %v1362_v5 = vpop.f32.mrb[111].mxu0 }
 0x3e5   :  { %v1491_v57 = vmax.f32 %v1361_v4, 0.0 }
 0x3e6   :  { %v1365_v59 = vpop.f32.mrb[112].mxu0 }
 0x3e7   :  { %v3706_v62 = vpack.c.bf16 %v1491_v57, %v1490_v55  ;;  %v1367_v0 = vpop.f32.mrb[113].mxu0  ;;  %v1366_v36 = vadd.f32 %v5149_v30, %v1365_v59 }
 0x3e9   :  { %3707 = vmatpush1.bf16.msra.mxu1 %v3706_v62  ;;  %v1492_v47 = vmax.f32 %v1366_v36, 0.0 }
 0x3ea   :  { %v1370_v39 = vpop.f32.mrb[114].mxu0  ;;  %3708 = vmatprep.subr.bf16.mxu1 %v6348_v15 }
 0x3eb   :  { %v1371_v41 = vadd.f32 %v5149_v30, %v1370_v39  ;;  %v1372_v43 = vpop.f32.mrb[115].mxu0 }
 0x3ed   :  { %v1493_v48 = vmax.f32 %v1371_v41, 0.0 }
 0x3ee   :  { %v1375_v50 = vpop.f32.mrb[116].mxu0 }
 0x3ef   :  { %v3709_v52 = vpack.c.bf16 %v1493_v48, %v1492_v47  ;;  %v1377_v53 = vpop.f32.mrb[117].mxu0  ;;  %v1376_v3 = vadd.f32 %v5149_v30, %v1375_v50 }
 0x3f1   :  { %3710 = vmatpush1.bf16.msra.mxu1 %v3709_v52  ;;  %v1494_v14 = vmax.f32 %v1376_v3, 0.0 }
 0x3f2   :  { %v1380_v9 = vpop.f32.mrb[118].mxu0  ;;  %3711 = vmatprep.subr.bf16.mxu1 %v6348_v15 }
 0x3f3   :  { %v1381_v10 = vadd.f32 %v5149_v30, %v1380_v9  ;;  %v1382_v11 = vpop.f32.mrb[119].mxu0 }
 0x3f5   :  { %v1495_v16 = vmax.f32 %v1381_v10, 0.0 }
 0x3f6   :  { %v1385_v19 = vpop.f32.mrb[120].mxu0 }
 0x3f7   :  { %v3712_v22 = vpack.c.bf16 %v1495_v16, %v1494_v14  ;;  %v1387_v24 = vpop.f32.mrb[121].mxu0  ;;  %v1386_v27 = vadd.f32 %v5149_v30, %v1385_v19 }
 0x3f9   :  { %3713 = vmatpush1.bf16.msra.mxu1 %v3712_v22  ;;  %v1496_v4 = vmax.f32 %v1386_v27, 0.0 }
 0x3fa   :  { %v1390_v29 = vpop.f32.mrb[122].mxu0  ;;  %3714 = vmatprep.subr.bf16.mxu1 %v6348_v15 }
 0x3fb   :  { %v1391_v31 = vadd.f32 %v5149_v30, %v1390_v29  ;;  %v1392_v34 = vpop.f32.mrb[123].mxu0 }
 0x3fd   :  { %v1497_v5 = vmax.f32 %v1391_v31, 0.0 }
 0x3fe   :  { %v1395_v55 = vpop.f32.mrb[124].mxu0 }
 0x3ff   :  { %v3715_v57 = vpack.c.bf16 %v1497_v5, %v1496_v4  ;;  %v1397_v59 = vpop.f32.mrb[125].mxu0  ;;  %v1396_v62 = vadd.f32 %v5149_v30, %v1395_v55 }
 0x401   :  { %3716 = vmatpush1.bf16.msra.mxu1 %v3715_v57  ;;  %v1498_v41 = vmax.f32 %v1396_v62, 0.0 }
 0x402   :  { %v1400_v0 = vpop.f32.mrb[126].mxu0  ;;  %3717 = vmatprep.subr.bf16.mxu1 %v6348_v15 }
 0x403   :  { %v1401_v36 = vadd.f32 %v5149_v30, %v1400_v0  ;;  %v1402_v39 = vpop.f32.mrb[127].mxu0 }
 0x405   :  { %v1499_v43 = vmax.f32 %v1401_v36, 0.0 }
 0x406   :  { %v1405_v47 = vpop.f32.mrb[128].mxu0 }
 0x407   :  { %v3718_v48 = vpack.c.bf16 %v1499_v43, %v1498_v41  ;;  %v1407_v50 = vpop.f32.mrb[129].mxu0  ;;  %v1406_v52 = vadd.f32 %v5149_v30, %v1405_v47 }
 0x409   :  { %3719 = vmatpush1.bf16.msra.mxu1 %v3718_v48  ;;  %v1500_v10 = vmax.f32 %v1406_v52, 0.0 }
 0x40a   :  { %v1410_v53 = vpop.f32.mrb[130].mxu0  ;;  %3720 = vmatprep.subr.bf16.mxu1 %v6348_v15 }
 0x40b   :  { %v1411_v3 = vadd.f32 %v5149_v30, %v1410_v53  ;;  %v1412_v9 = vpop.f32.mrb[131].mxu0 }
 0x40d   :  { %v1501_v11 = vmax.f32 %v1411_v3, 0.0 }
 0x40e   :  { %v1415_v14 = vpop.f32.mrb[132].mxu0 }
 0x40f   :  { %v3721_v16 = vpack.c.bf16 %v1501_v11, %v1500_v10  ;;  %v1417_v19 = vpop.f32.mrb[133].mxu0  ;;  %v1416_v22 = vadd.f32 %v5149_v30, %v1415_v14 }
 0x411   :  { %3722 = vmatpush1.bf16.msra.mxu1 %v3721_v16  ;;  %v1502_v31 = vmax.f32 %v1416_v22, 0.0 }
 0x412   :  { %v1420_v24 = vpop.f32.mrb[134].mxu0  ;;  %3723 = vmatprep.subr.bf16.mxu1 %v6348_v15 }
 0x413   :  { %v1421_v27 = vadd.f32 %v5149_v30, %v1420_v24  ;;  %v1422_v29 = vpop.f32.mrb[135].mxu0 }
 0x415   :  { %v1503_v34 = vmax.f32 %v1421_v27, 0.0 }
 0x416   :  { %v1425_v4 = vpop.f32.mrb[136].mxu0 }
 0x417   :  { %v3724_v5 = vpack.c.bf16 %v1503_v34, %v1502_v31  ;;  %v1427_v55 = vpop.f32.mrb[137].mxu0  ;;  %v1426_v57 = vadd.f32 %v5149_v30, %v1425_v4 }
 0x419   :  { %3725 = vmatpush1.bf16.msra.mxu1 %v3724_v5  ;;  %v1504_v36 = vmax.f32 %v1426_v57, 0.0 }
 0x41a   :  { %v1430_v59 = vpop.f32.mrb[138].mxu0  ;;  %3726 = vmatprep.subr.bf16.mxu1 %v6348_v15 }
 0x41b   :  { %v1431_v62 = vadd.f32 %v5149_v30, %v1430_v59  ;;  %v1432_v0 = vpop.f32.mrb[139].mxu0 }
 0x41d   :  { %v1505_v39 = vmax.f32 %v1431_v62, 0.0 }
 0x41e   :  { %v1435_v41 = vpop.f32.mrb[140].mxu0 }
 0x41f   :  { %v3727_v43 = vpack.c.bf16 %v1505_v39, %v1504_v36  ;;  %v1437_v47 = vpop.f32.mrb[141].mxu0  ;;  %v1436_v48 = vadd.f32 %v5149_v30, %v1435_v41 }
 0x421   :  { %3728 = vmatpush1.bf16.msra.mxu1 %v3727_v43  ;;  %v1506_v3 = vmax.f32 %v1436_v48, 0.0 }
 0x422   :  { %v1440_v50 = vpop.f32.mrb[142].mxu0  ;;  %3729 = vmatprep.subr.bf16.mxu1 %v6348_v15 }
 0x423   :  { %v1441_v52 = vadd.f32 %v5149_v30, %v1440_v50  ;;  %v1442_v53 = vpop.f32.mrb[143].mxu0 }
 0x425   :  { %v1507_v9 = vmax.f32 %v1441_v52, 0.0 }
 0x426   :  { %v1445_v10 = vpop.f32.mrb[144].mxu0 }
 0x427   :  { %v3730_v11 = vpack.c.bf16 %v1507_v9, %v1506_v3  ;;  %v1447_v14 = vpop.f32.mrb[145].mxu0  ;;  %v1446_v16 = vadd.f32 %v5149_v30, %v1445_v10 }
 0x429   :  { %3731 = vmatpush1.bf16.msra.mxu1 %v3730_v11  ;;  %v1508_v27 = vmax.f32 %v1446_v16, 0.0 }
 0x42a   :  { %v1450_v19 = vpop.f32.mrb[146].mxu0  ;;  %3732 = vmatprep.subr.bf16.mxu1 %v6348_v15 }
 0x42b   :  { %v1451_v22 = vadd.f32 %v5149_v30, %v1450_v19  ;;  %v1452_v24 = vpop.f32.mrb[147].mxu0 }
 0x42d   :  { %v1509_v29 = vmax.f32 %v1451_v22, 0.0 }
 0x42e   :  { %v1455_v31 = vpop.f32.mrb[148].mxu0 }
 0x42f   :  { %v3733_v34 = vpack.c.bf16 %v1509_v29, %v1508_v27  ;;  %v1457_v4 = vpop.f32.mrb[149].mxu0  ;;  %v1456_v5 = vadd.f32 %v5149_v30, %v1455_v31 }
 0x431   :  { %3734 = vmatpush1.bf16.msra.mxu1 %v3733_v34  ;;  %v1510_v62 = vmax.f32 %v1456_v5, 0.0 }
 0x432   :  { %v1460_v55 = vpop.f32.mrb[150].mxu0  ;;  %3735 = vmatprep.subr.bf16.mxu1 %v6348_v15 }
 0x433   :  { %v1461_v57 = vadd.f32 %v5149_v30, %v1460_v55  ;;  %v1462_v59 = vpop.f32.mrb[151].mxu0  ;;  %v5202_v55 = vld [vmem:[%s6222_s0] sm:$0xff] }
 0x435   :  { %v1511_v0 = vmax.f32 %v1461_v57, 0.0  ;;  %v5208_v57 = vld [vmem:[%s6222_s0 + $0x18] sm:$0xff] }
 0x436   :  { %v1465_v36 = vpop.f32.mrb[152].mxu0 }
 0x437   :  { %v3736_v39 = vpack.c.bf16 %v1511_v0, %v1510_v62  ;;  %v1467_v41 = vpop.f32.mrb[153].mxu0  ;;  %v1466_v43 = vadd.f32 %v5149_v30, %v1465_v36  ;;  %v5215_v0 = vld [vmem:[%s6222_s0 + $0x10] sm:$0xff] }
 0x439   :  { %3737 = vmatpush1.bf16.msra.mxu1 %v3736_v39  ;;  %v1512_v52 = vmax.f32 %v1466_v43, 0.0  ;;  %v5221_v39 = vld [vmem:[%s6222_s0 + $0x28] sm:$0xff] }
 0x43a   :  { %v1470_v47 = vpop.f32.mrb[154].mxu0  ;;  %3738 = vmatprep.subr.bf16.mxu1 %v6348_v15 }
 0x43b   :  { %v1471_v48 = vadd.f32 %v5149_v30, %v1470_v47  ;;  %v1472_v50 = vpop.f32.mrb[155].mxu0  ;;  %v5228_v47 = vld [vmem:[%s6222_s0 + $0x20] sm:$0xff] }
 0x43c   :  { %v5234_v50 = vld [vmem:[%s6222_s0 + $0x38] sm:$0xff] }
 0x43d   :  { %v1513_v53 = vmax.f32 %v1471_v48, 0.0 }
 0x43e   :  { %v1475_v3 = vpop.f32.mrb[156].mxu0 }
 0x43f   :  { %v3739_v9 = vpack.c.bf16 %v1513_v53, %v1512_v52  ;;  %v1477_v10 = vpop.f32.mrb[157].mxu0  ;;  %v1476_v11 = vadd.f32 %v5149_v30, %v1475_v3  ;;  %v5241_v3 = vld [vmem:[%s6222_s0 + $0x30] sm:$0xff] }
 0x440   :  { %v5247_v10 = vld [vmem:[%s6222_s0 + $0x48] sm:$0xff] }
 0x441   :  { %3740 = vmatpush1.bf16.msra.mxu1 %v3739_v9  ;;  %v1514_v22 = vmax.f32 %v1476_v11, 0.0 }
 0x442   :  { %v1480_v14 = vpop.f32.mrb[158].mxu0  ;;  %3741 = vmatprep.subr.bf16.mxu1 %v6348_v15 }
 0x443   :  { %v1481_v16 = vadd.f32 %v5149_v30, %v1480_v14  ;;  %v1482_v19 = vpop.f32.mrb[159].mxu0 }
 0x445   :  { %v1515_v24 = vmax.f32 %v1481_v16, 0.0  ;;  %v5254_v16 = vld [vmem:[%s6222_s0 + $0x40] sm:$0xff] }
 0x446   :  { %v3495_v27 = vpop.f32.mrb[160].mxu0 }
 0x447   :  { %v3742_v29 = vpack.c.bf16 %v1515_v24, %v1514_v22  ;;  %v1887_v31 = vpop.f32.mrb[161].mxu0  ;;  %v5260_v22 = vld [vmem:[%s6222_s0 + $0x58] sm:$0xff] }
 0x448   :  { %v3745_v34 = vpack.c.bf16 %v3495_v27, %v1887_v31 }
 0x449   :  { %3743 = vmatpush1.bf16.msra.mxu1 %v3742_v29  ;;  %v5267_v29 = vld [vmem:[%s6222_s0 + $0x50] sm:$0xff] }
 0x44a   :  { %3744 = vmatprep.subr.bf16.mxu1 %v6348_v15  ;;  %v3498_v4 = vpop.f32.mrb[162].mxu0 }
 0x44b   :  { %v1897_v5 = vpop.f32.mrb[163].mxu0 }
 0x44c   :  { %1581 = vmatmul.mubr.f32.vlgmr.msra.gmra.mrb[96].mxu1 %v5202_v55  ;;  %v3748_v30 = vpack.c.bf16 %v3498_v4, %v1897_v5 }
 0x44d   :  { %3746 = vmatpush1.bf16.msra.mxu1 %v3745_v34  ;;  %1585 = vmatprep.mubr.f32.mxu1 %v5208_v57  ;;  %v5273_v34 = vld [vmem:[%s6222_s0 + $0x68] sm:$0xff] }
 0x44e   :  { %3747 = vmatprep.subr.bf16.mxu1 %v6348_v15  ;;  %v3501_v59 = vpop.f32.mrb[164].mxu0 }
 0x44f   :  { %v1907_v62 = vpop.f32.mrb[165].mxu0 }
 0x450   :  { %1586 = vmatmul.mubr.f32.gmra.mrb[98].mxu1 %v5215_v0  ;;  %v3751_v36 = vpack.c.bf16 %v3501_v59, %v1907_v62  ;;  %v5286_v62 = vld [vmem:[%s6222_s0 + $0x78] sm:$0xff] }
 0x451   :  { %1590 = vmatprep.mubr.f32.mxu1 %v5221_v39  ;;  %3749 = vmatpush1.bf16.msra.mxu1 %v3748_v30  ;;  %v5280_v30 = vld [vmem:[%s6222_s0 + $0x60] sm:$0xff] }
 0x452   :  { %3750 = vmatprep.subr.bf16.mxu1 %v6348_v15  ;;  %v3504_v41 = vpop.f32.mrb[166].mxu0 }
 0x453   :  { %v1917_v43 = vpop.f32.mrb[167].mxu0 }
 0x454   :  { %1591 = vmatmul.mubr.f32.gmra.mrb[100].mxu1 %v5228_v47  ;;  %v3754_v48 = vpack.c.bf16 %v3504_v41, %v1917_v43  ;;  %v5293_v43 = vld [vmem:[%s6222_s0 + $0x70] sm:$0xff] }
 0x455   :  { %1595 = vmatprep.mubr.f32.mxu1 %v5234_v50  ;;  %3752 = vmatpush1.bf16.msra.mxu1 %v3751_v36 }
 0x456   :  { %3753 = vmatprep.subr.bf16.mxu1 %v6348_v15  ;;  %v3507_v52 = vpop.f32.mrb[168].mxu0 }
 0x457   :  { %v1927_v53 = vpop.f32.mrb[169].mxu0 }
 0x458   :  { %1596 = vmatmul.mubr.f32.gmra.mrb[102].mxu1 %v5241_v3  ;;  %v3757_v9 = vpack.c.bf16 %v3507_v52, %v1927_v53  ;;  %v5299_v52 = vld [vmem:[%s6222_s0 + $0x88] sm:$0xff] }
 0x459   :  { %1600 = vmatprep.mubr.f32.mxu1 %v5247_v10  ;;  %3755 = vmatpush1.bf16.msra.mxu1 %v3754_v48 }
 0x45a   :  { %3756 = vmatprep.subr.bf16.mxu1 %v6348_v15  ;;  %v3510_v11 = vpop.f32.mrb[170].mxu0 }
 0x45b   :  { %v1937_v14 = vpop.f32.mrb[171].mxu0 }
 0x45c   :  { %1601 = vmatmul.mubr.f32.gmra.mrb[104].mxu1 %v5254_v16  ;;  %v3760_v19 = vpack.c.bf16 %v3510_v11, %v1937_v14  ;;  %v5306_v11 = vld [vmem:[%s6222_s0 + $0x80] sm:$0xff] }
 0x45d   :  { %1605 = vmatprep.mubr.f32.mxu1 %v5260_v22  ;;  %3758 = vmatpush1.bf16.msra.mxu1 %v3757_v9 }
 0x45e   :  { %3759 = vmatprep.subr.bf16.mxu1 %v6348_v15  ;;  %v3513_v24 = vpop.f32.mrb[172].mxu0 }
 0x45f   :  { %v1947_v27 = vpop.f32.mrb[173].mxu0 }
 0x460   :  { %1606 = vmatmul.mubr.f32.gmra.mrb[106].mxu1 %v5267_v29  ;;  %v3763_v31 = vpack.c.bf16 %v3513_v24, %v1947_v27 }
 0x461   :  { %1610 = vmatprep.mubr.f32.mxu1 %v5273_v34  ;;  %3761 = vmatpush1.bf16.msra.mxu1 %v3760_v19  ;;  %v5312_v19 = vld [vmem:[%s6222_s0 + $0x98] sm:$0xff] }
 0x462   :  { %3762 = vmatprep.subr.bf16.mxu1 %v6348_v15  ;;  %v3516_v4 = vpop.f32.mrb[174].mxu0 }
 0x463   :  { %v1957_v5 = vpop.f32.mrb[175].mxu0 }
 0x464   :  { %1611 = vmatmul.mubr.f32.gmra.mrb[108].mxu1 %v5280_v30  ;;  %v3766_v59 = vpack.c.bf16 %v3516_v4, %v1957_v5  ;;  %v5325_v5 = vld [vmem:[%s6222_s0 + $0xa8] sm:$0xff] }
 0x465   :  { %1615 = vmatprep.mubr.f32.mxu1 %v5286_v62  ;;  %3764 = vmatpush1.bf16.msra.mxu1 %v3763_v31  ;;  %v5319_v31 = vld [vmem:[%s6222_s0 + $0x90] sm:$0xff] }
 0x466   :  { %3765 = vmatprep.subr.bf16.mxu1 %v6348_v15  ;;  %v3519_v36 = vpop.f32.mrb[176].mxu0 }
 0x467   :  { %v1967_v41 = vpop.f32.mrb[177].mxu0 }
 0x468   :  { %1616 = vmatmul.mubr.f32.gmra.mrb[110].mxu1 %v5293_v43  ;;  %v3769_v48 = vpack.c.bf16 %v3519_v36, %v1967_v41  ;;  %v5332_v41 = vld [vmem:[%s6222_s0 + $0xa0] sm:$0xff] }
 0x469   :  { %1620 = vmatprep.mubr.f32.mxu1 %v5299_v52  ;;  %3767 = vmatpush1.bf16.msra.mxu1 %v3766_v59 }
 0x46a   :  { %3768 = vmatprep.subr.bf16.mxu1 %v6348_v15  ;;  %v3522_v53 = vpop.f32.mrb[178].mxu0 }
 0x46b   :  { %v1977_v9 = vpop.f32.mrb[179].mxu0 }
 0x46c   :  { %1621 = vmatmul.mubr.f32.gmra.mrb[112].mxu1 %v5306_v11  ;;  %v3772_v14 = vpack.c.bf16 %v3522_v53, %v1977_v9  ;;  %v5338_v53 = vld [vmem:[%s6222_s0 + $0xb8] sm:$0xff] }
 0x46d   :  { %1625 = vmatprep.mubr.f32.mxu1 %v5312_v19  ;;  %3770 = vmatpush1.bf16.msra.mxu1 %v3769_v48 }
 0x46e   :  { %3771 = vmatprep.subr.bf16.mxu1 %v6348_v15  ;;  %v3525_v24 = vpop.f32.mrb[180].mxu0 }
 0x46f   :  { %v1987_v27 = vpop.f32.mrb[181].mxu0 }
 0x470   :  { %1626 = vmatmul.mubr.f32.gmra.mrb[114].mxu1 %v5319_v31  ;;  %v3775_v4 = vpack.c.bf16 %v3525_v24, %v1987_v27  ;;  %v5345_v24 = vld [vmem:[%s6222_s0 + $0xb0] sm:$0xff] }
 0x471   :  { %1630 = vmatprep.mubr.f32.mxu1 %v5325_v5  ;;  %3773 = vmatpush1.bf16.msra.mxu1 %v3772_v14 }
 0x472   :  { %3774 = vmatprep.subr.bf16.mxu1 %v6348_v15  ;;  %v3528_v59 = vpop.f32.mrb[182].mxu0 }
 0x473   :  { %v1997_v36 = vpop.f32.mrb[183].mxu0 }
 0x474   :  { %1631 = vmatmul.mubr.f32.gmra.mrb[116].mxu1 %v5332_v41  ;;  %v3778_v48 = vpack.c.bf16 %v3528_v59, %v1997_v36  ;;  %v5351_v59 = vld [vmem:[%s6222_s0 + $0xc8] sm:$0xff] }
 0x475   :  { %1635 = vmatprep.mubr.f32.mxu1 %v5338_v53  ;;  %3776 = vmatpush1.bf16.msra.mxu1 %v3775_v4 }
 0x476   :  { %3777 = vmatprep.subr.bf16.mxu1 %v6348_v15  ;;  %v3531_v9 = vpop.f32.mrb[184].mxu0 }
 0x477   :  { %v2007_v14 = vpop.f32.mrb[185].mxu0 }
 0x478   :  { %1636 = vmatmul.mubr.f32.gmra.mrb[118].mxu1 %v5345_v24  ;;  %v3781_v27 = vpack.c.bf16 %v3531_v9, %v2007_v14  ;;  %v5364_v14 = vld [vmem:[%s6222_s0 + $0xd8] sm:$0xff] }
 0x479   :  { %1640 = vmatprep.mubr.f32.mxu1 %v5351_v59  ;;  %3779 = vmatpush1.bf16.msra.mxu1 %v3778_v48 }
 0x47a   :  { %3780 = vmatprep.subr.bf16.mxu1 %v6348_v15  ;;  %v3534_v4 = vpop.f32.mrb[186].mxu0 }
 0x47b   :  { %v2017_v36 = vpop.f32.mrb[187].mxu0 }
 0x47c   :  { %1641 = vmatmul.mubr.f32.gmra.mrb[120].mxu1 %v5358_v28  ;;  %v3784_v9 = vpack.c.bf16 %v3534_v4, %v2017_v36  ;;  %v5377_v36 = vld [vmem:[%s6222_s0 + $0xe8] sm:$0xff] }
 0x47d   :  { %1645 = vmatprep.mubr.f32.mxu1 %v5364_v14  ;;  %3782 = vmatpush1.bf16.msra.mxu1 %v3781_v27 }
 0x47e   :  { %3783 = vmatprep.subr.bf16.mxu1 %v6348_v15  ;;  %v3537_v48 = vpop.f32.mrb[188].mxu0 }
 0x47f   :  { %v2027_v26 = vpop.f32.mrb[189].mxu0 }
 0x480   :  { %1646 = vmatmul.mubr.f32.gmra.mrb[122].mxu1 %v5371_v23  ;;  %v3787_v4 = vpack.c.bf16 %v3537_v48, %v2027_v26  ;;  %v5390_v48 = vld [vmem:[%s6222_s0 + $0xf8] sm:$0xff] }
 0x481   :  { %1650 = vmatprep.mubr.f32.mxu1 %v5377_v36  ;;  %3785 = vmatpush1.bf16.msra.mxu1 %v3784_v9  ;;  %v5397_v9 = vld [vmem:[%s6222_s0 + $0xf0] sm:$0xff] }
 0x482   :  { %3786 = vmatprep.subr.bf16.mxu1 %v6348_v15  ;;  %v3540_v27 = vpop.f32.mrb[190].mxu0 }
 0x483   :  { %v2037_v20 = vpop.f32.mrb[191].mxu0 }
 0x484   :  { %1651 = vmatmul.mubr.f32.gmra.mrb[124].mxu1 %v5384_v18  ;;  %v3790_v26 = vpack.c.bf16 %v3540_v27, %v2037_v20  ;;  %v5403_v20 = vld [vmem:[%s6222_s0 + $0x108] sm:$0xff]  ;;  %v5416_v27 = vld [vmem:[%s6222_s0 + $0x118] sm:$0xff] }
 0x485   :  { %1655 = vmatprep.mubr.f32.mxu1 %v5390_v48  ;;  %3788 = vmatpush1.bf16.msra.mxu1 %v3787_v4  ;;  %v5410_v4 = vld [vmem:[%s6222_s0 + $0x100] sm:$0xff] }
 0x486   :  { %3789 = vmatprep.subr.bf16.mxu1 %v6348_v15 }
 0x488   :  { %1656 = vmatmul.mubr.f32.gmra.mrb[126].mxu1 %v5397_v9 }
 0x489   :  { %1660 = vmatprep.mubr.f32.mxu1 %v5403_v20  ;;  %3791 = vmatpush1.bf16.msra.mxu1 %v3790_v26  ;;  %v5422_v26 = vld [vmem:[%s6222_s0 + $0x110] sm:$0xff] }
 0x48a   :  { %3840 = vmatprep.subr.bf16.mxu1 %v6348_v15  ;;  %v5428_v15 = vld [vmem:[%s6222_s0 + $0x128] sm:$0xff] }
 0x48c   :  { %1661 = vmatmul.mubr.f32.gmra.mrb[128].mxu1 %v5410_v4 }
 0x48d   :  { %1665 = vmatprep.mubr.f32.mxu1 %v5416_v27 }
 0x490   :  { %1666 = vmatmul.mubr.f32.gmra.mrb[130].mxu1 %v5422_v26 }
 0x491   :  { %1670 = vmatprep.mubr.f32.mxu1 %v5428_v15 }
 0x494   :  { %1671 = vmatmul.mubr.f32.gmra.mrb[132].mxu1 %v5434_v13 }
 0x495   :  { %1675 = vmatprep.mubr.f32.mxu1 %v5440_v6 }
 0x498   :  { %1676 = vmatmul.mubr.f32.gmra.mrb[134].mxu1 %v5446_v51 }
 0x499   :  { %1680 = vmatprep.mubr.f32.mxu1 %v5452_v45 }
 0x49c   :  { %1681 = vmatmul.mubr.f32.gmra.mrb[136].mxu1 %v5458_v38 }
 0x49d   :  { %1685 = vmatprep.mubr.f32.mxu1 %v5464_v60 }
 0x4a0   :  { %1686 = vmatmul.mubr.f32.gmra.mrb[138].mxu1 %v5470_v7 }
 0x4a1   :  { %1690 = vmatprep.mubr.f32.mxu1 %v5476_v32 }
 0x4a4   :  { %1691 = vmatmul.mubr.f32.gmra.mrb[140].mxu1 %v5482_v1 }
 0x4a5   :  { %1695 = vmatprep.mubr.f32.mxu1 %v5488_v25 }
 0x4a8   :  { %1696 = vmatmul.mubr.f32.gmra.mrb[142].mxu1 %v5494_v21 }
 0x4a9   :  { %1700 = vmatprep.mubr.f32.mxu1 %v5500_v17 }
 0x4ac   :  { %1701 = vmatmul.mubr.f32.gmra.mrb[144].mxu1 %v5506_v12 }
 0x4ad   :  { %1705 = vmatprep.mubr.f32.mxu1 %v5512_v8 }
 0x4b0   :  { %1706 = vmatmul.mubr.f32.gmra.mrb[146].mxu1 %v5518_v33 }
 0x4b1   :  { %1710 = vmatprep.mubr.f32.mxu1 %v5524_v49 }
 0x4b4   :  { %1711 = vmatmul.mubr.f32.gmra.mrb[148].mxu1 %v5530_v46 }
 0x4b5   :  { %1715 = vmatprep.mubr.f32.mxu1 %v5536_v44  ;;  %v5560_v44 = vld [vmem:[%s6222_s0 + $0x1d8] sm:$0xff] }
 0x4b6   :  { %6413 = vst [vmem:[#allocation25_spill] sm:$0xff] %v5560_v44 }
 0x4b8   :  { %1716 = vmatmul.mubr.f32.gmra.mrb[150].mxu1 %v5542_v42  ;;  %v5566_v42 = vld [vmem:[%s6222_s0 + $0x1d0] sm:$0xff] }
 0x4b9   :  { %1720 = vmatprep.mubr.f32.mxu1 %v5548_v40  ;;  %6414 = vst [vmem:[#allocation32_spill] sm:$0xff] %v5566_v42  ;;  %v5572_v40 = vld [vmem:[%s6222_s0 + $0x1e8] sm:$0xff] }
 0x4ba   :  { %6415 = vst [vmem:[#allocation37_spill] sm:$0xff] %v5572_v40 }
 0x4bc   :  { %1721 = vmatmul.mubr.f32.gmra.mrb[152].mxu1 %v5554_v37  ;;  %v5578_v37 = vld [vmem:[%s6222_s0 + $0x1e0] sm:$0xff] }
 0x4bd   :  { %1725 = vmatprep.mubr.f32.mxu1 %v5560_v44  ;;  %6416 = vst [vmem:[#allocation38_spill] sm:$0xff] %v5578_v37  ;;  %v5584_v44 = vld [vmem:[%s6222_s0 + $0x1f8] sm:$0xff] }
 0x4be   :  { %6417 = vst [vmem:[#allocation39_spill] sm:$0xff] %v5584_v44 }
 0x4c0   :  { %1726 = vmatmul.mubr.f32.gmra.mrb[154].mxu1 %v5566_v42  ;;  %v5590_v42 = vld [vmem:[%s6222_s0 + $0x1f0] sm:$0xff] }
 0x4c1   :  { %1730 = vmatprep.mubr.f32.mxu1 %v5572_v40  ;;  %6418 = vst [vmem:[#allocation40_spill] sm:$0xff] %v5590_v42 }
 0x4c4   :  { %1731 = vmatmul.mubr.f32.gmra.mrb[156].mxu1 %v5578_v37 }
 0x4c5   :  { %1735 = vmatprep.mubr.f32.mxu1 %v5584_v44 }
 0x4c8   :  { %1736 = vmatmul.mubr.f32.gmra.mrb[158].mxu1 %v5590_v42 }
 0x4c9   :  { %2118 = vmatprep.mubr.f32.mxu1 %v4885_v2  ;;  %v5638_v2 = vld [vmem:[%s6226_s4] ss:$0 sm:$0xff] }
 0x4cc   :  { %2119 = vmatmul.mubr.f32.vlgmr.msra.gmra.mrb[160].mxu1 %v5202_v55  ;;  %v5643_v55 = vld [vmem:[%s6226_s4 + $0x1] ss:$0 sm:$0xff] }
 0x4cd   :  { %2123 = vmatprep.mubr.f32.mxu1 %v5208_v57 }
 0x4d0   :  { %2124 = vmatmul.mubr.f32.gmra.mrb[162].mxu1 %v5215_v0  ;;  %v955_v0 = vmul.f32 %v5638_v2, %v4932_v54 }
 0x4d1   :  { %2128 = vmatprep.mubr.f32.mxu1 %v5221_v39 }
 0x4d4   :  { %2129 = vmatmul.mubr.f32.gmra.mrb[164].mxu1 %v5228_v47 }
 0x4d5   :  { %2133 = vmatprep.mubr.f32.mxu1 %v5234_v50 }
 0x4d8   :  { %2134 = vmatmul.mubr.f32.gmra.mrb[166].mxu1 %v5241_v3 }
 0x4d9   :  { %2138 = vmatprep.mubr.f32.mxu1 %v5247_v10  ;;  %v956_v10 = vmul.f32 %v5638_v2, %v4936_v56 }
 0x4dc   :  { %2139 = vmatmul.mubr.f32.gmra.mrb[168].mxu1 %v5254_v16 }
 0x4dd   :  { %2143 = vmatprep.mubr.f32.mxu1 %v5260_v22 }
 0x4e0   :  { %2144 = vmatmul.mubr.f32.gmra.mrb[170].mxu1 %v5267_v29 }
 0x4e1   :  { %2148 = vmatprep.mubr.f32.mxu1 %v5273_v34  ;;  %v957_v34 = vmul.f32 %v5638_v2, %v4940_v58 }
 0x4e4   :  { %2149 = vmatmul.mubr.f32.gmra.mrb[172].mxu1 %v5280_v30 }
 0x4e5   :  { %2153 = vmatprep.mubr.f32.mxu1 %v5286_v62 }
 0x4e8   :  { %2154 = vmatmul.mubr.f32.gmra.mrb[174].mxu1 %v5293_v43 }
 0x4e9   :  { %2158 = vmatprep.mubr.f32.mxu1 %v5299_v52 }
 0x4ec   :  { %2159 = vmatmul.mubr.f32.gmra.mrb[176].mxu1 %v5306_v11 }
 0x4ed   :  { %2163 = vmatprep.mubr.f32.mxu1 %v5312_v19 }
 0x4f0   :  { %2164 = vmatmul.mubr.f32.gmra.mrb[178].mxu1 %v5319_v31 }
 0x4f1   :  { %2168 = vmatprep.mubr.f32.mxu1 %v5325_v5 }
 0x4f4   :  { %2169 = vmatmul.mubr.f32.gmra.mrb[180].mxu1 %v5332_v41 }
 0x4f5   :  { %2173 = vmatprep.mubr.f32.mxu1 %v5338_v53 }
 0x4f8   :  { %2174 = vmatmul.mubr.f32.gmra.mrb[182].mxu1 %v5345_v24 }
 0x4f9   :  { %2178 = vmatprep.mubr.f32.mxu1 %v5351_v59 }
 0x4fc   :  { %2179 = vmatmul.mubr.f32.gmra.mrb[184].mxu1 %v5358_v28 }
 0x4fd   :  { %2183 = vmatprep.mubr.f32.mxu1 %v5364_v14 }
 0x500   :  { %2184 = vmatmul.mubr.f32.gmra.mrb[186].mxu1 %v5371_v23 }
 0x501   :  { %2188 = vmatprep.mubr.f32.mxu1 %v5377_v36 }
 0x504   :  { %2189 = vmatmul.mubr.f32.gmra.mrb[188].mxu1 %v5384_v18 }
 0x505   :  { %2193 = vmatprep.mubr.f32.mxu1 %v5390_v48 }
 0x508   :  { %2194 = vmatmul.mubr.f32.gmra.mrb[190].mxu1 %v5397_v9 }
 0x509   :  { %2198 = vmatprep.mubr.f32.mxu1 %v5403_v20 }
 0x50c   :  { %2199 = vmatmul.mubr.f32.gmra.mrb[192].mxu1 %v5410_v4 }
 0x50d   :  { %2203 = vmatprep.mubr.f32.mxu1 %v5416_v27 }
 0x510   :  { %2204 = vmatmul.mubr.f32.gmra.mrb[194].mxu1 %v5422_v26 }
 0x511   :  { %2208 = vmatprep.mubr.f32.mxu1 %v5428_v15 }
 0x514   :  { %2209 = vmatmul.mubr.f32.gmra.mrb[196].mxu1 %v5434_v13 }
 0x515   :  { %2213 = vmatprep.mubr.f32.mxu1 %v5440_v6 }
 0x518   :  { %2214 = vmatmul.mubr.f32.gmra.mrb[198].mxu1 %v5446_v51 }
 0x519   :  { %2218 = vmatprep.mubr.f32.mxu1 %v5452_v45 }
 0x51c   :  { %2219 = vmatmul.mubr.f32.gmra.mrb[200].mxu1 %v5458_v38 }
 0x51d   :  { %2223 = vmatprep.mubr.f32.mxu1 %v5464_v60 }
 0x51f   :  { %v1582_v57 = vpop.f32.mrb[96].mxu1 }
 0x520   :  { %v1749_v39 = vmul.f32 %v5643_v55, %v1582_v57  ;;  %v1584_v47 = vpop.f32.mrb[97].mxu1  ;;  %2224 = vmatmul.mubr.f32.gmra.mrb[202].mxu1 %v5470_v7 }
 0x521   :  { %2228 = vmatprep.mubr.f32.mxu1 %v5476_v32  ;;  %v958_v47 = vmul.f32 %v5638_v2, %v4944_v61 }
 0x522   :  { %v5651_v50 = vadd.f32 %v1749_v39, %v955_v0 }
 0x523   :  { %v1587_v3 = vpop.f32.mrb[98].mxu1 }
 0x524   :  { %6419 = vst [vmem:[#allocation41_spill] sm:$0xff] %v5651_v50  ;;  %v1750_v16 = vmul.f32 %v5643_v55, %v1587_v3  ;;  %v1589_v22 = vpop.f32.mrb[99].mxu1  ;;  %2229 = vmatmul.mubr.f32.gmra.mrb[204].mxu1 %v5482_v1 }
 0x525   :  { %2233 = vmatprep.mubr.f32.mxu1 %v5488_v25  ;;  %v959_v22 = vmul.f32 %v5638_v2, %v4948_v63 }
 0x526   :  { %v5658_v54 = vadd.f32 %v1750_v16, %v956_v10 }
 0x527   :  { %v1592_v29 = vpop.f32.mrb[100].mxu1 }
 0x528   :  { %6420 = vst [vmem:[#allocation42_spill] sm:$0xff] %v5658_v54  ;;  %v1751_v57 = vmul.f32 %v5643_v55, %v1592_v29  ;;  %v1594_v0 = vpop.f32.mrb[101].mxu1  ;;  %2234 = vmatmul.mubr.f32.gmra.mrb[206].mxu1 %v5494_v21  ;;  %v6432_v54 = vld [vmem:[#allocation25_spill] sm:$0xff] }
 0x529   :  { %2238 = vmatprep.mubr.f32.mxu1 %v5500_v17  ;;  %v960_v0 = vmul.f32 %v5638_v2, %v4952_v35 }
 0x52a   :  { %v5665_v56 = vadd.f32 %v1751_v57, %v957_v34 }
 0x52b   :  { %v1597_v39 = vpop.f32.mrb[102].mxu1 }
 0x52c   :  { %6421 = vst [vmem:[#allocation43_spill] sm:$0xff] %v5665_v56  ;;  %v1752_v3 = vmul.f32 %v5643_v55, %v1597_v39  ;;  %v1599_v10 = vpop.f32.mrb[103].mxu1  ;;  %2239 = vmatmul.mubr.f32.gmra.mrb[208].mxu1 %v5506_v12 }
 0x52d   :  { %2243 = vmatprep.mubr.f32.mxu1 %v5512_v8 }
 0x52e   :  { %v5672_v58 = vadd.f32 %v1752_v3, %v958_v47  ;;  %v6424_v3 = vld [vmem:[#allocation33_spill] sm:$0xff] }
 0x52f   :  { %v1602_v16 = vpop.f32.mrb[104].mxu1 }
 0x530   :  { %6422 = vst [vmem:[#allocation44_spill] sm:$0xff] %v5672_v58  ;;  %v1753_v29 = vmul.f32 %v5643_v55, %v1602_v16  ;;  %v1604_v34 = vpop.f32.mrb[105].mxu1  ;;  %2244 = vmatmul.mubr.f32.gmra.mrb[210].mxu1 %v5518_v33  ;;  %v6426_v16 = vld [vmem:[#allocation5_spill] sm:$0xff]  ;;  %v6428_v58 = vld [vmem:[#allocation35_spill] sm:$0xff] }
 0x531   :  { %2248 = vmatprep.mubr.f32.mxu1 %v5524_v49  ;;  %v961_v34 = vmul.f32 %v5638_v2, %v6426_v16 }
 0x532   :  { %v5679_v61 = vadd.f32 %v1753_v29, %v959_v22 }
 0x533   :  { %v1607_v57 = vpop.f32.mrb[106].mxu1 }
 0x534   :  { %6423 = vst [vmem:[#allocation45_spill] sm:$0xff] %v5679_v61  ;;  %v1754_v39 = vmul.f32 %v5643_v55, %v1607_v57  ;;  %v1609_v47 = vpop.f32.mrb[107].mxu1  ;;  %2249 = vmatmul.mubr.f32.gmra.mrb[212].mxu1 %v5530_v46  ;;  %v6427_v61 = vld [vmem:[#allocation34_spill] sm:$0xff] }
 0x535   :  { %2253 = vmatprep.mubr.f32.mxu1 %v6424_v3  ;;  %v6430_v47 = vld [vmem:[#allocation6_spill] sm:$0xff] }
 0x536   :  { %v5686_v63 = vadd.f32 %v1754_v39, %v960_v0  ;;  %v962_v56 = vmul.f32 %v5638_v2, %v6430_v47 }
 0x537   :  { %v1612_v10 = vpop.f32.mrb[108].mxu1 }
 0x538   :  { %6425 = vst [vmem:[#allocation33_spill] sm:$0xff] %v5686_v63  ;;  %v1755_v22 = vmul.f32 %v5643_v55, %v1612_v10  ;;  %v1614_v29 = vpop.f32.mrb[109].mxu1  ;;  %2254 = vmatmul.mubr.f32.gmra.mrb[214].mxu1 %v6427_v61  ;;  %v6431_v63 = vld [vmem:[#allocation36_spill] sm:$0xff] }
 0x539   :  { %2258 = vmatprep.mubr.f32.mxu1 %v6428_v58  ;;  %v6434_v29 = vld [vmem:[#allocation7_spill] sm:$0xff] }
 0x53a   :  { %v5693_v35 = vadd.f32 %v1755_v22, %v961_v34  ;;  %v963_v50 = vmul.f32 %v5638_v2, %v6434_v29 }
 0x53b   :  { %v1617_v57 = vpop.f32.mrb[110].mxu1 }
 0x53c   :  { %6429 = vst [vmem:[#allocation5_spill] sm:$0xff] %v5693_v35  ;;  %v1756_v0 = vmul.f32 %v5643_v55, %v1617_v57  ;;  %v1619_v39 = vpop.f32.mrb[111].mxu1  ;;  %2259 = vmatmul.mubr.f32.gmra.mrb[216].mxu1 %v6431_v63  ;;  %v6435_v35 = vld [vmem:[#allocation32_spill] sm:$0xff] }
 0x53d   :  { %2263 = vmatprep.mubr.f32.mxu1 %v6432_v54  ;;  %v6437_v39 = vld [vmem:[#allocation8_spill] sm:$0xff] }
 0x53e   :  { %v5700_v16 = vadd.f32 %v1756_v0, %v962_v56  ;;  %v964_v63 = vmul.f32 %v5638_v2, %v6437_v39 }
 0x53f   :  { %v1622_v10 = vpop.f32.mrb[112].mxu1 }
 0x540   :  { %6433 = vst [vmem:[#allocation34_spill] sm:$0xff] %v5700_v16  ;;  %v1757_v34 = vmul.f32 %v5643_v55, %v1622_v10  ;;  %v1624_v22 = vpop.f32.mrb[113].mxu1  ;;  %2264 = vmatmul.mubr.f32.gmra.mrb[218].mxu1 %v6435_v35 }
 0x541   :  { %2268 = vmatprep.mubr.f32.mxu1 %v5572_v40  ;;  %v6439_v22 = vld [vmem:[#allocation9_spill] sm:$0xff] }
 0x542   :  { %v5707_v47 = vadd.f32 %v1757_v34, %v963_v50  ;;  %v965_v16 = vmul.f32 %v5638_v2, %v6439_v22 }
 0x543   :  { %v1627_v57 = vpop.f32.mrb[114].mxu1 }
 0x544   :  { %6436 = vst [vmem:[#allocation35_spill] sm:$0xff] %v5707_v47  ;;  %v1758_v56 = vmul.f32 %v5643_v55, %v1627_v57  ;;  %v1629_v0 = vpop.f32.mrb[115].mxu1  ;;  %2269 = vmatmul.mubr.f32.gmra.mrb[220].mxu1 %v5578_v37  ;;  %v6441_v57 = vld [vmem:[#allocation10_spill] sm:$0xff] }
 0x545   :  { %2273 = vmatprep.mubr.f32.mxu1 %v5584_v44  ;;  %v966_v0 = vmul.f32 %v5638_v2, %v6441_v57 }
 0x546   :  { %v5714_v29 = vadd.f32 %v1758_v56, %v964_v63 }
 0x547   :  { %v1632_v10 = vpop.f32.mrb[116].mxu1 }
 0x548   :  { %6438 = vst [vmem:[#allocation6_spill] sm:$0xff] %v5714_v29  ;;  %v1759_v50 = vmul.f32 %v5643_v55, %v1632_v10  ;;  %v1634_v34 = vpop.f32.mrb[117].mxu1  ;;  %2274 = vmatmul.mubr.f32.gmra.mrb[222].mxu1 %v5590_v42  ;;  %v6443_v29 = vld [vmem:[#allocation11_spill] sm:$0xff] }
 0x549   :  { %v967_v22 = vmul.f32 %v5638_v2, %v6443_v29 }
 0x54a   :  { %v5720_v47 = vadd.f32 %v1759_v50, %v965_v16  ;;  %v6445_v50 = vld [vmem:[#allocation12_spill] sm:$0xff] }
 0x54b   :  { %v1637_v39 = vpop.f32.mrb[118].mxu1 }
 0x54c   :  { %6440 = vst [vmem:[#allocation25_spill] sm:$0xff] %v5720_v47  ;;  %v1760_v37 = vmul.f32 %v5643_v55, %v1637_v39  ;;  %v1639_v44 = vpop.f32.mrb[119].mxu1  ;;  %v968_v47 = vmul.f32 %v5638_v2, %v6445_v50 }
 0x54d   :  { %v6447_v44 = vld [vmem:[#allocation13_spill] sm:$0xff] }
 0x54e   :  { %v5725_v63 = vadd.f32 %v1760_v37, %v966_v0  ;;  %v969_v0 = vmul.f32 %v5638_v2, %v6447_v44 }
 0x54f   :  { %v1642_v56 = vpop.f32.mrb[120].mxu1 }
 0x550   :  { %6442 = vst [vmem:[#allocation7_spill] sm:$0xff] %v5725_v63  ;;  %v1761_v10 = vmul.f32 %v5643_v55, %v1642_v56  ;;  %v1644_v34 = vpop.f32.mrb[121].mxu1 }
 0x552   :  { %v5730_v40 = vadd.f32 %v1761_v10, %v967_v22  ;;  %v6449_v10 = vld [vmem:[#allocation14_spill] sm:$0xff] }
 0x553   :  { %v1647_v16 = vpop.f32.mrb[122].mxu1  ;;  %v970_v34 = vmul.f32 %v5638_v2, %v6449_v10 }
 0x554   :  { %6444 = vst [vmem:[#allocation8_spill] sm:$0xff] %v5730_v40  ;;  %v1762_v57 = vmul.f32 %v5643_v55, %v1647_v16  ;;  %v1649_v42 = vpop.f32.mrb[123].mxu1 }
 0x556   :  { %v5735_v39 = vadd.f32 %v1762_v57, %v968_v47  ;;  %v6451_v47 = vld [vmem:[#allocation15_spill] sm:$0xff] }
 0x557   :  { %v1652_v37 = vpop.f32.mrb[124].mxu1  ;;  %v971_v57 = vmul.f32 %v5638_v2, %v6451_v47 }
 0x558   :  { %6446 = vst [vmem:[#allocation9_spill] sm:$0xff] %v5735_v39  ;;  %v1763_v29 = vmul.f32 %v5643_v55, %v1652_v37  ;;  %v1654_v63 = vpop.f32.mrb[125].mxu1 }
 0x55a   :  { %v5740_v56 = vadd.f32 %v1763_v29, %v969_v0  ;;  %v6453_v0 = vld [vmem:[#allocation16_spill] sm:$0xff] }
 0x55b   :  { %v1657_v22 = vpop.f32.mrb[126].mxu1  ;;  %v972_v29 = vmul.f32 %v5638_v2, %v6453_v0 }
 0x55c   :  { %6448 = vst [vmem:[#allocation10_spill] sm:$0xff] %v5740_v56  ;;  %v1764_v50 = vmul.f32 %v5643_v55, %v1657_v22  ;;  %v1659_v40 = vpop.f32.mrb[127].mxu1 }
 0x55e   :  { %v5745_v16 = vadd.f32 %v1764_v50, %v970_v34  ;;  %v6455_v34 = vld [vmem:[#allocation17_spill] sm:$0xff] }
 0x55f   :  { %v1662_v42 = vpop.f32.mrb[128].mxu1  ;;  %v973_v50 = vmul.f32 %v5638_v2, %v6455_v34 }
 0x560   :  { %6450 = vst [vmem:[#allocation11_spill] sm:$0xff] %v5745_v16  ;;  %v1765_v44 = vmul.f32 %v5643_v55, %v1662_v42  ;;  %v1664_v39 = vpop.f32.mrb[129].mxu1 }
 0x562   :  { %v5750_v37 = vadd.f32 %v1765_v44, %v971_v57  ;;  %v6457_v57 = vld [vmem:[#allocation18_spill] sm:$0xff] }
 0x563   :  { %v1667_v63 = vpop.f32.mrb[130].mxu1  ;;  %v974_v44 = vmul.f32 %v5638_v2, %v6457_v57 }
 0x564   :  { %6452 = vst [vmem:[#allocation12_spill] sm:$0xff] %v5750_v37  ;;  %v1766_v10 = vmul.f32 %v5643_v55, %v1667_v63  ;;  %v1669_v56 = vpop.f32.mrb[131].mxu1 }
 0x566   :  { %v5755_v22 = vadd.f32 %v1766_v10, %v972_v29  ;;  %v6459_v29 = vld [vmem:[#allocation19_spill] sm:$0xff] }
 0x567   :  { %v1672_v40 = vpop.f32.mrb[132].mxu1  ;;  %v975_v10 = vmul.f32 %v5638_v2, %v6459_v29 }
 0x568   :  { %6454 = vst [vmem:[#allocation13_spill] sm:$0xff] %v5755_v22  ;;  %v1767_v47 = vmul.f32 %v5643_v55, %v1672_v40  ;;  %v1674_v16 = vpop.f32.mrb[133].mxu1 }
 0x56a   :  { %v5760_v42 = vadd.f32 %v1767_v47, %v973_v50  ;;  %v6461_v50 = vld [vmem:[#allocation20_spill] sm:$0xff] }
 0x56b   :  { %v1677_v39 = vpop.f32.mrb[134].mxu1  ;;  %v976_v47 = vmul.f32 %v5638_v2, %v6461_v50 }
 0x56c   :  { %6456 = vst [vmem:[#allocation14_spill] sm:$0xff] %v5760_v42  ;;  %v1768_v0 = vmul.f32 %v5643_v55, %v1677_v39  ;;  %v1679_v37 = vpop.f32.mrb[135].mxu1 }
 0x56e   :  { %v5765_v63 = vadd.f32 %v1768_v0, %v974_v44  ;;  %v6463_v44 = vld [vmem:[#allocation21_spill] sm:$0xff] }
 0x56f   :  { %v1682_v56 = vpop.f32.mrb[136].mxu1  ;;  %v977_v0 = vmul.f32 %v5638_v2, %v6463_v44 }
 0x570   :  { %6458 = vst [vmem:[#allocation15_spill] sm:$0xff] %v5765_v63  ;;  %v1769_v34 = vmul.f32 %v5643_v55, %v1682_v56  ;;  %v1684_v22 = vpop.f32.mrb[137].mxu1 }
 0x572   :  { %v5770_v40 = vadd.f32 %v1769_v34, %v975_v10  ;;  %v6465_v10 = vld [vmem:[#allocation22_spill] sm:$0xff] }
 0x573   :  { %v1687_v16 = vpop.f32.mrb[138].mxu1  ;;  %v978_v34 = vmul.f32 %v5638_v2, %v6465_v10 }
 0x574   :  { %6460 = vst [vmem:[#allocation16_spill] sm:$0xff] %v5770_v40  ;;  %v1770_v57 = vmul.f32 %v5643_v55, %v1687_v16  ;;  %v1689_v42 = vpop.f32.mrb[139].mxu1 }
 0x576   :  { %v5775_v39 = vadd.f32 %v1770_v57, %v976_v47  ;;  %v6467_v47 = vld [vmem:[#allocation23_spill] sm:$0xff] }
 0x577   :  { %v1692_v37 = vpop.f32.mrb[140].mxu1  ;;  %v979_v57 = vmul.f32 %v5638_v2, %v6467_v47 }
 0x578   :  { %6462 = vst [vmem:[#allocation17_spill] sm:$0xff] %v5775_v39  ;;  %v1771_v29 = vmul.f32 %v5643_v55, %v1692_v37  ;;  %v1694_v63 = vpop.f32.mrb[141].mxu1 }
 0x57a   :  { %v5780_v56 = vadd.f32 %v1771_v29, %v977_v0  ;;  %v6469_v0 = vld [vmem:[#allocation24_spill] sm:$0xff] }
 0x57b   :  { %v1697_v22 = vpop.f32.mrb[142].mxu1  ;;  %v980_v29 = vmul.f32 %v5638_v2, %v6469_v0 }
 0x57c   :  { %6464 = vst [vmem:[#allocation18_spill] sm:$0xff] %v5780_v56  ;;  %v1772_v50 = vmul.f32 %v5643_v55, %v1697_v22  ;;  %v1699_v40 = vpop.f32.mrb[143].mxu1 }
 0x57e   :  { %v5785_v16 = vadd.f32 %v1772_v50, %v978_v34  ;;  %v6471_v34 = vld [vmem:[#allocation26_spill] sm:$0xff] }
 0x57f   :  { %v1702_v42 = vpop.f32.mrb[144].mxu1  ;;  %v981_v50 = vmul.f32 %v5638_v2, %v6471_v34 }
 0x580   :  { %6466 = vst [vmem:[#allocation19_spill] sm:$0xff] %v5785_v16  ;;  %v1773_v44 = vmul.f32 %v5643_v55, %v1702_v42  ;;  %v1704_v39 = vpop.f32.mrb[145].mxu1 }
 0x582   :  { %v5790_v37 = vadd.f32 %v1773_v44, %v979_v57  ;;  %v6473_v57 = vld [vmem:[#allocation27_spill] sm:$0xff] }
 0x583   :  { %v1707_v63 = vpop.f32.mrb[146].mxu1  ;;  %v982_v44 = vmul.f32 %v5638_v2, %v6473_v57 }
 0x584   :  { %6468 = vst [vmem:[#allocation20_spill] sm:$0xff] %v5790_v37  ;;  %v1774_v10 = vmul.f32 %v5643_v55, %v1707_v63  ;;  %v1709_v56 = vpop.f32.mrb[147].mxu1 }
 0x586   :  { %v5795_v22 = vadd.f32 %v1774_v10, %v980_v29  ;;  %v6475_v29 = vld [vmem:[#allocation28_spill] sm:$0xff] }
 0x587   :  { %v1712_v40 = vpop.f32.mrb[148].mxu1  ;;  %v983_v10 = vmul.f32 %v5638_v2, %v6475_v29 }
 0x588   :  { %6470 = vst [vmem:[#allocation21_spill] sm:$0xff] %v5795_v22  ;;  %v1775_v47 = vmul.f32 %v5643_v55, %v1712_v40  ;;  %v1714_v16 = vpop.f32.mrb[149].mxu1 }
 0x58a   :  { %v5800_v42 = vadd.f32 %v1775_v47, %v981_v50  ;;  %v6477_v50 = vld [vmem:[#allocation29_spill] sm:$0xff] }
 0x58b   :  { %v1717_v39 = vpop.f32.mrb[150].mxu1  ;;  %v984_v47 = vmul.f32 %v5638_v2, %v6477_v50 }
 0x58c   :  { %6472 = vst [vmem:[#allocation22_spill] sm:$0xff] %v5800_v42  ;;  %v1776_v0 = vmul.f32 %v5643_v55, %v1717_v39  ;;  %v1719_v37 = vpop.f32.mrb[151].mxu1 }
 0x58e   :  { %v5805_v63 = vadd.f32 %v1776_v0, %v982_v44  ;;  %v6479_v44 = vld [vmem:[#allocation30_spill] sm:$0xff] }
 0x58f   :  { %v1722_v56 = vpop.f32.mrb[152].mxu1  ;;  %v985_v0 = vmul.f32 %v5638_v2, %v6479_v44 }
 0x590   :  { %6474 = vst [vmem:[#allocation23_spill] sm:$0xff] %v5805_v63  ;;  %v1777_v34 = vmul.f32 %v5643_v55, %v1722_v56  ;;  %v1724_v22 = vpop.f32.mrb[153].mxu1 }
 0x592   :  { %v5810_v40 = vadd.f32 %v1777_v34, %v983_v10  ;;  %v6481_v10 = vld [vmem:[#allocation31_spill] sm:$0xff] }
 0x593   :  { %v1727_v16 = vpop.f32.mrb[154].mxu1  ;;  %v986_v34 = vmul.f32 %v5638_v2, %v6481_v10 }
 0x594   :  { %6476 = vst [vmem:[#allocation24_spill] sm:$0xff] %v5810_v40  ;;  %v1778_v57 = vmul.f32 %v5643_v55, %v1727_v16  ;;  %v1729_v42 = vpop.f32.mrb[155].mxu1 }
 0x595   :  { %v5830_v42 = vld [vmem:[%s6225_s3 + $0x2] ss:$0 sm:$0xff]  ;;  %s3961_s3 = scalar_lea.vmem %s3164_s15, 32 }
 0x596   :  { %v5815_v39 = vadd.f32 %v1778_v57, %v984_v47  ;;  %p3962_p0 = scmp.ne.s32.totalorder %s3164_s15, %s3961_s3  ;;  %p3967_p2 = scmp.lt.s32.totalorder %s3961_s3, %s3961_s3 }
 0x597   :  { %v1732_v37 = vpop.f32.mrb[156].mxu1 }
 0x598   :  { %6478 = vst [vmem:[#allocation26_spill] sm:$0xff] %v5815_v39  ;;  %v1779_v29 = vmul.f32 %v5643_v55, %v1732_v37  ;;  %v1734_v63 = vpop.f32.mrb[157].mxu1  ;;  %p3968_p3 = por %p3967_p2, %p3966_p1 }
 0x59a   :  { %v5820_v56 = vadd.f32 %v1779_v29, %v985_v0  ;;  %p3969_p4 = pnand %p3968_p3, %p3962_p0 }
 0x59b   :  { %v1737_v22 = vpop.f32.mrb[158].mxu1 }
 0x59c   :  { %6480 = vst [vmem:[#allocation27_spill] sm:$0xff] %v5820_v56  ;;  %v1780_v50 = vmul.f32 %v5643_v55, %v1737_v22  ;;  %v1739_v40 = vpop.f32.mrb[159].mxu1 }
 0x59e   :  { %v5825_v16 = vadd.f32 %v1780_v50, %v986_v34  ;;  %v6483_v50 = vmov 0.0|0.0  }
 0x59f   :  { %v2120_v47 = vpop.f32.mrb[160].mxu1 }
 0x5a0   :  { %6482 = vst [vmem:[#allocation28_spill] sm:$0xff] %v5825_v16  ;;  %v2122_v57 = vpop.f32.mrb[161].mxu1  ;;  %v2121_v63 = vadd.f32 %v5830_v42, %v2120_v47 }
 0x5a2   :  { %v2279_v29 = vmax.f32 %v2121_v63, 0.0 }
 0x5a3   :  { %v2125_v37 = vpop.f32.mrb[162].mxu1 }
 0x5a4   :  { %v2126_v44 = vadd.f32 %v5830_v42, %v2125_v37  ;;  %v2127_v0 = vpop.f32.mrb[163].mxu1 }
 0x5a6   :  { %v2280_v2 = vmax.f32 %v2126_v44, 0.0 }
 0x5a7   :  { %v2130_v10 = vpop.f32.mrb[164].mxu1 }
 0x5a8   :  { %v3793_v55 = vpack.c.bf16 %v2280_v2, %v2279_v29  ;;  %v2132_v40 = vpop.f32.mrb[165].mxu1  ;;  %v2131_v22 = vadd.f32 %v5830_v42, %v2130_v10 }
 0x5aa   :  { %3794 = vmatpush1.bf16.msra.mxu0 %v3793_v55  ;;  %v2281_v56 = vmax.f32 %v2131_v22, 0.0 }
 0x5ab   :  { %v2135_v34 = vpop.f32.mrb[166].mxu1  ;;  %3795 = vmatprep.subr.bf16.mxu0 %v6483_v50 }
 0x5ac   :  { %v2136_v16 = vadd.f32 %v5830_v42, %v2135_v34  ;;  %v2137_v57 = vpop.f32.mrb[167].mxu1 }
 0x5ae   :  { %v2282_v47 = vmax.f32 %v2136_v16, 0.0 }
 0x5af   :  { %v2140_v39 = vpop.f32.mrb[168].mxu1 }
 0x5b0   :  { %v3796_v35 = vpack.c.bf16 %v2282_v47, %v2281_v56  ;;  %v2142_v37 = vpop.f32.mrb[169].mxu1  ;;  %v2141_v63 = vadd.f32 %v5830_v42, %v2140_v39 }
 0x5b2   :  { %3797 = vmatpush1.bf16.msra.mxu0 %v3796_v35  ;;  %v2283_v2 = vmax.f32 %v2141_v63, 0.0 }
 0x5b3   :  { %v2145_v44 = vpop.f32.mrb[170].mxu1  ;;  %3798 = vmatprep.subr.bf16.mxu0 %v6483_v50 }
 0x5b4   :  { %v2146_v0 = vadd.f32 %v5830_v42, %v2145_v44  ;;  %v2147_v29 = vpop.f32.mrb[171].mxu1 }
 0x5b6   :  { %v2284_v10 = vmax.f32 %v2146_v0, 0.0 }
 0x5b7   :  { %v2150_v55 = vpop.f32.mrb[172].mxu1 }
 0x5b8   :  { %v3799_v40 = vpack.c.bf16 %v2284_v10, %v2283_v2  ;;  %v2152_v34 = vpop.f32.mrb[173].mxu1  ;;  %v2151_v22 = vadd.f32 %v5830_v42, %v2150_v55 }
 0x5ba   :  { %3800 = vmatpush1.bf16.msra.mxu0 %v3799_v40  ;;  %v2285_v56 = vmax.f32 %v2151_v22, 0.0 }
 0x5bb   :  { %v2155_v16 = vpop.f32.mrb[174].mxu1  ;;  %3801 = vmatprep.subr.bf16.mxu0 %v6483_v50 }
 0x5bc   :  { %v2156_v39 = vadd.f32 %v5830_v42, %v2155_v16  ;;  %v2157_v35 = vpop.f32.mrb[175].mxu1 }
 0x5be   :  { %v2286_v57 = vmax.f32 %v2156_v39, 0.0 }
 0x5bf   :  { %v2160_v47 = vpop.f32.mrb[176].mxu1 }
 0x5c0   :  { %v3802_v37 = vpack.c.bf16 %v2286_v57, %v2285_v56  ;;  %v2162_v44 = vpop.f32.mrb[177].mxu1  ;;  %v2161_v63 = vadd.f32 %v5830_v42, %v2160_v47 }
 0x5c2   :  { %3803 = vmatpush1.bf16.msra.mxu0 %v3802_v37  ;;  %v2287_v10 = vmax.f32 %v2161_v63, 0.0 }
 0x5c3   :  { %v2165_v0 = vpop.f32.mrb[178].mxu1  ;;  %3804 = vmatprep.subr.bf16.mxu0 %v6483_v50 }
 0x5c4   :  { %v2166_v29 = vadd.f32 %v5830_v42, %v2165_v0  ;;  %v2167_v2 = vpop.f32.mrb[179].mxu1 }
 0x5c6   :  { %v2288_v55 = vmax.f32 %v2166_v29, 0.0 }
 0x5c7   :  { %v2170_v40 = vpop.f32.mrb[180].mxu1 }
 0x5c8   :  { %v3805_v34 = vpack.c.bf16 %v2288_v55, %v2287_v10  ;;  %v2172_v16 = vpop.f32.mrb[181].mxu1  ;;  %v2171_v22 = vadd.f32 %v5830_v42, %v2170_v40 }
 0x5ca   :  { %3806 = vmatpush1.bf16.msra.mxu0 %v3805_v34  ;;  %v2289_v57 = vmax.f32 %v2171_v22, 0.0 }
 0x5cb   :  { %v2175_v39 = vpop.f32.mrb[182].mxu1  ;;  %3807 = vmatprep.subr.bf16.mxu0 %v6483_v50 }
 0x5cc   :  { %v2176_v35 = vadd.f32 %v5830_v42, %v2175_v39  ;;  %v2177_v56 = vpop.f32.mrb[183].mxu1 }
 0x5ce   :  { %v2290_v47 = vmax.f32 %v2176_v35, 0.0 }
 0x5cf   :  { %v2180_v37 = vpop.f32.mrb[184].mxu1 }
 0x5d0   :  { %v3808_v44 = vpack.c.bf16 %v2290_v47, %v2289_v57  ;;  %v2182_v0 = vpop.f32.mrb[185].mxu1  ;;  %v2181_v63 = vadd.f32 %v5830_v42, %v2180_v37 }
 0x5d2   :  { %3809 = vmatpush1.bf16.msra.mxu0 %v3808_v44  ;;  %v2291_v55 = vmax.f32 %v2181_v63, 0.0 }
 0x5d3   :  { %v2185_v29 = vpop.f32.mrb[186].mxu1  ;;  %3810 = vmatprep.subr.bf16.mxu0 %v6483_v50 }
 0x5d4   :  { %v2186_v2 = vadd.f32 %v5830_v42, %v2185_v29  ;;  %v2187_v10 = vpop.f32.mrb[187].mxu1 }
 0x5d6   :  { %v2292_v40 = vmax.f32 %v2186_v2, 0.0 }
 0x5d7   :  { %v2190_v34 = vpop.f32.mrb[188].mxu1 }
 0x5d8   :  { %v3811_v16 = vpack.c.bf16 %v2292_v40, %v2291_v55  ;;  %v2192_v39 = vpop.f32.mrb[189].mxu1  ;;  %v2191_v22 = vadd.f32 %v5830_v42, %v2190_v34 }
 0x5da   :  { %3812 = vmatpush1.bf16.msra.mxu0 %v3811_v16  ;;  %v2293_v47 = vmax.f32 %v2191_v22, 0.0 }
 0x5db   :  { %v2195_v35 = vpop.f32.mrb[190].mxu1  ;;  %3813 = vmatprep.subr.bf16.mxu0 %v6483_v50 }
 0x5dc   :  { %v2196_v56 = vadd.f32 %v5830_v42, %v2195_v35  ;;  %v2197_v57 = vpop.f32.mrb[191].mxu1 }
 0x5de   :  { %v2294_v37 = vmax.f32 %v2196_v56, 0.0 }
 0x5df   :  { %v2200_v44 = vpop.f32.mrb[192].mxu1 }
 0x5e0   :  { %v3814_v0 = vpack.c.bf16 %v2294_v37, %v2293_v47  ;;  %v2202_v29 = vpop.f32.mrb[193].mxu1  ;;  %v2201_v63 = vadd.f32 %v5830_v42, %v2200_v44 }
 0x5e2   :  { %3815 = vmatpush1.bf16.msra.mxu0 %v3814_v0  ;;  %v2295_v40 = vmax.f32 %v2201_v63, 0.0 }
 0x5e3   :  { %v2205_v2 = vpop.f32.mrb[194].mxu1  ;;  %3816 = vmatprep.subr.bf16.mxu0 %v6483_v50 }
 0x5e4   :  { %v2206_v10 = vadd.f32 %v5830_v42, %v2205_v2  ;;  %v2207_v55 = vpop.f32.mrb[195].mxu1 }
 0x5e6   :  { %v2296_v34 = vmax.f32 %v2206_v10, 0.0 }
 0x5e7   :  { %v2210_v16 = vpop.f32.mrb[196].mxu1 }
 0x5e8   :  { %v3817_v39 = vpack.c.bf16 %v2296_v34, %v2295_v40  ;;  %v2212_v35 = vpop.f32.mrb[197].mxu1  ;;  %v2211_v22 = vadd.f32 %v5830_v42, %v2210_v16 }
 0x5ea   :  { %3818 = vmatpush1.bf16.msra.mxu0 %v3817_v39  ;;  %v2297_v37 = vmax.f32 %v2211_v22, 0.0 }
 0x5eb   :  { %v2215_v56 = vpop.f32.mrb[198].mxu1  ;;  %3819 = vmatprep.subr.bf16.mxu0 %v6483_v50 }
 0x5ec   :  { %v2216_v57 = vadd.f32 %v5830_v42, %v2215_v56  ;;  %v2217_v47 = vpop.f32.mrb[199].mxu1 }
 0x5ee   :  { %v2298_v44 = vmax.f32 %v2216_v57, 0.0 }
 0x5ef   :  { %v2220_v0 = vpop.f32.mrb[200].mxu1 }
 0x5f0   :  { %v3820_v29 = vpack.c.bf16 %v2298_v44, %v2297_v37  ;;  %v2222_v2 = vpop.f32.mrb[201].mxu1  ;;  %v2221_v63 = vadd.f32 %v5830_v42, %v2220_v0 }
 0x5f2   :  { %3821 = vmatpush1.bf16.msra.mxu0 %v3820_v29  ;;  %v2299_v34 = vmax.f32 %v2221_v63, 0.0 }
 0x5f3   :  { %v2225_v10 = vpop.f32.mrb[202].mxu1  ;;  %3822 = vmatprep.subr.bf16.mxu0 %v6483_v50 }
 0x5f4   :  { %v2226_v55 = vadd.f32 %v5830_v42, %v2225_v10  ;;  %v2227_v40 = vpop.f32.mrb[203].mxu1 }
 0x5f6   :  { %v2300_v16 = vmax.f32 %v2226_v55, 0.0 }
 0x5f7   :  { %v2230_v39 = vpop.f32.mrb[204].mxu1 }
 0x5f8   :  { %v3823_v35 = vpack.c.bf16 %v2300_v16, %v2299_v34  ;;  %v2232_v56 = vpop.f32.mrb[205].mxu1  ;;  %v2231_v22 = vadd.f32 %v5830_v42, %v2230_v39 }
 0x5fa   :  { %3824 = vmatpush1.bf16.msra.mxu0 %v3823_v35  ;;  %v2301_v44 = vmax.f32 %v2231_v22, 0.0 }
 0x5fb   :  { %v2235_v57 = vpop.f32.mrb[206].mxu1  ;;  %3825 = vmatprep.subr.bf16.mxu0 %v6483_v50 }
 0x5fc   :  { %v2236_v47 = vadd.f32 %v5830_v42, %v2235_v57  ;;  %v2237_v37 = vpop.f32.mrb[207].mxu1 }
 0x5fe   :  { %v2302_v0 = vmax.f32 %v2236_v47, 0.0 }
 0x5ff   :  { %v2240_v29 = vpop.f32.mrb[208].mxu1 }
 0x600   :  { %v3826_v2 = vpack.c.bf16 %v2302_v0, %v2301_v44  ;;  %v2242_v10 = vpop.f32.mrb[209].mxu1  ;;  %v2241_v63 = vadd.f32 %v5830_v42, %v2240_v29 }
 0x602   :  { %3827 = vmatpush1.bf16.msra.mxu0 %v3826_v2  ;;  %v2303_v16 = vmax.f32 %v2241_v63, 0.0 }
 0x603   :  { %v2245_v55 = vpop.f32.mrb[210].mxu1  ;;  %3828 = vmatprep.subr.bf16.mxu0 %v6483_v50 }
 0x604   :  { %v2246_v40 = vadd.f32 %v5830_v42, %v2245_v55  ;;  %v2247_v34 = vpop.f32.mrb[211].mxu1 }
 0x606   :  { %v2304_v39 = vmax.f32 %v2246_v40, 0.0 }
 0x607   :  { %v2250_v35 = vpop.f32.mrb[212].mxu1 }
 0x608   :  { %v3829_v56 = vpack.c.bf16 %v2304_v39, %v2303_v16  ;;  %v2252_v57 = vpop.f32.mrb[213].mxu1  ;;  %v2251_v22 = vadd.f32 %v5830_v42, %v2250_v35 }
 0x60a   :  { %3830 = vmatpush1.bf16.msra.mxu0 %v3829_v56  ;;  %v2305_v0 = vmax.f32 %v2251_v22, 0.0 }
 0x60b   :  { %v2255_v47 = vpop.f32.mrb[214].mxu1  ;;  %3831 = vmatprep.subr.bf16.mxu0 %v6483_v50 }
 0x60c   :  { %v2256_v37 = vadd.f32 %v5830_v42, %v2255_v47  ;;  %v2257_v44 = vpop.f32.mrb[215].mxu1 }
 0x60e   :  { %v2306_v29 = vmax.f32 %v2256_v37, 0.0 }
 0x60f   :  { %v2260_v2 = vpop.f32.mrb[216].mxu1 }
 0x610   :  { %v3832_v10 = vpack.c.bf16 %v2306_v29, %v2305_v0  ;;  %v2262_v55 = vpop.f32.mrb[217].mxu1  ;;  %v2261_v63 = vadd.f32 %v5830_v42, %v2260_v2 }
 0x611   :  { %v3949_v55 = vld [vmem:[%s6222_s0] sm:$0xff] }
 0x612   :  { %3833 = vmatpush1.bf16.msra.mxu0 %v3832_v10  ;;  %v2307_v39 = vmax.f32 %v2261_v63, 0.0  ;;  %v3950_v63 = vld [vmem:[%s6222_s0 + $0x18] sm:$0xff] }
 0x613   :  { %v2265_v40 = vpop.f32.mrb[218].mxu1  ;;  %3834 = vmatprep.subr.bf16.mxu0 %v6483_v50 }
 0x614   :  { %v2266_v34 = vadd.f32 %v5830_v42, %v2265_v40  ;;  %v2267_v16 = vpop.f32.mrb[219].mxu1  ;;  %v3951_v40 = vld [vmem:[%s6222_s0 + $0x10] sm:$0xff] }
 0x615   :  { %v3954_v16 = vld [vmem:[%s6222_s0 + $0x38] sm:$0xff] }
 0x616   :  { %v2308_v35 = vmax.f32 %v2266_v34, 0.0  ;;  %v3953_v34 = vld [vmem:[%s6222_s0 + $0x20] sm:$0xff] }
 0x617   :  { %v2270_v56 = vpop.f32.mrb[220].mxu1 }
 0x618   :  { %v3835_v57 = vpack.c.bf16 %v2308_v35, %v2307_v39  ;;  %v2272_v47 = vpop.f32.mrb[221].mxu1  ;;  %v2271_v22 = vadd.f32 %v5830_v42, %v2270_v56  ;;  %v3955_v39 = vld [vmem:[%s6222_s0 + $0x30] sm:$0xff]  ;;  %v3956_v35 = vld [vmem:[%s6222_s0 + $0x48] sm:$0xff]  ;;  %v3957_v56 = vld [vmem:[%s6222_s0 + $0x40] sm:$0xff] }
 0x619   :  { %v3959_v47 = vld [vmem:[%s6222_s0 + $0x50] sm:$0xff] }
 0x61a   :  { %3836 = vmatpush1.bf16.msra.mxu0 %v3835_v57  ;;  %v2309_v29 = vmax.f32 %v2271_v22, 0.0  ;;  %v3958_v57 = vld [vmem:[%s6222_s0 + $0x58] sm:$0xff]  ;;  %v3960_v22 = vld [vmem:[%s6222_s0 + $0x68] sm:$0xff] }
 0x61b   :  { %v2275_v37 = vpop.f32.mrb[222].mxu1  ;;  %3837 = vmatprep.subr.bf16.mxu0 %v6483_v50 }
 0x61c   :  { %v2276_v44 = vadd.f32 %v5830_v42, %v2275_v37  ;;  %v2277_v0 = vpop.f32.mrb[223].mxu1  ;;  %v3952_v42 = vld [vmem:[%s6222_s0 + $0x28] sm:$0xff] }
 0x61d   :  { %v6496_v0 = vld [vmem:[#allocation5_spill] sm:$0xff] }
 0x61e   :  { %v2310_v2 = vmax.f32 %v2276_v44, 0.0 }
 0x620   :  { %v3838_v10 = vpack.c.bf16 %v2310_v2, %v2309_v29 }
 0x622   :  { %3839 = vmatpush1.bf16.msra.mxu0 %v3838_v10 }
 0x625   :  { %2376 = vmatmul.mubr.f32.vlgmr.msra.gmra.mrb[192].mxu0 %v3949_v55 }
 0x626   :  { %2380 = vmatprep.mubr.f32.mxu0 %v3950_v63 }
 0x629   :  { %2381 = vmatmul.mubr.f32.gmra.mrb[194].mxu0 %v3951_v40  ;;  %v6497_v40 = vld [vmem:[#allocation34_spill] sm:$0xff] }
 0x62a   :  { %2385 = vmatprep.mubr.f32.mxu0 %v3952_v42 }
 0x62d   :  { %2386 = vmatmul.mubr.f32.gmra.mrb[196].mxu0 %v3953_v34 }
 0x62e   :  { %2390 = vmatprep.mubr.f32.mxu0 %v3954_v16 }
 0x631   :  { %2391 = vmatmul.mubr.f32.gmra.mrb[198].mxu0 %v3955_v39 }
 0x632   :  { %2395 = vmatprep.mubr.f32.mxu0 %v3956_v35 }
 0x635   :  { %2396 = vmatmul.mubr.f32.gmra.mrb[200].mxu0 %v3957_v56  ;;  %v6498_v56 = vld [vmem:[#allocation35_spill] sm:$0xff] }
 0x636   :  { %2400 = vmatprep.mubr.f32.mxu0 %v3958_v57 }
 0x639   :  { %2401 = vmatmul.mubr.f32.gmra.mrb[202].mxu0 %v3959_v47 }
 0x63a   :  { %2405 = vmatprep.mubr.f32.mxu0 %v3960_v22 }
 0x63d   :  { %2406 = vmatmul.mubr.f32.gmra.mrb[204].mxu0 %v5280_v30 }
 0x63e   :  { %2410 = vmatprep.mubr.f32.mxu0 %v5286_v62  ;;  %v6492_v62 = vld [vmem:[#allocation43_spill] sm:$0xff] }
 0x641   :  { %2411 = vmatmul.mubr.f32.gmra.mrb[206].mxu0 %v5293_v43 }
 0x642   :  { %2415 = vmatprep.mubr.f32.mxu0 %v5299_v52 }
 0x645   :  { %2416 = vmatmul.mubr.f32.gmra.mrb[208].mxu0 %v5306_v11 }
 0x646   :  { %2420 = vmatprep.mubr.f32.mxu0 %v5312_v19 }
 0x649   :  { %2421 = vmatmul.mubr.f32.gmra.mrb[210].mxu0 %v5319_v31 }
 0x64a   :  { %2425 = vmatprep.mubr.f32.mxu0 %v5325_v5  ;;  %v6493_v5 = vld [vmem:[#allocation44_spill] sm:$0xff] }
 0x64d   :  { %2426 = vmatmul.mubr.f32.gmra.mrb[212].mxu0 %v5332_v41 }
 0x64e   :  { %2430 = vmatprep.mubr.f32.mxu0 %v5338_v53 }
 0x651   :  { %2431 = vmatmul.mubr.f32.gmra.mrb[214].mxu0 %v5345_v24 }
 0x652   :  { %2435 = vmatprep.mubr.f32.mxu0 %v5351_v59 }
 0x655   :  { %2436 = vmatmul.mubr.f32.gmra.mrb[216].mxu0 %v5358_v28 }
 0x656   :  { %2440 = vmatprep.mubr.f32.mxu0 %v5364_v14 }
 0x659   :  { %2441 = vmatmul.mubr.f32.gmra.mrb[218].mxu0 %v5371_v23 }
 0x65a   :  { %2445 = vmatprep.mubr.f32.mxu0 %v5377_v36  ;;  %v6494_v36 = vld [vmem:[#allocation45_spill] sm:$0xff] }
 0x65d   :  { %2446 = vmatmul.mubr.f32.gmra.mrb[220].mxu0 %v5384_v18 }
 0x65e   :  { %2450 = vmatprep.mubr.f32.mxu0 %v5390_v48 }
 0x661   :  { %2451 = vmatmul.mubr.f32.gmra.mrb[222].mxu0 %v5397_v9 }
 0x662   :  { %2455 = vmatprep.mubr.f32.mxu0 %v5403_v20 }
 0x665   :  { %2456 = vmatmul.mubr.f32.gmra.mrb[224].mxu0 %v5410_v4 }
 0x666   :  { %2460 = vmatprep.mubr.f32.mxu0 %v5416_v27 }
 0x669   :  { %2461 = vmatmul.mubr.f32.gmra.mrb[226].mxu0 %v5422_v26  ;;  %v6495_v26 = vld [vmem:[#allocation33_spill] sm:$0xff] }
 0x66a   :  { %2465 = vmatprep.mubr.f32.mxu0 %v5428_v15  ;;  %v6484_v15 = vld [vmem:[#allocation36_spill] sm:$0xff] }
 0x66d   :  { %2466 = vmatmul.mubr.f32.gmra.mrb[228].mxu0 %v5434_v13 }
 0x66e   :  { %2470 = vmatprep.mubr.f32.mxu0 %v5440_v6  ;;  %v6491_v6 = vld [vmem:[#allocation42_spill] sm:$0xff] }
 0x671   :  { %2471 = vmatmul.mubr.f32.gmra.mrb[230].mxu0 %v5446_v51 }
 0x672   :  { %2475 = vmatprep.mubr.f32.mxu0 %v5452_v45 }
 0x675   :  { %2476 = vmatmul.mubr.f32.gmra.mrb[232].mxu0 %v5458_v38 }
 0x676   :  { %2480 = vmatprep.mubr.f32.mxu0 %v5464_v60 }
 0x679   :  { %2481 = vmatmul.mubr.f32.gmra.mrb[234].mxu0 %v5470_v7 }
 0x67a   :  { %2485 = vmatprep.mubr.f32.mxu0 %v5476_v32  ;;  %v6490_v32 = vld [vmem:[#allocation41_spill] sm:$0xff] }
 0x67d   :  { %2486 = vmatmul.mubr.f32.gmra.mrb[236].mxu0 %v5482_v1 }
 0x67e   :  { %2490 = vmatprep.mubr.f32.mxu0 %v5488_v25 }
 0x681   :  { %2491 = vmatmul.mubr.f32.gmra.mrb[238].mxu0 %v5494_v21 }
 0x682   :  { %2495 = vmatprep.mubr.f32.mxu0 %v5500_v17  ;;  %v6485_v17 = vld [vmem:[#allocation32_spill] sm:$0xff] }
 0x685   :  { %2496 = vmatmul.mubr.f32.gmra.mrb[240].mxu0 %v5506_v12  ;;  %v6486_v12 = vld [vmem:[#allocation37_spill] sm:$0xff] }
 0x686   :  { %2500 = vmatprep.mubr.f32.mxu0 %v5512_v8  ;;  %v6487_v8 = vld [vmem:[#allocation38_spill] sm:$0xff] }
 0x689   :  { %2501 = vmatmul.mubr.f32.gmra.mrb[242].mxu0 %v5518_v33  ;;  %v6488_v33 = vld [vmem:[#allocation39_spill] sm:$0xff] }
 0x68a   :  { %2505 = vmatprep.mubr.f32.mxu0 %v5524_v49  ;;  %v6489_v49 = vld [vmem:[#allocation40_spill] sm:$0xff] }
 0x68d   :  { %2506 = vmatmul.mubr.f32.gmra.mrb[244].mxu0 %v5530_v46  ;;  %v5969_v46 = vld [vmem:[%s6226_s4 + $0x2] ss:$0 sm:$0xff] }
 0x68e   :  { %2510 = vmatprep.mubr.f32.mxu0 %v6424_v3 }
 0x691   :  { %2511 = vmatmul.mubr.f32.gmra.mrb[246].mxu0 %v6427_v61 }
 0x692   :  { %2515 = vmatprep.mubr.f32.mxu0 %v6428_v58  ;;  %v3986_v58 = vmov 0  }
 0x693   :  { %3851 = vset.pattern.permute.xlu0 %v3986_v58  ;;  %3852 = vset.pattern.permute.xlu1 %v3986_v58 }
 0x695   :  { %2516 = vmatmul.mubr.f32.gmra.mrb[248].mxu0 %v6484_v15 }
 0x696   :  { %2520 = vmatprep.mubr.f32.mxu0 %v6432_v54 }
 0x699   :  { %2521 = vmatmul.mubr.f32.gmra.mrb[250].mxu0 %v6485_v17 }
 0x69a   :  { %2525 = vmatprep.mubr.f32.mxu0 %v6486_v12  ;;  %v6499_v12 = vld [vmem:[#allocation6_spill] sm:$0xff] }
 0x69d   :  { %2526 = vmatmul.mubr.f32.gmra.mrb[252].mxu0 %v6487_v8 }
 0x69e   :  { %2530 = vmatprep.mubr.f32.mxu0 %v6488_v33 }
 0x6a1   :  { %2531 = vmatmul.mubr.f32.gmra.mrb[254].mxu0 %v6489_v49 }
 0x6f8   :  { %v2377_v21 = vpop.f32.mrb[192].mxu0 }
 0x6f9   :  { %v2544_v25 = vmul.f32 %v5969_v46, %v2377_v21  ;;  %v2379_v1 = vpop.f32.mrb[193].mxu0 }
 0x6fa   :  { %v6500_v1 = vld [vmem:[#allocation25_spill] sm:$0xff] }
 0x6fb   :  { %v2576_v7 = vadd.f32 %v2544_v25, %v6490_v32 }
 0x6fc   :  { %v2382_v60 = vpop.f32.mrb[194].mxu0 }
 0x6fd   :  { %v2545_v38 = vmul.f32 %v5969_v46, %v2382_v60  ;;  %v2384_v45 = vpop.f32.mrb[195].mxu0  ;;  %v2612_v51 = vsel %vm2611_vm2, %v2576_v7, 0.0 }
 0x6fe   :  { %2613 = vadd.xlane.f32.xlu0 %v2612_v51  ;;  %v6501_v51 = vld [vmem:[#allocation7_spill] sm:$0xff] }
 0x6ff   :  { %v2577_v13 = vadd.f32 %v2545_v38, %v6491_v6 }
 0x700   :  { %v2387_v18 = vpop.f32.mrb[196].mxu0 }
 0x701   :  { %v2546_v23 = vmul.f32 %v5969_v46, %v2387_v18  ;;  %v2389_v28 = vpop.f32.mrb[197].mxu0  ;;  %v2615_v30 = vsel %vm2611_vm2, %v2577_v13, 0.0 }
 0x702   :  { %2616 = vadd.xlane.f32.xlu0 %v2615_v30  ;;  %v6502_v30 = vld [vmem:[#allocation8_spill] sm:$0xff] }
 0x703   :  { %v2578_v43 = vadd.f32 %v2546_v23, %v6492_v62 }
 0x704   :  { %v2392_v52 = vpop.f32.mrb[198].mxu0 }
 0x705   :  { %v2547_v11 = vmul.f32 %v5969_v46, %v2392_v52  ;;  %v2394_v19 = vpop.f32.mrb[199].mxu0  ;;  %v2618_v31 = vsel %vm2611_vm2, %v2578_v43, 0.0 }
 0x706   :  { %2619 = vadd.xlane.f32.xlu0 %v2618_v31  ;;  %v6503_v31 = vld [vmem:[#allocation9_spill] sm:$0xff] }
 0x707   :  { %v2579_v41 = vadd.f32 %v2547_v11, %v6493_v5 }
 0x708   :  { %v2397_v53 = vpop.f32.mrb[200].mxu0 }
 0x709   :  { %v2548_v24 = vmul.f32 %v5969_v46, %v2397_v53  ;;  %v2399_v59 = vpop.f32.mrb[201].mxu0  ;;  %v2621_v14 = vsel %vm2611_vm2, %v2579_v41, 0.0 }
 0x70a   :  { %2622 = vadd.xlane.f32.xlu0 %v2621_v14  ;;  %v6504_v14 = vld [vmem:[#allocation10_spill] sm:$0xff] }
 0x70b   :  { %v2580_v48 = vadd.f32 %v2548_v24, %v6494_v36 }
 0x70c   :  { %v2402_v9 = vpop.f32.mrb[202].mxu0 }
 0x70d   :  { %v2549_v20 = vmul.f32 %v5969_v46, %v2402_v9  ;;  %v2404_v4 = vpop.f32.mrb[203].mxu0  ;;  %v2624_v27 = vsel %vm2611_vm2, %v2580_v48, 0.0 }
 0x70e   :  { %2625 = vadd.xlane.f32.xlu0 %v2624_v27  ;;  %v6505_v27 = vld [vmem:[#allocation11_spill] sm:$0xff] }
 0x70f   :  { %v2581_v54 = vadd.f32 %v2549_v20, %v6495_v26 }
 0x710   :  { %v2407_v61 = vpop.f32.mrb[204].mxu0 }
 0x711   :  { %v2550_v3 = vmul.f32 %v5969_v46, %v2407_v61  ;;  %v2409_v37 = vpop.f32.mrb[205].mxu0  ;;  %v2627_v44 = vsel %vm2611_vm2, %v2581_v54, 0.0 }
 0x712   :  { %2628 = vadd.xlane.f32.xlu0 %v2627_v44  ;;  %v6506_v37 = vld [vmem:[#allocation12_spill] sm:$0xff] }
 0x713   :  { %v2582_v29 = vadd.f32 %v2550_v3, %v6496_v0 }
 0x714   :  { %v2412_v2 = vpop.f32.mrb[206].mxu0 }
 0x715   :  { %v2551_v10 = vmul.f32 %v5969_v46, %v2412_v2  ;;  %v2414_v55 = vpop.f32.mrb[207].mxu0  ;;  %v2630_v63 = vsel %vm2611_vm2, %v2582_v29, 0.0 }
 0x716   :  { %2631 = vadd.xlane.f32.xlu0 %v2630_v63  ;;  %v6507_v55 = vld [vmem:[#allocation13_spill] sm:$0xff] }
 0x717   :  { %v2583_v42 = vadd.f32 %v2551_v10, %v6497_v40 }
 0x718   :  { %v2417_v34 = vpop.f32.mrb[208].mxu0 }
 0x719   :  { %v2552_v16 = vmul.f32 %v5969_v46, %v2417_v34  ;;  %v2419_v39 = vpop.f32.mrb[209].mxu0  ;;  %v2633_v35 = vsel %vm2611_vm2, %v2583_v42, 0.0 }
 0x71a   :  { %2634 = vadd.xlane.f32.xlu0 %v2633_v35  ;;  %v6508_v39 = vld [vmem:[#allocation14_spill] sm:$0xff] }
 0x71b   :  { %v2584_v57 = vadd.f32 %v2552_v16, %v6498_v56 }
 0x71c   :  { %v2422_v47 = vpop.f32.mrb[210].mxu0 }
 0x71d   :  { %v2553_v22 = vmul.f32 %v5969_v46, %v2422_v47  ;;  %v2424_v15 = vpop.f32.mrb[211].mxu0  ;;  %v2636_v17 = vsel %vm2611_vm2, %v2584_v57, 0.0 }
 0x71e   :  { %2637 = vadd.xlane.f32.xlu0 %v2636_v17  ;;  %v6509_v15 = vld [vmem:[#allocation15_spill] sm:$0xff] }
 0x71f   :  { %v2585_v8 = vadd.f32 %v2553_v22, %v6499_v12 }
 0x720   :  { %v2427_v33 = vpop.f32.mrb[212].mxu0 }
 0x721   :  { %v2554_v49 = vmul.f32 %v5969_v46, %v2427_v33  ;;  %v2429_v21 = vpop.f32.mrb[213].mxu0  ;;  %v2639_v25 = vsel %vm2611_vm2, %v2585_v8, 0.0 }
 0x722   :  { %2640 = vadd.xlane.f32.xlu0 %v2639_v25  ;;  %v6510_v21 = vld [vmem:[#allocation16_spill] sm:$0xff] }
 0x723   :  { %v2586_v32 = vadd.f32 %v2554_v49, %v6500_v1 }
 0x724   :  { %v2432_v7 = vpop.f32.mrb[214].mxu0 }
 0x725   :  { %v2555_v60 = vmul.f32 %v5969_v46, %v2432_v7  ;;  %v2434_v38 = vpop.f32.mrb[215].mxu0  ;;  %v2642_v45 = vsel %vm2611_vm2, %v2586_v32, 0.0 }
 0x726   :  { %2643 = vadd.xlane.f32.xlu0 %v2642_v45  ;;  %v6511_v38 = vld [vmem:[#allocation17_spill] sm:$0xff] }
 0x727   :  { %v2587_v6 = vadd.f32 %v2555_v60, %v6501_v51 }
 0x728   :  { %v2437_v13 = vpop.f32.mrb[216].mxu0 }
 0x729   :  { %v2556_v18 = vmul.f32 %v5969_v46, %v2437_v13  ;;  %v2439_v23 = vpop.f32.mrb[217].mxu0  ;;  %v2645_v28 = vsel %vm2611_vm2, %v2587_v6, 0.0 }
 0x72a   :  { %2646 = vadd.xlane.f32.xlu0 %v2645_v28  ;;  %v6512_v23 = vld [vmem:[#allocation18_spill] sm:$0xff] }
 0x72b   :  { %v2588_v62 = vadd.f32 %v2556_v18, %v6502_v30 }
 0x72c   :  { %v2442_v43 = vpop.f32.mrb[218].mxu0 }
 0x72d   :  { %v2557_v52 = vmul.f32 %v5969_v46, %v2442_v43  ;;  %v2444_v11 = vpop.f32.mrb[219].mxu0  ;;  %v2648_v19 = vsel %vm2611_vm2, %v2588_v62, 0.0 }
 0x72e   :  { %2649 = vadd.xlane.f32.xlu0 %v2648_v19  ;;  %v6513_v11 = vld [vmem:[#allocation19_spill] sm:$0xff] }
 0x72f   :  { %v2589_v5 = vadd.f32 %v2557_v52, %v6503_v31 }
 0x730   :  { %v2447_v41 = vpop.f32.mrb[220].mxu0 }
 0x731   :  { %v2558_v53 = vmul.f32 %v5969_v46, %v2447_v41  ;;  %v2449_v24 = vpop.f32.mrb[221].mxu0  ;;  %v2651_v59 = vsel %vm2611_vm2, %v2589_v5, 0.0 }
 0x732   :  { %2652 = vadd.xlane.f32.xlu0 %v2651_v59  ;;  %v6514_v24 = vld [vmem:[#allocation20_spill] sm:$0xff] }
 0x733   :  { %v2590_v36 = vadd.f32 %v2558_v53, %v6504_v14 }
 0x734   :  { %v2452_v48 = vpop.f32.mrb[222].mxu0 }
 0x735   :  { %v2559_v9 = vmul.f32 %v5969_v46, %v2452_v48  ;;  %v2454_v20 = vpop.f32.mrb[223].mxu0  ;;  %v2654_v4 = vsel %vm2611_vm2, %v2590_v36, 0.0 }
 0x736   :  { %2655 = vadd.xlane.f32.xlu0 %v2654_v4  ;;  %v6515_v20 = vld [vmem:[#allocation21_spill] sm:$0xff] }
 0x737   :  { %v2591_v26 = vadd.f32 %v2559_v9, %v6505_v27 }
 0x738   :  { %v2457_v54 = vpop.f32.mrb[224].mxu0 }
 0x739   :  { %v2560_v58 = vmul.f32 %v5969_v46, %v2457_v54  ;;  %v2459_v61 = vpop.f32.mrb[225].mxu0  ;;  %v2657_v3 = vsel %vm2611_vm2, %v2591_v26, 0.0 }
 0x73a   :  { %2658 = vadd.xlane.f32.xlu0 %v2657_v3  ;;  %v6516_v61 = vld [vmem:[#allocation22_spill] sm:$0xff] }
 0x73b   :  { %v2592_v44 = vadd.f32 %v2560_v58, %v6506_v37 }
 0x73c   :  { %v2462_v0 = vpop.f32.mrb[226].mxu0 }
 0x73d   :  { %v2561_v29 = vmul.f32 %v5969_v46, %v2462_v0  ;;  %v2464_v2 = vpop.f32.mrb[227].mxu0  ;;  %v2660_v10 = vsel %vm2611_vm2, %v2592_v44, 0.0 }
 0x73e   :  { %2661 = vadd.xlane.f32.xlu1 %v2660_v10  ;;  %v6517_v2 = vld [vmem:[#allocation23_spill] sm:$0xff] }
 0x73f   :  { %v2593_v63 = vadd.f32 %v2561_v29, %v6507_v55 }
 0x740   :  { %v2467_v40 = vpop.f32.mrb[228].mxu0 }
 0x741   :  { %v2562_v42 = vmul.f32 %v5969_v46, %v2467_v40  ;;  %v2469_v34 = vpop.f32.mrb[229].mxu0  ;;  %v2663_v16 = vsel %vm2611_vm2, %v2593_v63, 0.0 }
 0x742   :  { %2664 = vadd.xlane.f32.xlu1 %v2663_v16  ;;  %v6518_v34 = vld [vmem:[#allocation24_spill] sm:$0xff] }
 0x743   :  { %v2594_v35 = vadd.f32 %v2562_v42, %v6508_v39 }
 0x744   :  { %v2472_v56 = vpop.f32.mrb[230].mxu0 }
 0x745   :  { %v2563_v57 = vmul.f32 %v5969_v46, %v2472_v56  ;;  %v2474_v47 = vpop.f32.mrb[231].mxu0  ;;  %v2666_v22 = vsel %vm2611_vm2, %v2594_v35, 0.0 }
 0x746   :  { %2667 = vadd.xlane.f32.xlu1 %v2666_v22  ;;  %v6519_v47 = vld [vmem:[#allocation26_spill] sm:$0xff] }
 0x747   :  { %v2595_v17 = vadd.f32 %v2563_v57, %v6509_v15 }
 0x748   :  { %v2477_v12 = vpop.f32.mrb[232].mxu0 }
 0x749   :  { %v2564_v8 = vmul.f32 %v5969_v46, %v2477_v12  ;;  %v2479_v33 = vpop.f32.mrb[233].mxu0  ;;  %v2669_v49 = vsel %vm2611_vm2, %v2595_v17, 0.0 }
 0x74a   :  { %2670 = vadd.xlane.f32.xlu1 %v2669_v49  ;;  %v6520_v33 = vld [vmem:[#allocation27_spill] sm:$0xff] }
 0x74b   :  { %v2596_v25 = vadd.f32 %v2564_v8, %v6510_v21 }
 0x74c   :  { %v2482_v1 = vpop.f32.mrb[234].mxu0 }
 0x74d   :  { %v2565_v32 = vmul.f32 %v5969_v46, %v2482_v1  ;;  %v2484_v7 = vpop.f32.mrb[235].mxu0  ;;  %v2672_v60 = vsel %vm2611_vm2, %v2596_v25, 0.0 }
 0x74e   :  { %2673 = vadd.xlane.f32.xlu1 %v2672_v60  ;;  %v6521_v7 = vld [vmem:[#allocation28_spill] sm:$0xff] }
 0x74f   :  { %v2597_v45 = vadd.f32 %v2565_v32, %v6511_v38 }
 0x750   :  { %v2487_v51 = vpop.f32.mrb[236].mxu0 }
 0x751   :  { %v2566_v6 = vmul.f32 %v5969_v46, %v2487_v51  ;;  %v2489_v13 = vpop.f32.mrb[237].mxu0  ;;  %v2675_v18 = vsel %vm2611_vm2, %v2597_v45, 0.0  ;;  %v2709_v45 = vlaneseq  ;;  %v1019_v51 = vld [vmem:[%s6227_s5] sm:$0x1] }
 0x752   :  { %2676 = vadd.xlane.f32.xlu1 %v2675_v18  ;;  %v3283_v18 = vld [vmem:[%s6227_s5 + $0x2] sm:$0x1] }
 0x753   :  { %v2598_v28 = vadd.f32 %v2566_v6, %v6512_v23  ;;  %v3244_v6 = vld [vmem:[%s6227_s5 + $0x1] sm:$0x1] }
 0x754   :  { %v2492_v30 = vpop.f32.mrb[238].mxu0  ;;  %v1815_v13 = vadd.f32 %v3244_v6, %v1019_v51 }
 0x755   :  { %v2567_v62 = vmul.f32 %v5969_v46, %v2492_v30  ;;  %v2494_v43 = vpop.f32.mrb[239].mxu0  ;;  %v2678_v52 = vsel %vm2611_vm2, %v2598_v28, 0.0 }
 0x756   :  { %2679 = vadd.xlane.f32.xlu1 %v2678_v52  ;;  %v2610_v23 = vadd.f32 %v3283_v18, %v1815_v13 }
 0x757   :  { %v2599_v19 = vadd.f32 %v2567_v62, %v6513_v11 }
 0x758   :  { %v2497_v31 = vpop.f32.mrb[240].mxu0 }
 0x759   :  { %v2568_v5 = vmul.f32 %v5969_v46, %v2497_v31  ;;  %v2499_v41 = vpop.f32.mrb[241].mxu0  ;;  %v2681_v53 = vsel %vm2611_vm2, %v2599_v19, 0.0 }
 0x75a   :  { %2682 = vadd.xlane.f32.xlu1 %v2681_v53 }
 0x75b   :  { %v2600_v59 = vadd.f32 %v2568_v5, %v6514_v24 }
 0x75c   :  { %v2502_v14 = vpop.f32.mrb[242].mxu0 }
 0x75d   :  { %v2569_v36 = vmul.f32 %v5969_v46, %v2502_v14  ;;  %v2504_v48 = vpop.f32.mrb[243].mxu0  ;;  %v2684_v9 = vsel %vm2611_vm2, %v2600_v59, 0.0 }
 0x75e   :  { %2685 = vadd.xlane.f32.xlu1 %v2684_v9 }
 0x75f   :  { %v2601_v4 = vadd.f32 %v2569_v36, %v6515_v20 }
 0x760   :  { %v2507_v27 = vpop.f32.mrb[244].mxu0 }
 0x761   :  { %v2570_v26 = vmul.f32 %v5969_v46, %v2507_v27  ;;  %v2509_v54 = vpop.f32.mrb[245].mxu0  ;;  %v2687_v58 = vsel %vm2611_vm2, %v2601_v4, 0.0 }
 0x762   :  { %2688 = vadd.xlane.f32.xlu1 %v2687_v58  ;;  %v3071_v54 = vld [vmem:[%s6230_s8] sm:$0xff]  ;;  %v3072_v58 = vld [vmem:[%s6230_s8 + $0x8] sm:$0xff] }
 0x763   :  { %v2602_v3 = vadd.f32 %v2570_v26, %v6516_v61 }
 0x764   :  { %v2512_v37 = vpop.f32.mrb[246].mxu0 }
 0x765   :  { %v2571_v44 = vmul.f32 %v5969_v46, %v2512_v37  ;;  %v2514_v0 = vpop.f32.mrb[247].mxu0  ;;  %v2690_v29 = vsel %vm2611_vm2, %v2602_v3, 0.0  ;;  %v3841_v3 = vpack.c.bf16 %v3072_v58, %v3071_v54 }
 0x766   :  { %2691 = vadd.xlane.f32.xlu1 %v2690_v29 }
 0x767   :  { %v2603_v10 = vadd.f32 %v2571_v44, %v6517_v2  ;;  %3842 = vmatpush3.bf16.msra.mxu1 %v3841_v3 }
 0x768   :  { %v2517_v55 = vpop.f32.mrb[248].mxu0  ;;  %3843 = vmatprep.subr.bf16.mxu1 %v6483_v50 }
 0x769   :  { %v2572_v63 = vmul.f32 %v5969_v46, %v2517_v55  ;;  %v2519_v40 = vpop.f32.mrb[249].mxu0  ;;  %v2693_v42 = vsel %vm2611_vm2, %v2603_v10, 0.0 }
 0x76a   :  { %2694 = vadd.xlane.f32.xlu1 %v2693_v42 }
 0x76b   :  { %v2604_v16 = vadd.f32 %v2572_v63, %v6518_v34 }
 0x76c   :  { %v2522_v39 = vpop.f32.mrb[250].mxu0 }
 0x76d   :  { %v2573_v35 = vmul.f32 %v5969_v46, %v2522_v39  ;;  %v2524_v56 = vpop.f32.mrb[251].mxu0  ;;  %v2696_v57 = vsel %vm2611_vm2, %v2604_v16, 0.0 }
 0x76e   :  { %2697 = vadd.xlane.f32.xlu1 %v2696_v57 }
 0x76f   :  { %v2605_v22 = vadd.f32 %v2573_v35, %v6519_v47 }
 0x770   :  { %v2527_v15 = vpop.f32.mrb[252].mxu0 }
 0x771   :  { %v2574_v17 = vmul.f32 %v5969_v46, %v2527_v15  ;;  %v2529_v12 = vpop.f32.mrb[253].mxu0  ;;  %v2699_v8 = vsel %vm2611_vm2, %v2605_v22, 0.0 }
 0x772   :  { %2700 = vadd.xlane.f32.xlu1 %v2699_v8 }
 0x773   :  { %v2606_v49 = vadd.f32 %v2574_v17, %v6520_v33 }
 0x774   :  { %v2532_v21 = vpop.f32.mrb[254].mxu0 }
 0x775   :  { %v2575_v25 = vmul.f32 %v5969_v46, %v2532_v21  ;;  %v2534_v1 = vpop.f32.mrb[255].mxu0  ;;  %v2702_v32 = vsel %vm2611_vm2, %v2606_v49, 0.0  ;;  %v2710_v46 = vshrl.u32 %v2709_v45, 7 }
 0x776   :  { %2703 = vadd.xlane.f32.xlu1 %v2702_v32 }
 0x777   :  { %v2607_v60 = vadd.f32 %v2575_v25, %v6521_v7  ;;  %v2711_v28 = vsub.s32 0, %v2710_v46 }
 0x779   :  { %v2705_v38 = vsel %vm2611_vm2, %v2607_v60, 0.0  ;;  %v6076_v30 = vrot.slane %v2610_v23, %v2711_v28  ;;  %v3073_v23 = vld [vmem:[%s6230_s8 + $0x10] sm:$0xff]  ;;  %v3074_v28 = vld [vmem:[%s6230_s8 + $0x18] sm:$0xff] }
 0x77a   :  { %2706 = vadd.xlane.f32.xlu1 %v2705_v38 }
 0x78b   :  { %v2614_v62 = vpop.xlane.xlu0 %2613 }
 0x78c   :  { %v2714_v43 = vadd.f32 %v6076_v30, %v2614_v62 }
 0x78e   :  { %v2746_v52 = vmul.f32 0.33333334, %v2714_v43  ;;  %v3844_v43 = vpack.c.bf16 %v3074_v28, %v3073_v23  ;;  %v2782_v28 = vld [vmem:[%s6228_s6 + $0x20] sm:$0xff] }
 0x78f   :  { %v2617_v11 = vpop.xlane.xlu0 %2616 }
 0x790   :  { %v2715_v19 = vadd.f32 %v6076_v30, %v2617_v11  ;;  %2796 = vperm.xlu0 %3851, %v2746_v52   ;;  %3845 = vmatpush3.bf16.msra.mxu1 %v3844_v43 }
 0x792   :  { %v2747_v31 = vmul.f32 0.33333334, %v2715_v19 }
 0x793   :  { %v2620_v5 = vpop.xlane.xlu0 %2619 }
 0x794   :  { %v2716_v41 = vadd.f32 %v6076_v30, %v2620_v5  ;;  %2801 = vperm.xlu1 %3852, %v2747_v31  }
 0x796   :  { %v2748_v53 = vmul.f32 0.33333334, %v2716_v41 }
 0x797   :  { %v2623_v24 = vpop.xlane.xlu0 %2622 }
 0x798   :  { %v2717_v59 = vadd.f32 %v6076_v30, %v2623_v24  ;;  %2806 = vperm.xlu1 %3852, %v2748_v53  }
 0x79a   :  { %v2749_v14 = vmul.f32 0.33333334, %v2717_v59 }
 0x79b   :  { %v2626_v36 = vpop.xlane.xlu0 %2625 }
 0x79c   :  { %v2718_v48 = vadd.f32 %v6076_v30, %v2626_v36  ;;  %2811 = vperm.xlu1 %3852, %v2749_v14  }
 0x79e   :  { %v2750_v9 = vmul.f32 0.33333334, %v2718_v48 }
 0x79f   :  { %v2629_v20 = vpop.xlane.xlu0 %2628 }
 0x7a0   :  { %v2719_v4 = vadd.f32 %v6076_v30, %v2629_v20  ;;  %2816 = vperm.xlu1 %3852, %v2750_v9  }
 0x7a2   :  { %v2751_v27 = vmul.f32 0.33333334, %v2719_v4 }
 0x7a3   :  { %v2632_v26 = vpop.xlane.xlu0 %2631 }
 0x7a4   :  { %v2720_v61 = vadd.f32 %v6076_v30, %v2632_v26  ;;  %2821 = vperm.xlu1 %3852, %v2751_v27  }
 0x7a6   :  { %v2752_v37 = vmul.f32 0.33333334, %v2720_v61 }
 0x7a7   :  { %v2635_v44 = vpop.xlane.xlu0 %2634 }
 0x7a8   :  { %v2721_v0 = vadd.f32 %v6076_v30, %v2635_v44  ;;  %2826 = vperm.xlu1 %3852, %v2752_v37  }
 0x7aa   :  { %v2753_v29 = vmul.f32 0.33333334, %v2721_v0 }
 0x7ab   :  { %v2638_v2 = vpop.xlane.xlu0 %2637 }
 0x7ac   :  { %v2722_v10 = vadd.f32 %v6076_v30, %v2638_v2  ;;  %2831 = vperm.xlu1 %3852, %v2753_v29  }
 0x7ae   :  { %v2754_v55 = vmul.f32 0.33333334, %v2722_v10 }
 0x7af   :  { %v2641_v63 = vpop.xlane.xlu0 %2640 }
 0x7b0   :  { %v2723_v40 = vadd.f32 %v6076_v30, %v2641_v63  ;;  %2836 = vperm.xlu1 %3852, %v2754_v55  }
 0x7b2   :  { %v2755_v42 = vmul.f32 0.33333334, %v2723_v40 }
 0x7b3   :  { %v2644_v39 = vpop.xlane.xlu0 %2643 }
 0x7b4   :  { %2841 = vperm.xlu1 %3852, %v2755_v42   ;;  %v2724_v49 = vadd.f32 %v6076_v30, %v2644_v39 }
 0x7b6   :  { %v2756_v32 = vmul.f32 0.33333334, %v2724_v49 }
 0x7b7   :  { %v2647_v47 = vpop.xlane.xlu0 %2646 }
 0x7b8   :  { %v2725_v7 = vadd.f32 %v6076_v30, %v2647_v47 }
 0x7ba   :  { %v2757_v6 = vmul.f32 0.33333334, %v2725_v7 }
 0x7bb   :  { %v2650_v33 = vpop.xlane.xlu0 %2649 }
 0x7bc   :  { %v2726_v13 = vadd.f32 %v6076_v30, %v2650_v33 }
 0x7be   :  { %v2758_v11 = vmul.f32 0.33333334, %v2726_v13 }
 0x7bf   :  { %v2653_v38 = vpop.xlane.xlu0 %2652 }
 0x7c0   :  { %v2727_v19 = vadd.f32 %v6076_v30, %v2653_v38  ;;  %v2778_v38 = vld [vmem:[%s6228_s6] sm:$0xff] }
 0x7c2   :  { %v2759_v53 = vmul.f32 0.33333334, %v2727_v19  ;;  %v2783_v19 = vld [vmem:[%s6228_s6 + $0x28] sm:$0xff] }
 0x7c3   :  { %v2656_v52 = vpop.xlane.xlu0 %2655 }
 0x7c4   :  { %v2728_v24 = vadd.f32 %v6076_v30, %v2656_v52 }
 0x7c6   :  { %v2760_v9 = vmul.f32 0.33333334, %v2728_v24  ;;  %v2784_v24 = vld [vmem:[%s6228_s6 + $0x30] sm:$0xff] }
 0x7c7   :  { %v2659_v14 = vpop.xlane.xlu0 %2658 }
 0x7c8   :  { %v2729_v20 = vadd.f32 %v6076_v30, %v2659_v14 }
 0x7ca   :  { %v2761_v54 = vmul.f32 0.33333334, %v2729_v20  ;;  %v2785_v20 = vld [vmem:[%s6228_s6 + $0x38] sm:$0xff] }
 0x7cb   :  { %v2662_v34 = vpop.xlane.xlu1 %2661 }
 0x7cc   :  { %v2730_v16 = vadd.f32 %v6076_v30, %v2662_v34 }
 0x7ce   :  { %v2762_v50 = vmul.f32 0.33333334, %v2730_v16 }
 0x7cf   :  { %v2665_v35 = vpop.xlane.xlu1 %2664 }
 0x7d0   :  { %v2731_v56 = vadd.f32 %v6076_v30, %v2665_v35  ;;  %2929 = vperm.xlu1 %3852, %v2762_v50  }
 0x7d2   :  { %v2763_v57 = vmul.f32 0.33333334, %v2731_v56 }
 0x7d3   :  { %v2668_v22 = vpop.xlane.xlu1 %2667 }
 0x7d4   :  { %v2732_v15 = vadd.f32 %v6076_v30, %v2668_v22  ;;  %2934 = vperm.xlu1 %3852, %v2763_v57   ;;  %v3988_v22 = vmov 0.0  }
 0x7d5   :  { %3549 = vmatprep.mubr.msk.f32.mxu1 %vm3987_vm3, %v3988_v22 }
 0x7d6   :  { %v2764_v17 = vmul.f32 0.33333334, %v2732_v15 }
 0x7d7   :  { %v2671_v12 = vpop.xlane.xlu1 %2670 }
 0x7d8   :  { %v2733_v8 = vadd.f32 %v6076_v30, %v2671_v12  ;;  %2939 = vperm.xlu1 %3852, %v2764_v17  }
 0x7da   :  { %v2765_v21 = vmul.f32 0.33333334, %v2733_v8 }
 0x7db   :  { %v2674_v25 = vpop.xlane.xlu1 %2673 }
 0x7dc   :  { %v2734_v1 = vadd.f32 %v6076_v30, %v2674_v25  ;;  %2944 = vperm.xlu1 %3852, %v2765_v21  }
 0x7de   :  { %v2766_v60 = vmul.f32 0.33333334, %v2734_v1 }
 0x7df   :  { %v2677_v45 = vpop.xlane.xlu1 %2676 }
 0x7e0   :  { %v2735_v51 = vadd.f32 %v6076_v30, %v2677_v45  ;;  %2949 = vperm.xlu0 %3851, %v2766_v60   ;;  %2846 = vperm.xlu1 %3852, %v2756_v32   ;;  %v2779_v60 = vld [vmem:[%s6228_s6 + $0x8] sm:$0xff]  ;;  %v2780_v45 = vld [vmem:[%s6228_s6 + $0x10] sm:$0xff] }
 0x7e2   :  { %v2767_v46 = vmul.f32 0.33333334, %v2735_v51 }
 0x7e3   :  { %v2680_v18 = vpop.xlane.xlu1 %2679 }
 0x7e4   :  { %v2736_v62 = vadd.f32 %v6076_v30, %v2680_v18  ;;  %2954 = vperm.xlu0 %3851, %v2767_v46   ;;  %2851 = vperm.xlu1 %3852, %v2757_v6   ;;  %v2781_v46 = vld [vmem:[%s6228_s6 + $0x18] sm:$0xff] }
 0x7e6   :  { %v2768_v31 = vmul.f32 0.33333334, %v2736_v62 }
 0x7e7   :  { %v2683_v5 = vpop.xlane.xlu1 %2682 }
 0x7e8   :  { %v2737_v41 = vadd.f32 %v6076_v30, %v2683_v5  ;;  %2959 = vperm.xlu0 %3851, %v2768_v31   ;;  %2856 = vperm.xlu1 %3852, %v2758_v11  }
 0x7ea   :  { %v2769_v59 = vmul.f32 0.33333334, %v2737_v41 }
 0x7eb   :  { %v2686_v36 = vpop.xlane.xlu1 %2685 }
 0x7ec   :  { %v2738_v48 = vadd.f32 %v6076_v30, %v2686_v36  ;;  %2964 = vperm.xlu0 %3851, %v2769_v59   ;;  %2861 = vperm.xlu1 %3852, %v2759_v53  }
 0x7ee   :  { %v2770_v4 = vmul.f32 0.33333334, %v2738_v48 }
 0x7ef   :  { %v2689_v27 = vpop.xlane.xlu1 %2688 }
 0x7f0   :  { %v2739_v26 = vadd.f32 %v6076_v30, %v2689_v27  ;;  %2969 = vperm.xlu0 %3851, %v2770_v4   ;;  %2866 = vperm.xlu1 %3852, %v2760_v9  }
 0x7f2   :  { %v2771_v58 = vmul.f32 0.33333334, %v2739_v26  ;;  %v2786_v26 = vld [vmem:[%s6228_s6 + $0x40] sm:$0xff] }
 0x7f3   :  { %v2692_v61 = vpop.xlane.xlu1 %2691 }
 0x7f4   :  { %v2740_v3 = vadd.f32 %v6076_v30, %v2692_v61  ;;  %2974 = vperm.xlu0 %3851, %v2771_v58   ;;  %2871 = vperm.xlu1 %3852, %v2761_v54  }
 0x7f6   :  { %v2772_v37 = vmul.f32 0.33333334, %v2740_v3 }
 0x7f7   :  { %v2695_v44 = vpop.xlane.xlu1 %2694 }
 0x7f8   :  { %v2741_v0 = vadd.f32 %v6076_v30, %v2695_v44  ;;  %2979 = vperm.xlu0 %3851, %v2772_v37  }
 0x7fa   :  { %v2773_v29 = vmul.f32 0.33333334, %v2741_v0 }
 0x7fb   :  { %v2698_v2 = vpop.xlane.xlu1 %2697 }
 0x7fc   :  { %v2742_v10 = vadd.f32 %v6076_v30, %v2698_v2  ;;  %2984 = vperm.xlu0 %3851, %v2773_v29   ;;  %v2787_v29 = vld [vmem:[%s6228_s6 + $0x48] sm:$0xff] }
 0x7fe   :  { %v2774_v55 = vmul.f32 0.33333334, %v2742_v10 }
 0x7ff   :  { %v2701_v63 = vpop.xlane.xlu1 %2700 }
 0x800   :  { %v2743_v40 = vadd.f32 %v6076_v30, %v2701_v63  ;;  %2989 = vperm.xlu0 %3851, %v2774_v55  }
 0x802   :  { %v2775_v42 = vmul.f32 0.33333334, %v2743_v40 }
 0x803   :  { %v2704_v34 = vpop.xlane.xlu1 %2703 }
 0x804   :  { %v2744_v16 = vadd.f32 %v6076_v30, %v2704_v34  ;;  %2994 = vperm.xlu0 %3851, %v2775_v42   ;;  %v2788_v42 = vld [vmem:[%s6228_s6 + $0x50] sm:$0xff] }
 0x806   :  { %v2776_v39 = vmul.f32 0.33333334, %v2744_v16 }
 0x807   :  { %v2707_v50 = vpop.xlane.xlu1 %2706 }
 0x808   :  { %v2745_v35 = vadd.f32 %v6076_v30, %v2707_v50  ;;  %2999 = vperm.xlu0 %3851, %v2776_v39  }
 0x80a   :  { %v2777_v56 = vmul.f32 0.33333334, %v2745_v35 }
 0x80c   :  { %3004 = vperm.xlu0 %3851, %v2777_v56  }
 0x80f   :  { %v2797_v7 = vpop.permute.xlu0 %2796 }
 0x810   :  { %v2874_v18 = vmul.f32 %v2797_v7, %v2778_v38 }
 0x812   :  { %v2890_v31 = vsel %vm2611_vm2, %v2874_v18, 0.0 }
 0x813   :  { %v2802_v57 = vpop.permute.xlu1 %2801 }
 0x814   :  { %v2875_v13 = vmul.f32 %v2802_v57, %v2779_v60 }
 0x816   :  { %v2891_v52 = vsel %vm2611_vm2, %v2875_v13, 0.0 }
 0x817   :  { %v2807_v47 = vpop.permute.xlu1 %2806  ;;  %v2892_v53 = vadd.f32 %v2891_v52, %v2890_v31 }
 0x818   :  { %v2876_v23 = vmul.f32 %v2807_v47, %v2780_v45  ;;  %v2789_v47 = vld [vmem:[%s6228_s6 + $0x58] sm:$0xff] }
 0x81a   :  { %v2893_v5 = vsel %vm2611_vm2, %v2876_v23, 0.0 }
 0x81b   :  { %v2812_v15 = vpop.permute.xlu1 %2811  ;;  %v2894_v9 = vadd.f32 %v2893_v5, %v2892_v53 }
 0x81c   :  { %v2877_v11 = vmul.f32 %v2812_v15, %v2781_v46 }
 0x81e   :  { %v2895_v36 = vsel %vm2611_vm2, %v2877_v11, 0.0 }
 0x81f   :  { %v2817_v17 = vpop.permute.xlu1 %2816  ;;  %v2896_v54 = vadd.f32 %v2895_v36, %v2894_v9 }
 0x820   :  { %v2878_v41 = vmul.f32 %v2817_v17, %v2782_v28 }
 0x822   :  { %v2897_v4 = vsel %vm2611_vm2, %v2878_v41, 0.0  ;;  %v2793_v41 = vld [vmem:[%s6228_s6 + $0x78] sm:$0xff] }
 0x823   :  { %v2822_v12 = vpop.permute.xlu1 %2821  ;;  %v2898_v44 = vadd.f32 %v2897_v4, %v2896_v54 }
 0x824   :  { %v2879_v48 = vmul.f32 %v2822_v12, %v2783_v19 }
 0x826   :  { %v2899_v61 = vsel %vm2611_vm2, %v2879_v48, 0.0 }
 0x827   :  { %v2827_v8 = vpop.permute.xlu1 %2826  ;;  %v2900_v40 = vadd.f32 %v2899_v61, %v2898_v44 }
 0x828   :  { %v2880_v27 = vmul.f32 %v2827_v8, %v2784_v24 }
 0x82a   :  { %v2901_v10 = vsel %vm2611_vm2, %v2880_v27, 0.0 }
 0x82b   :  { %v2832_v33 = vpop.permute.xlu1 %2831  ;;  %v2902_v56 = vadd.f32 %v2901_v10, %v2900_v40 }
 0x82c   :  { %v2881_v3 = vmul.f32 %v2832_v33, %v2785_v20 }
 0x82e   :  { %v2903_v16 = vsel %vm2611_vm2, %v2881_v3, 0.0 }
 0x82f   :  { %v2837_v49 = vpop.permute.xlu1 %2836  ;;  %v2904_v8 = vadd.f32 %v2903_v16, %v2902_v56 }
 0x830   :  { %v2882_v0 = vmul.f32 %v2837_v49, %v2786_v26  ;;  %v2790_v49 = vld [vmem:[%s6228_s6 + $0x60] sm:$0xff] }
 0x832   :  { %v2905_v57 = vsel %vm2611_vm2, %v2882_v0, 0.0 }
 0x833   :  { %v2842_v21 = vpop.permute.xlu1 %2841 }
 0x834   :  { %v2883_v39 = vmul.f32 %v2842_v21, %v2787_v29 }
 0x84f   :  { %v2930_v25 = vpop.permute.xlu1 %2929 }
 0x850   :  { %v3007_v55 = vmul.f32 %v2930_v25, %v2778_v38 }
 0x852   :  { %v3023_v22 = vsel %vm2611_vm2, %v3007_v55, 0.0 }
 0x853   :  { %v2935_v1 = vpop.permute.xlu1 %2934 }
 0x854   :  { %v3008_v37 = vmul.f32 %v2935_v1, %v2779_v60  ;;  %v2907_v1 = vsel %vm2611_vm2, %v2883_v39, 0.0  ;;  %v2906_v60 = vadd.f32 %v2905_v57, %v2904_v8 }
 0x856   :  { %v3024_v50 = vsel %vm2611_vm2, %v3008_v37, 0.0  ;;  %v2908_v18 = vadd.f32 %v2907_v1, %v2906_v60 }
 0x857   :  { %v2940_v32 = vpop.permute.xlu1 %2939  ;;  %v3025_v33 = vadd.f32 %v3024_v50, %v3023_v22 }
 0x858   :  { %v3009_v63 = vmul.f32 %v2940_v32, %v2780_v45  ;;  %v2791_v45 = vld [vmem:[%s6228_s6 + $0x68] sm:$0xff] }
 0x85a   :  { %v3026_v15 = vsel %vm2611_vm2, %v3009_v63, 0.0 }
 0x85b   :  { %v2945_v30 = vpop.permute.xlu1 %2944  ;;  %v3027_v38 = vadd.f32 %v3026_v15, %v3025_v33 }
 0x85c   :  { %v3010_v35 = vmul.f32 %v2945_v30, %v2781_v46 }
 0x85e   :  { %v3028_v32 = vsel %vm2611_vm2, %v3010_v35, 0.0 }
 0x85f   :  { %v2950_v51 = vpop.permute.xlu0 %2949  ;;  %v2847_v6 = vpop.permute.xlu1 %2846  ;;  %v3029_v23 = vadd.f32 %v3028_v32, %v3027_v38 }
 0x860   :  { %v3011_v17 = vmul.f32 %v2950_v51, %v2782_v28  ;;  %v2884_v12 = vmul.f32 %v2847_v6, %v2788_v42  ;;  %v2792_v28 = vld [vmem:[%s6228_s6 + $0x70] sm:$0xff] }
 0x862   :  { %v3030_v51 = vsel %vm2611_vm2, %v3011_v17, 0.0  ;;  %v2909_v6 = vsel %vm2611_vm2, %v2884_v12, 0.0 }
 0x863   :  { %v2955_v62 = vpop.permute.xlu0 %2954  ;;  %v2852_v43 = vpop.permute.xlu1 %2851  ;;  %v3031_v31 = vadd.f32 %v3030_v51, %v3029_v23  ;;  %v2910_v5 = vadd.f32 %v2909_v6, %v2908_v18 }
 0x864   :  { %v3012_v7 = vmul.f32 %v2955_v62, %v2783_v19  ;;  %v2885_v30 = vmul.f32 %v2852_v43, %v2789_v47 }
 0x866   :  { %v3032_v43 = vsel %vm2611_vm2, %v3012_v7, 0.0  ;;  %v2911_v52 = vsel %vm2611_vm2, %v2885_v30, 0.0 }
 0x867   :  { %v2960_v59 = vpop.permute.xlu0 %2959  ;;  %v2857_v14 = vpop.permute.xlu1 %2856  ;;  %v3033_v48 = vadd.f32 %v3032_v43, %v3031_v31  ;;  %v2912_v9 = vadd.f32 %v2911_v52, %v2910_v5  ;;  %v3284_v43 = vld [vmem:[%s6229_s7] ss:$0 sm:$0xff] }
 0x868   :  { %v3013_v13 = vmul.f32 %v2960_v59, %v2784_v24  ;;  %v2886_v46 = vmul.f32 %v2857_v14, %v2790_v49  ;;  %v3285_v5 = vld [vmem:[%s6231_s9] ss:$0 sm:$0xff] }
 0x86a   :  { %v3034_v24 = vsel %vm2611_vm2, %v3013_v13, 0.0  ;;  %v2913_v59 = vsel %vm2611_vm2, %v2886_v46, 0.0 }
 0x86b   :  { %v2965_v58 = vpop.permute.xlu0 %2964  ;;  %v2862_v2 = vpop.permute.xlu1 %2861  ;;  %v3035_v61 = vadd.f32 %v3034_v24, %v3033_v48  ;;  %v2914_v3 = vadd.f32 %v2913_v59, %v2912_v9 }
 0x86c   :  { %v3014_v11 = vmul.f32 %v2965_v58, %v2785_v20  ;;  %v2887_v19 = vmul.f32 %v2862_v2, %v2791_v45 }
 0x86e   :  { %v3036_v27 = vsel %vm2611_vm2, %v3014_v11, 0.0  ;;  %v2915_v20 = vsel %vm2611_vm2, %v2887_v19, 0.0 }
 0x86f   :  { %v2970_v34 = vpop.permute.xlu0 %2969  ;;  %v2867_v21 = vpop.permute.xlu1 %2866  ;;  %v3037_v2 = vadd.f32 %v3036_v27, %v3035_v61  ;;  %v2916_v10 = vadd.f32 %v2915_v20, %v2914_v3 }
 0x870   :  { %v3015_v14 = vmul.f32 %v2970_v34, %v2786_v26  ;;  %v2888_v36 = vmul.f32 %v2867_v21, %v2792_v28 }
 0x872   :  { %v3038_v37 = vsel %vm2611_vm2, %v3015_v14, 0.0  ;;  %v2917_v44 = vsel %vm2611_vm2, %v2888_v36, 0.0 }
 0x873   :  { %v2975_v25 = vpop.permute.xlu0 %2974  ;;  %v2872_v53 = vpop.permute.xlu1 %2871  ;;  %v3039_v34 = vadd.f32 %v3038_v37, %v3037_v2  ;;  %v2918_v16 = vadd.f32 %v2917_v44, %v2916_v10 }
 0x874   :  { %v3016_v54 = vmul.f32 %v2975_v25, %v2787_v29  ;;  %v2889_v58 = vmul.f32 %v2872_v53, %v2793_v41 }
 0x876   :  { %v3040_v55 = vsel %vm2611_vm2, %v3016_v54, 0.0  ;;  %v2919_v63 = vsel %vm2611_vm2, %v2889_v58, 0.0 }
 0x877   :  { %v2980_v62 = vpop.permute.xlu0 %2979  ;;  %v3041_v50 = vadd.f32 %v3040_v55, %v3039_v34  ;;  %v2920_v35 = vadd.f32 %v2919_v63, %v2918_v16 }
 0x878   :  { %v3017_v0 = vmul.f32 %v2980_v62, %v2788_v42 }
 0x879   :  { %v2921_v17 = vrot.slane %v2920_v35, 4 }
 0x87a   :  { %v3042_v29 = vsel %vm2611_vm2, %v3017_v0, 0.0 }
 0x87b   :  { %v2985_v4 = vpop.permute.xlu0 %2984  ;;  %v3043_v42 = vadd.f32 %v3042_v29, %v3041_v50  ;;  %v2922_v1 = vadd.f32 %v2921_v17, %v2920_v35 }
 0x87c   :  { %v3018_v40 = vmul.f32 %v2985_v4, %v2789_v47 }
 0x87d   :  { %v2923_v38 = vrot.slane %v2922_v1, 2 }
 0x87e   :  { %v3044_v57 = vsel %vm2611_vm2, %v3018_v40, 0.0 }
 0x87f   :  { %v2990_v26 = vpop.permute.xlu0 %2989  ;;  %v3045_v12 = vadd.f32 %v3044_v57, %v3043_v42  ;;  %v2924_v6 = vadd.f32 %v2923_v38, %v2922_v1 }
 0x880   :  { %v3019_v39 = vmul.f32 %v2990_v26, %v2790_v49 }
 0x881   :  { %v2925_v18 = vrot.slane %v2924_v6, 1 }
 0x882   :  { %v3046_v15 = vsel %vm2611_vm2, %v3019_v39, 0.0 }
 0x883   :  { %v2995_v56 = vpop.permute.xlu0 %2994  ;;  %v3047_v21 = vadd.f32 %v3046_v15, %v3045_v12 }
 0x884   :  { %v3020_v22 = vmul.f32 %v2995_v56, %v2791_v45 }
 0x886   :  { %v3048_v33 = vsel %vm2611_vm2, %v3020_v22, 0.0 }
 0x887   :  { %v3000_v8 = vpop.permute.xlu0 %2999  ;;  %v3049_v49 = vadd.f32 %v3048_v33, %v3047_v21 }
 0x888   :  { %v3021_v47 = vmul.f32 %v3000_v8, %v2792_v28  ;;  %v2926_v28 = vadd.f32 %v2925_v18, %v2924_v6 }
 0x88a   :  { %v3050_v25 = vsel %vm2611_vm2, %v3021_v47, 0.0 }
 0x88b   :  { %v3005_v32 = vpop.permute.xlu0 %3004  ;;  %v3051_v30 = vadd.f32 %v3050_v25, %v3049_v49 }
 0x88c   :  { %v3022_v7 = vmul.f32 %v3005_v32, %v2793_v41 }
 0x88e   :  { %v3052_v60 = vsel %vm2611_vm2, %v3022_v7, 0.0 }
 0x88f   :  { %v3053_v45 = vadd.f32 %v3052_v60, %v3051_v30 }
 0x891   :  { %v3054_v51 = vrot.slane %v3053_v45, 4 }
 0x893   :  { %v3055_v13 = vadd.f32 %v3054_v51, %v3053_v45 }
 0x895   :  { %v3056_v46 = vrot.slane %v3055_v13, 2 }
 0x897   :  { %v3057_v23 = vadd.f32 %v3056_v46, %v3055_v13 }
 0x899   :  { %v3058_v62 = vrot.slane %v3057_v23, 1 }
 0x89b   :  { %v3059_v52 = vadd.f32 %v3058_v62, %v3057_v23 }
 0x89d   :  { %v3061_v11 = vsel %vm3060_vm4, %v2926_v28, %v3059_v52 }
 0x89e   :  { %v3069_v19 = vadd.f32 %v3284_v43, %v3061_v11 }
 0x8a0   :  { %v3070_v31 = vmax.f32 %v3069_v19, 0.0 }
 0x8a2   :  { %3550 = vmatmul.mubr.msk.f32.vlgmr.msra.gmra.mrb[224].mxu1 %vm2611_vm2, %v3070_v31 }
 0x975   :  { %v3151_v41 = vpop.f32.mrb[224].mxu1 }
 0x976   :  { %v3152_v53 = vadd.f32 %v3285_v5, %v3151_v41  ;;  %v3551_v24 = vpop.f32.mrb[225].mxu1 }
 0x978   :  { %3156 = vst.msk [vmem:[#allocation2] sm:$0x3] %vm3155_vm5, %v3152_v53 }
 0x979   :  { %3972 = shalt.err (!%p3969_p4)
}
 0x97a   :  { %s3973_s16 = scalar_lea.hbm %s6232_s10, 32 }
 0x97b   :  { %p3974_p5 = scmp.ne.s32.totalorder %s6232_s10, %s3973_s16  ;;  %p3977_p6 = scmp.lt.u32.totalorder %s3973_s16, %s6232_s10 }
 0x97d   :  { %p3979_p7 = pnand %p3977_p6, %p3974_p5 }
 0x97f   :  { %3982 = shalt.err (!%p3979_p7)
}
 0x980   :  { %3166 = dma.vmem_to_hbm [thread:$0]  %s3164_s15, 32, %s6232_s10, [#allocation3]  }
 0x981   :  { %3983 = dma.done.wait [#allocation3], 32  }
 0x982   :  { %3984 = vsyncadd [#allocation3], 4294967264 }
 0x983   :  { %3170 = vsyncpa [#allocation3], 1 }

</bundles_post_ra>
